<compile_context>
chip_gen: v7x
topology: tpu7x:2x2x1
jax: 0.10.0
libtpu: 0.0.40
codegen_flags: <defaults>
</compile_context>

<pallas_src>
import functools

import jax
import jax.numpy as jnp
from jax.experimental import pallas as pl
from jax.experimental.pallas import tpu as pltpu

R = 8  # padded sublane rows per time step (batch padded to 8)


# ----------------------------------------------------------------------------
# Fused Pallas kernel: conv -> 3x biLSTM -> fc_spec ; cls-biLSTM -> fc_cls
# ----------------------------------------------------------------------------
def _fused_forward_kernel(x_col_ref, conv_w_ref, w_slab_ref, b_slab_ref,
                          fc_slab_ref, spec_ref, cls_ref, buf0, buf1,
                          *, Lout, H, n_rnn_layers, out_pad):
    f32, bf16 = jnp.float32, jnp.bfloat16
    n_lstm = n_rnn_layers + 1
    H2, H4, H8 = 2 * H, 4 * H, 8 * H

    b_all = b_slab_ref[...]                      # (rows, >=8H) f32, single load

    # ---------------- Conv1d (im2col matmul) + ReLU + Sigmoid ----------------
    # conv weight output lanes are zero-padded to 2H in the wrapper; the
    # resulting garbage 0.5 lanes hit zero rows of layer-0 W_ih (harmless).
    conv = jnp.dot(x_col_ref[...], conv_w_ref[...], preferred_element_type=f32)
    conv = conv + b_all[0:1, 0:H2]
    conv = jax.nn.sigmoid(jnp.maximum(conv, 0.0))
    buf0[...] = conv                              # layer-0 input, (Lout*R, 2H) f32

    bufs = [buf0, buf1]

    def fused_bilstm_layer(l, src, dst):
        """One bidirectional LSTM layer; both directions in one recurrence."""
        w_ih = w_slab_ref[2 * l]                  # (2H, 8H) bf16 [fwd 4H | bwd 4H]
        w_hh = w_slab_ref[2 * l + 1]              # (2H, 8H) bf16 block-diagonal
        bias = b_all[1 + l:2 + l, :H8]            # (1, 8H) f32 (folded b_ih + b_hh)

        # Hoisted input projection for BOTH directions (off the serial path).
        x_in = src[...].astype(bf16)              # (Lout*R, 2H)
        xp = jnp.dot(x_in, w_ih, preferred_element_type=f32) + bias  # (Lout*R, 8H)
        # Backward half consumes time in reverse -> pre-reverse it once so the
        # serial loop reads a single aligned (R, 8H) block per step.
        bwd_rev = jnp.concatenate(
            [xp[(Lout - 1 - t) * R:(Lout - t) * R, H4:H8] for t in range(Lout)],
            axis=0)
        xcomb = jnp.concatenate([xp[:, 0:H4], bwd_rev], axis=-1)     # (Lout*R, 8H)

        h_bf = jnp.zeros((R, H2), bf16)           # [h_fwd | h_bwd]
        c = jnp.zeros((R, H2), f32)               # [c_fwd | c_bwd]
        for k in range(Lout):                     # short, fully static serial loop
            g = xcomb[k * R:(k + 1) * R, :] + jnp.dot(
                h_bf, w_hh, preferred_element_type=f32)               # (R, 8H)
            # Single EUP pass over the whole gate vector; the candidate-gate
            # columns were pre-scaled by 2, so tanh(a) = 2*sigmoid(2a) - 1.
            sg = jax.nn.sigmoid(g)
            i_g = jnp.concatenate([sg[:, 0 * H:1 * H], sg[:, 4 * H:5 * H]], axis=-1)
            f_g = jnp.concatenate([sg[:, 1 * H:2 * H], sg[:, 5 * H:6 * H]], axis=-1)
            c_g = jnp.concatenate([sg[:, 2 * H:3 * H], sg[:, 6 * H:7 * H]],
                                  axis=-1) * 2.0 - 1.0
            o_g = jnp.concatenate([sg[:, 3 * H:4 * H], sg[:, 7 * H:8 * H]], axis=-1)
            c = f_g * c + i_g * c_g
            h = o_g * jnp.tanh(c)
            h_bf = h.astype(bf16)
            # fwd half belongs to time k, bwd half to time Lout-1-k (PyTorch
            # bidirectional output semantics).
            dst[k * R:(k + 1) * R, 0:H] = h[:, 0:H]
            dst[(Lout - 1 - k) * R:(Lout - k) * R, H:H2] = h[:, H:H2]

    # ---------------- 3 stacked biLSTM layers (ping-pong VMEM buffers) -------
    for l in range(n_rnn_layers):
        fused_bilstm_layer(l, bufs[l % 2], bufs[(l + 1) % 2])
    rnn_out = bufs[n_rnn_layers % 2]

    # ---------------- fc_spectrogram (lane-dense 128-wide output slab) -------
    spec_ref[...] = (jnp.dot(rnn_out[...].astype(bf16), fc_slab_ref[0],
                             preferred_element_type=f32)
                     + b_all[1 + n_lstm:2 + n_lstm, 0:out_pad])

    # ---------------- classification biLSTM; only output[-1] is consumed -----
    fused_bilstm_layer(n_rnn_layers, rnn_out, bufs[(n_rnn_layers + 1) % 2])
    cls_buf = bufs[(n_rnn_layers + 1) % 2]
    last = cls_buf[(Lout - 1) * R:Lout * R, :].astype(bf16)     # (R, 2H)
    cls_ref[...] = (jnp.dot(last, fc_slab_ref[1], preferred_element_type=f32)
                    + b_all[2 + n_lstm:3 + n_lstm, 0:out_pad])


# ----------------------------------------------------------------------------
# Parameter init (deterministic, synthetic)
# ----------------------------------------------------------------------------
def init_params(key, in_channels, cnn_dim, rnn_dim, num_rnn_layers,
                n_classes, num_classes, KS=4):
    keys = iter(jax.random.split(key, 128))

    def u(shape, scale=0.1):
        return jax.random.uniform(next(keys), shape, jnp.float32, -scale, scale)

    def lstm_dir(input_size, hidden):
        return (u((4 * hidden, input_size)),   # weight_ih
                u((4 * hidden, hidden)),       # weight_hh
                u((4 * hidden,)),              # bias_ih
                u((4 * hidden,)))              # bias_hh

    params = {
        "conv_w": u((cnn_dim, in_channels, KS)),
        "conv_b": u((cnn_dim,)),
        "fc_spec_w": u((n_classes, 2 * rnn_dim)),
        "fc_spec_b": u((n_classes,)),
        "fc_cls_w": u((num_classes, 2 * rnn_dim)),
        "fc_cls_b": u((num_classes,)),
    }
    rnn = []
    for layer in range(num_rnn_layers):
        isz = cnn_dim if layer == 0 else 2 * rnn_dim
        rnn.append((lstm_dir(isz, rnn_dim), lstm_dir(isz, rnn_dim)))
    params["rnn"] = rnn
    params["rnn_cls"] = [(lstm_dir(2 * rnn_dim, rnn_dim),
                          lstm_dir(2 * rnn_dim, rnn_dim))]
    return params


# ----------------------------------------------------------------------------
# Forward pass wrapper: weight slab prep + one fused pallas_call
# ----------------------------------------------------------------------------
def forward(params, x, KS=4, stride=4, pad=2):
    f32, bf16 = jnp.float32, jnp.bfloat16
    B, T, Cin = x.shape
    assert KS == stride, "im2col-as-reshape requires kernel_size == stride"
    assert T % stride == 0, "im2col-as-reshape requires T % stride == 0"
    assert B <= R, "batch is padded to 8 sublane rows"

    conv_w = params["conv_w"]                         # (cnn_dim, Cin, KS)
    cnn_dim = conv_w.shape[0]
    H = params["rnn"][0][0][1].shape[1]               # weight_hh is (4H, H)
    n_rnn_layers = len(params["rnn"])
    n_lstm = n_rnn_layers + 1
    n_classes = params["fc_spec_w"].shape[0]
    num_classes = params["fc_cls_w"].shape[0]
    Lout = (T + 2 * pad - KS) // stride + 1
    H2, H4, H8 = 2 * H, 4 * H, 8 * H
    assert cnn_dim <= H2, "conv output lanes are padded up to 2*rnn_dim"
    assert (T + 2 * pad) == Lout * KS
    out_pad = ((max(n_classes, num_classes) + 127) // 128) * 128

    # ---- im2col, batch padded to 8 rows per time step, time-major -----------
    x_pad = jnp.pad(x, ((0, R - B), (pad, pad), (0, 0)))        # (R, T+2p, Cin)
    x_win = x_pad.reshape(R, Lout, KS * Cin)                    # valid: KS==stride
    x_col = jnp.transpose(x_win, (1, 0, 2)).reshape(Lout * R, KS * Cin).astype(bf16)

    # ---- conv weight -> (KS*Cin, 2H) with zero-padded output lanes ----------
    w_col = jnp.transpose(conv_w, (2, 1, 0)).reshape(KS * Cin, cnn_dim)
    w_col = jnp.pad(w_col, ((0, 0), (0, H2 - cnn_dim))).astype(bf16)
    conv_b = jnp.pad(params["conv_b"], (0, H2 - cnn_dim))       # (2H,) f32

    # ---- LSTM weights: fuse fwd/bwd, pre-scale g-gate columns by 2 ----------
    gate_scale = jnp.ones((H4,), f32).at[2 * H:3 * H].set(2.0)

    def prep_ih(p, in_size):                                    # -> (2H, 4H)
        wt = p[0].T * gate_scale[None, :]
        return jnp.pad(wt, ((0, H2 - in_size), (0, 0)))

    def prep_hh(p):                                             # -> (H, 4H)
        return p[1].T * gate_scale[None, :]

    def prep_b(p):                                              # -> (4H,)
        return (p[2] + p[3]) * gate_scale

    zero_hh = jnp.zeros((H, H4), f32)
    w_slab_parts, lstm_biases = [], []
    for (p_fwd, p_bwd) in list(params["rnn"]) + list(params["rnn_cls"]):
        in_size = p_fwd[0].shape[1]
        w_ih_cat = jnp.concatenate([prep_ih(p_fwd, in_size),
                                    prep_ih(p_bwd, in_size)], axis=1)      # (2H, 8H)
        w_hh_bd = jnp.concatenate(
            [jnp.concatenate([prep_hh(p_fwd), zero_hh], axis=1),
             jnp.concatenate([zero_hh, prep_hh(p_bwd)], axis=1)], axis=0)  # (2H, 8H)
        w_slab_parts += [w_ih_cat, w_hh_bd]
        lstm_biases.append(jnp.concatenate([prep_b(p_fwd), prep_b(p_bwd)]))
    w_slab = jnp.stack(w_slab_parts).astype(bf16)               # (2*n_lstm, 2H, 8H)

    # ---- one bias slab: conv, 4x lstm, fc_spec, fc_cls (8-row padded) -------
    lanes_b = max(H8, out_pad)

    def lane_pad(v):
        return jnp.pad(v.astype(f32), (0, lanes_b - v.shape[0]))

    b_rows = ([lane_pad(conv_b)] + [lane_pad(b) for b in lstm_biases]
              + [lane_pad(params["fc_spec_b"]), lane_pad(params["fc_cls_b"])])
    n_rows = ((len(b_rows) + 7) // 8) * 8
    b_rows += [jnp.zeros((lanes_b,), f32)] * (n_rows - len(b_rows))
    b_slab = jnp.stack(b_rows)                                  # (n_rows, lanes_b)

    # ---- FC weights, lane-padded to a 128-multiple output slab --------------
    def fc_pad(w):                                              # (out, 2H) -> (2H, out_pad)
        return jnp.pad(w.T, ((0, 0), (0, out_pad - w.shape[0])))

    fc_slab = jnp.stack([fc_pad(params["fc_spec_w"]),
                         fc_pad(params["fc_cls_w"])]).astype(bf16)  # (2, 2H, out_pad)

    kernel = functools.partial(_fused_forward_kernel, Lout=Lout, H=H,
                               n_rnn_layers=n_rnn_layers, out_pad=out_pad)

    spec_pad, cls_pad = pl.pallas_call(
        kernel,
        out_shape=(jax.ShapeDtypeStruct((Lout * R, out_pad), f32),
                   jax.ShapeDtypeStruct((R, out_pad), f32)),
        scratch_shapes=[pltpu.VMEM((Lout * R, H2), f32),
                        pltpu.VMEM((Lout * R, H2), f32)],
        compiler_params=pltpu.CompilerParams(vmem_limit_bytes=32 * 1024 * 1024),
    )(x_col, w_col, w_slab, b_slab, fc_slab)

    # PyTorch: spectrogram_output.permute(1,0,2) -> (B, T', n_classes)
    spectrogram_output = (spec_pad.reshape(Lout, R, out_pad)[:, :B, :n_classes]
                          .transpose(1, 0, 2))
    classification_output = cls_pad[:B, :num_classes]
    return spectrogram_output, classification_output


# ----------------------------------------------------------------------------
# Main
# ----------------------------------------------------------------------------
if __name__ == "__main__":
    key = jax.random.PRNGKey(0)
    pkey, xkey = jax.random.split(key)

    # Small shapes consistent with the module (scaled-down hyperparameters).
    B, T, Cin = 2, 16, 16          # batch, input time steps, in_channels
    cnn_dim = rnn_dim = 32
    num_rnn_layers = 3
    n_classes, num_classes = 8, 6

    params = init_params(pkey, Cin, cnn_dim, rnn_dim, num_rnn_layers,
                         n_classes, num_classes)
    x = jax.random.normal(xkey, (B, T, Cin), jnp.float32)

    spec_out, cls_out = jax.jit(forward)(params, x)
    jax.block_until_ready((spec_out, cls_out))

    Tout = T // 4 + 1
    assert spec_out.shape == (B, Tout, n_classes), spec_out.shape
    assert cls_out.shape == (B, num_classes), cls_out.shape
    assert bool(jnp.all(jnp.isfinite(spec_out))) and bool(jnp.all(jnp.isfinite(cls_out)))
    print("KERNEL_OK")
</pallas_src>

<mosaic_0001>
module attributes {stable_mosaic.version = 11 : i64} {
  func.func @_fused_forward_kernel(%arg0: memref<40x64xbf16, #tpu.memory_space<vmem>>, %arg1: memref<64x64xbf16, #tpu.memory_space<vmem>>, %arg2: memref<8x64x256xbf16, #tpu.memory_space<vmem>>, %arg3: memref<8x256xf32, #tpu.memory_space<vmem>>, %arg4: memref<2x64x128xbf16, #tpu.memory_space<vmem>>, %arg5: memref<40x128xf32, #tpu.memory_space<vmem>>, %arg6: memref<8x128xf32, #tpu.memory_space<vmem>>, %arg7: memref<40x64xf32, #tpu.memory_space<vmem>>, %arg8: memref<40x64xf32, #tpu.memory_space<vmem>>) attributes {dimension_semantics = [], scalar_prefetch = 0 : i64, scratch_operands = 2 : i64, tpu.core_type = #tpu.core_type<tc>} {
    %c0 = arith.constant 0 : index
    %c0_0 = arith.constant 0 : index
    %0 = vector.load %arg3[%c0, %c0_0] : memref<8x256xf32, #tpu.memory_space<vmem>>, vector<8x256xf32>
    %c0_1 = arith.constant 0 : index
    %c0_2 = arith.constant 0 : index
    %1 = vector.load %arg0[%c0_1, %c0_2] : memref<40x64xbf16, #tpu.memory_space<vmem>>, vector<40x64xbf16>
    %c0_3 = arith.constant 0 : index
    %c0_4 = arith.constant 0 : index
    %2 = vector.load %arg1[%c0_3, %c0_4] : memref<64x64xbf16, #tpu.memory_space<vmem>>, vector<64x64xbf16>
    %cst = arith.constant dense<0.000000e+00> : vector<40x64xf32>
    %3 = tpu.matmul %1, %2, %cst {dimension_numbers = #tpu.dot_dimension_numbers<[1], [0], [0], [1], [0, 0, 1, 1], [], []>} : vector<40x64xbf16>, vector<64x64xbf16>, vector<40x64xf32> -> vector<40x64xf32>
    %4 = vector.extract_strided_slice %0 {offsets = [0, 0], sizes = [1, 64], strides = [1, 1]} : vector<8x256xf32> to vector<1x64xf32>
    %5 = vector.broadcast %4 : vector<1x64xf32> to vector<40x64xf32>
    %6 = arith.addf %3, %5 : vector<40x64xf32>
    %cst_5 = arith.constant 0.000000e+00 : f32
    %7 = vector.broadcast %cst_5 : f32 to vector<40x64xf32>
    %8 = arith.maximumf %6, %7 : vector<40x64xf32>
    %9 = arith.negf %8 : vector<40x64xf32>
    %10 = math.exp %9 : vector<40x64xf32>
    %cst_6 = arith.constant 1.000000e+00 : f32
    %11 = vector.broadcast %cst_6 : f32 to vector<40x64xf32>
    %12 = arith.addf %11, %10 : vector<40x64xf32>
    %13 = arith.divf %11, %12 : vector<40x64xf32>
    %c0_7 = arith.constant 0 : index
    %c0_8 = arith.constant 0 : index
    %14 = vector.load %arg7[%c0_7, %c0_8] : memref<40x64xf32, #tpu.memory_space<vmem>>, vector<40x64xf32>
    tpu.vector_store %arg7[%c0_7, %c0_8], %13 {strides = array<i32>} : memref<40x64xf32, #tpu.memory_space<vmem>>, vector<40x64xf32>,
    %c0_9 = arith.constant 0 : index
    %c0_10 = arith.constant 0 : index
    %c0_11 = arith.constant 0 : index
    %15 = vector.load %arg2[%c0_9, %c0_10, %c0_11] : memref<8x64x256xbf16, #tpu.memory_space<vmem>>, vector<1x64x256xbf16>
    %16 = vector.shape_cast %15 : vector<1x64x256xbf16> to vector<64x256xbf16>
    %c1 = arith.constant 1 : index
    %c0_12 = arith.constant 0 : index
    %c0_13 = arith.constant 0 : index
    %17 = vector.load %arg2[%c1, %c0_12, %c0_13] : memref<8x64x256xbf16, #tpu.memory_space<vmem>>, vector<1x64x256xbf16>
    %18 = vector.shape_cast %17 : vector<1x64x256xbf16> to vector<64x256xbf16>
    %19 = vector.extract_strided_slice %0 {offsets = [1, 0], sizes = [1, 256], strides = [1, 1]} : vector<8x256xf32> to vector<1x256xf32>
    %c0_14 = arith.constant 0 : index
    %c0_15 = arith.constant 0 : index
    %20 = vector.load %arg7[%c0_14, %c0_15] : memref<40x64xf32, #tpu.memory_space<vmem>>, vector<40x64xf32>
    %21 = arith.truncf %20 : vector<40x64xf32> to vector<40x64xbf16>
    %cst_16 = arith.constant dense<0.000000e+00> : vector<40x256xf32>
    %22 = tpu.matmul %21, %16, %cst_16 {dimension_numbers = #tpu.dot_dimension_numbers<[1], [0], [0], [1], [0, 0, 1, 1], [], []>} : vector<40x64xbf16>, vector<64x256xbf16>, vector<40x256xf32> -> vector<40x256xf32>
    %23 = vector.broadcast %19 : vector<1x256xf32> to vector<40x256xf32>
    %24 = arith.addf %22, %23 : vector<40x256xf32>
    %25 = vector.extract_strided_slice %24 {offsets = [32, 128], sizes = [8, 128], strides = [1, 1]} : vector<40x256xf32> to vector<8x128xf32>
    %26 = vector.extract_strided_slice %24 {offsets = [24, 128], sizes = [8, 128], strides = [1, 1]} : vector<40x256xf32> to vector<8x128xf32>
    %27 = vector.extract_strided_slice %24 {offsets = [16, 128], sizes = [8, 128], strides = [1, 1]} : vector<40x256xf32> to vector<8x128xf32>
    %28 = vector.extract_strided_slice %24 {offsets = [8, 128], sizes = [8, 128], strides = [1, 1]} : vector<40x256xf32> to vector<8x128xf32>
    %29 = vector.extract_strided_slice %24 {offsets = [0, 128], sizes = [8, 128], strides = [1, 1]} : vector<40x256xf32> to vector<8x128xf32>
    %30 = tpu.concatenate %25, %26, %27, %28, %29 in 0 : vector<8x128xf32>, vector<8x128xf32>, vector<8x128xf32>, vector<8x128xf32>, vector<8x128xf32> -> vector<40x128xf32>
    %31 = vector.extract_strided_slice %24 {offsets = [0, 0], sizes = [40, 128], strides = [1, 1]} : vector<40x256xf32> to vector<40x128xf32>
    %32 = tpu.concatenate %31, %30 in 1 : vector<40x128xf32>, vector<40x128xf32> -> vector<40x256xf32>
    %cst_17 = arith.constant 0.000000e+00 : bf16
    %33 = vector.broadcast %cst_17 : bf16 to vector<8x64xbf16>
    %cst_18 = arith.constant 0.000000e+00 : f32
    %34 = vector.broadcast %cst_18 : f32 to vector<8x64xf32>
    %35 = vector.extract_strided_slice %32 {offsets = [0, 0], sizes = [8, 256], strides = [1, 1]} : vector<40x256xf32> to vector<8x256xf32>
    %cst_19 = arith.constant dense<0.000000e+00> : vector<8x256xf32>
    %36 = tpu.matmul %33, %18, %cst_19 {dimension_numbers = #tpu.dot_dimension_numbers<[1], [0], [0], [1], [0, 0, 1, 1], [], []>} : vector<8x64xbf16>, vector<64x256xbf16>, vector<8x256xf32> -> vector<8x256xf32>
    %37 = arith.addf %35, %36 : vector<8x256xf32>
    %38 = arith.negf %37 : vector<8x256xf32>
    %39 = math.exp %38 : vector<8x256xf32>
    %cst_20 = arith.constant 1.000000e+00 : f32
    %40 = vector.broadcast %cst_20 : f32 to vector<8x256xf32>
    %41 = arith.addf %40, %39 : vector<8x256xf32>
    %42 = arith.divf %40, %41 : vector<8x256xf32>
    %43 = vector.extract_strided_slice %42 {offsets = [0, 0], sizes = [8, 32], strides = [1, 1]} : vector<8x256xf32> to vector<8x32xf32>
    %44 = vector.extract_strided_slice %42 {offsets = [0, 128], sizes = [8, 32], strides = [1, 1]} : vector<8x256xf32> to vector<8x32xf32>
    %45 = tpu.concatenate %43, %44 in 1 : vector<8x32xf32>, vector<8x32xf32> -> vector<8x64xf32>
    %46 = vector.extract_strided_slice %42 {offsets = [0, 32], sizes = [8, 32], strides = [1, 1]} : vector<8x256xf32> to vector<8x32xf32>
    %47 = vector.extract_strided_slice %42 {offsets = [0, 160], sizes = [8, 32], strides = [1, 1]} : vector<8x256xf32> to vector<8x32xf32>
    %48 = tpu.concatenate %46, %47 in 1 : vector<8x32xf32>, vector<8x32xf32> -> vector<8x64xf32>
    %49 = vector.extract_strided_slice %42 {offsets = [0, 64], sizes = [8, 32], strides = [1, 1]} : vector<8x256xf32> to vector<8x32xf32>
    %50 = vector.extract_strided_slice %42 {offsets = [0, 192], sizes = [8, 32], strides = [1, 1]} : vector<8x256xf32> to vector<8x32xf32>
    %51 = tpu.concatenate %49, %50 in 1 : vector<8x32xf32>, vector<8x32xf32> -> vector<8x64xf32>
    %cst_21 = arith.constant 2.000000e+00 : f32
    %52 = vector.broadcast %cst_21 : f32 to vector<8x64xf32>
    %53 = arith.mulf %51, %52 : vector<8x64xf32>
    %cst_22 = arith.constant 1.000000e+00 : f32
    %54 = vector.broadcast %cst_22 : f32 to vector<8x64xf32>
    %55 = arith.subf %53, %54 : vector<8x64xf32>
    %56 = vector.extract_strided_slice %42 {offsets = [0, 96], sizes = [8, 32], strides = [1, 1]} : vector<8x256xf32> to vector<8x32xf32>
    %57 = vector.extract_strided_slice %42 {offsets = [0, 224], sizes = [8, 32], strides = [1, 1]} : vector<8x256xf32> to vector<8x32xf32>
    %58 = tpu.concatenate %56, %57 in 1 : vector<8x32xf32>, vector<8x32xf32> -> vector<8x64xf32>
    %59 = arith.mulf %48, %34 : vector<8x64xf32>
    %60 = arith.mulf %45, %55 : vector<8x64xf32>
    %61 = arith.addf %59, %60 : vector<8x64xf32>
    %62 = math.tanh %61 : vector<8x64xf32>
    %63 = arith.mulf %58, %62 : vector<8x64xf32>
    %64 = arith.truncf %63 : vector<8x64xf32> to vector<8x64xbf16>
    %65 = vector.extract_strided_slice %63 {offsets = [0, 0], sizes = [8, 32], strides = [1, 1]} : vector<8x64xf32> to vector<8x32xf32>
    %c0_23 = arith.constant 0 : index
    %c0_24 = arith.constant 0 : index
    %66 = vector.load %arg8[%c0_23, %c0_24] : memref<40x64xf32, #tpu.memory_space<vmem>>, vector<8x32xf32>
    tpu.vector_store %arg8[%c0_23, %c0_24], %65 {strides = array<i32>} : memref<40x64xf32, #tpu.memory_space<vmem>>, vector<8x32xf32>,
    %67 = vector.extract_strided_slice %63 {offsets = [0, 32], sizes = [8, 32], strides = [1, 1]} : vector<8x64xf32> to vector<8x32xf32>
    %c32 = arith.constant 32 : index
    %c32_25 = arith.constant 32 : index
    %68 = vector.load %arg8[%c32, %c32_25] : memref<40x64xf32, #tpu.memory_space<vmem>>, vector<8x32xf32>
    tpu.vector_store %arg8[%c32, %c32_25], %67 {strides = array<i32>} : memref<40x64xf32, #tpu.memory_space<vmem>>, vector<8x32xf32>,
    %69 = vector.extract_strided_slice %32 {offsets = [8, 0], sizes = [8, 256], strides = [1, 1]} : vector<40x256xf32> to vector<8x256xf32>
    %cst_26 = arith.constant dense<0.000000e+00> : vector<8x256xf32>
    %70 = tpu.matmul %64, %18, %cst_26 {dimension_numbers = #tpu.dot_dimension_numbers<[1], [0], [0], [1], [0, 0, 1, 1], [], []>} : vector<8x64xbf16>, vector<64x256xbf16>, vector<8x256xf32> -> vector<8x256xf32>
    %71 = arith.addf %69, %70 : vector<8x256xf32>
    %72 = arith.negf %71 : vector<8x256xf32>
    %73 = math.exp %72 : vector<8x256xf32>
    %cst_27 = arith.constant 1.000000e+00 : f32
    %74 = vector.broadcast %cst_27 : f32 to vector<8x256xf32>
    %75 = arith.addf %74, %73 : vector<8x256xf32>
    %76 = arith.divf %74, %75 : vector<8x256xf32>
    %77 = vector.extract_strided_slice %76 {offsets = [0, 0], sizes = [8, 32], strides = [1, 1]} : vector<8x256xf32> to vector<8x32xf32>
    %78 = vector.extract_strided_slice %76 {offsets = [0, 128], sizes = [8, 32], strides = [1, 1]} : vector<8x256xf32> to vector<8x32xf32>
    %79 = tpu.concatenate %77, %78 in 1 : vector<8x32xf32>, vector<8x32xf32> -> vector<8x64xf32>
    %80 = vector.extract_strided_slice %76 {offsets = [0, 32], sizes = [8, 32], strides = [1, 1]} : vector<8x256xf32> to vector<8x32xf32>
    %81 = vector.extract_strided_slice %76 {offsets = [0, 160], sizes = [8, 32], strides = [1, 1]} : vector<8x256xf32> to vector<8x32xf32>
    %82 = tpu.concatenate %80, %81 in 1 : vector<8x32xf32>, vector<8x32xf32> -> vector<8x64xf32>
    %83 = vector.extract_strided_slice %76 {offsets = [0, 64], sizes = [8, 32], strides = [1, 1]} : vector<8x256xf32> to vector<8x32xf32>
    %84 = vector.extract_strided_slice %76 {offsets = [0, 192], sizes = [8, 32], strides = [1, 1]} : vector<8x256xf32> to vector<8x32xf32>
    %85 = tpu.concatenate %83, %84 in 1 : vector<8x32xf32>, vector<8x32xf32> -> vector<8x64xf32>
    %cst_28 = arith.constant 2.000000e+00 : f32
    %86 = vector.broadcast %cst_28 : f32 to vector<8x64xf32>
    %87 = arith.mulf %85, %86 : vector<8x64xf32>
    %cst_29 = arith.constant 1.000000e+00 : f32
    %88 = vector.broadcast %cst_29 : f32 to vector<8x64xf32>
    %89 = arith.subf %87, %88 : vector<8x64xf32>
    %90 = vector.extract_strided_slice %76 {offsets = [0, 96], sizes = [8, 32], strides = [1, 1]} : vector<8x256xf32> to vector<8x32xf32>
    %91 = vector.extract_strided_slice %76 {offsets = [0, 224], sizes = [8, 32], strides = [1, 1]} : vector<8x256xf32> to vector<8x32xf32>
    %92 = tpu.concatenate %90, %91 in 1 : vector<8x32xf32>, vector<8x32xf32> -> vector<8x64xf32>
    %93 = arith.mulf %82, %61 : vector<8x64xf32>
    %94 = arith.mulf %79, %89 : vector<8x64xf32>
    %95 = arith.addf %93, %94 : vector<8x64xf32>
    %96 = math.tanh %95 : vector<8x64xf32>
    %97 = arith.mulf %92, %96 : vector<8x64xf32>
    %98 = arith.truncf %97 : vector<8x64xf32> to vector<8x64xbf16>
    %99 = vector.extract_strided_slice %97 {offsets = [0, 0], sizes = [8, 32], strides = [1, 1]} : vector<8x64xf32> to vector<8x32xf32>
    %c8 = arith.constant 8 : index
    %c0_30 = arith.constant 0 : index
    %100 = vector.load %arg8[%c8, %c0_30] : memref<40x64xf32, #tpu.memory_space<vmem>>, vector<8x32xf32>
    tpu.vector_store %arg8[%c8, %c0_30], %99 {strides = array<i32>} : memref<40x64xf32, #tpu.memory_space<vmem>>, vector<8x32xf32>,
    %101 = vector.extract_strided_slice %97 {offsets = [0, 32], sizes = [8, 32], strides = [1, 1]} : vector<8x64xf32> to vector<8x32xf32>
    %c24 = arith.constant 24 : index
    %c32_31 = arith.constant 32 : index
    %102 = vector.load %arg8[%c24, %c32_31] : memref<40x64xf32, #tpu.memory_space<vmem>>, vector<8x32xf32>
    tpu.vector_store %arg8[%c24, %c32_31], %101 {strides = array<i32>} : memref<40x64xf32, #tpu.memory_space<vmem>>, vector<8x32xf32>,
    %103 = vector.extract_strided_slice %32 {offsets = [16, 0], sizes = [8, 256], strides = [1, 1]} : vector<40x256xf32> to vector<8x256xf32>
    %cst_32 = arith.constant dense<0.000000e+00> : vector<8x256xf32>
    %104 = tpu.matmul %98, %18, %cst_32 {dimension_numbers = #tpu.dot_dimension_numbers<[1], [0], [0], [1], [0, 0, 1, 1], [], []>} : vector<8x64xbf16>, vector<64x256xbf16>, vector<8x256xf32> -> vector<8x256xf32>
    %105 = arith.addf %103, %104 : vector<8x256xf32>
    %106 = arith.negf %105 : vector<8x256xf32>
    %107 = math.exp %106 : vector<8x256xf32>
    %cst_33 = arith.constant 1.000000e+00 : f32
    %108 = vector.broadcast %cst_33 : f32 to vector<8x256xf32>
    %109 = arith.addf %108, %107 : vector<8x256xf32>
    %110 = arith.divf %108, %109 : vector<8x256xf32>
    %111 = vector.extract_strided_slice %110 {offsets = [0, 0], sizes = [8, 32], strides = [1, 1]} : vector<8x256xf32> to vector<8x32xf32>
    %112 = vector.extract_strided_slice %110 {offsets = [0, 128], sizes = [8, 32], strides = [1, 1]} : vector<8x256xf32> to vector<8x32xf32>
    %113 = tpu.concatenate %111, %112 in 1 : vector<8x32xf32>, vector<8x32xf32> -> vector<8x64xf32>
    %114 = vector.extract_strided_slice %110 {offsets = [0, 32], sizes = [8, 32], strides = [1, 1]} : vector<8x256xf32> to vector<8x32xf32>
    %115 = vector.extract_strided_slice %110 {offsets = [0, 160], sizes = [8, 32], strides = [1, 1]} : vector<8x256xf32> to vector<8x32xf32>
    %116 = tpu.concatenate %114, %115 in 1 : vector<8x32xf32>, vector<8x32xf32> -> vector<8x64xf32>
    %117 = vector.extract_strided_slice %110 {offsets = [0, 64], sizes = [8, 32], strides = [1, 1]} : vector<8x256xf32> to vector<8x32xf32>
    %118 = vector.extract_strided_slice %110 {offsets = [0, 192], sizes = [8, 32], strides = [1, 1]} : vector<8x256xf32> to vector<8x32xf32>
    %119 = tpu.concatenate %117, %118 in 1 : vector<8x32xf32>, vector<8x32xf32> -> vector<8x64xf32>
    %cst_34 = arith.constant 2.000000e+00 : f32
    %120 = vector.broadcast %cst_34 : f32 to vector<8x64xf32>
    %121 = arith.mulf %119, %120 : vector<8x64xf32>
    %cst_35 = arith.constant 1.000000e+00 : f32
    %122 = vector.broadcast %cst_35 : f32 to vector<8x64xf32>
    %123 = arith.subf %121, %122 : vector<8x64xf32>
    %124 = vector.extract_strided_slice %110 {offsets = [0, 96], sizes = [8, 32], strides = [1, 1]} : vector<8x256xf32> to vector<8x32xf32>
    %125 = vector.extract_strided_slice %110 {offsets = [0, 224], sizes = [8, 32], strides = [1, 1]} : vector<8x256xf32> to vector<8x32xf32>
    %126 = tpu.concatenate %124, %125 in 1 : vector<8x32xf32>, vector<8x32xf32> -> vector<8x64xf32>
    %127 = arith.mulf %116, %95 : vector<8x64xf32>
    %128 = arith.mulf %113, %123 : vector<8x64xf32>
    %129 = arith.addf %127, %128 : vector<8x64xf32>
    %130 = math.tanh %129 : vector<8x64xf32>
    %131 = arith.mulf %126, %130 : vector<8x64xf32>
    %132 = arith.truncf %131 : vector<8x64xf32> to vector<8x64xbf16>
    %133 = vector.extract_strided_slice %131 {offsets = [0, 0], sizes = [8, 32], strides = [1, 1]} : vector<8x64xf32> to vector<8x32xf32>
    %c16 = arith.constant 16 : index
    %c0_36 = arith.constant 0 : index
    %134 = vector.load %arg8[%c16, %c0_36] : memref<40x64xf32, #tpu.memory_space<vmem>>, vector<8x32xf32>
    tpu.vector_store %arg8[%c16, %c0_36], %133 {strides = array<i32>} : memref<40x64xf32, #tpu.memory_space<vmem>>, vector<8x32xf32>,
    %135 = vector.extract_strided_slice %131 {offsets = [0, 32], sizes = [8, 32], strides = [1, 1]} : vector<8x64xf32> to vector<8x32xf32>
    %c16_37 = arith.constant 16 : index
    %c32_38 = arith.constant 32 : index
    %136 = vector.load %arg8[%c16_37, %c32_38] : memref<40x64xf32, #tpu.memory_space<vmem>>, vector<8x32xf32>
    tpu.vector_store %arg8[%c16_37, %c32_38], %135 {strides = array<i32>} : memref<40x64xf32, #tpu.memory_space<vmem>>, vector<8x32xf32>,
    %137 = vector.extract_strided_slice %32 {offsets = [24, 0], sizes = [8, 256], strides = [1, 1]} : vector<40x256xf32> to vector<8x256xf32>
    %cst_39 = arith.constant dense<0.000000e+00> : vector<8x256xf32>
    %138 = tpu.matmul %132, %18, %cst_39 {dimension_numbers = #tpu.dot_dimension_numbers<[1], [0], [0], [1], [0, 0, 1, 1], [], []>} : vector<8x64xbf16>, vector<64x256xbf16>, vector<8x256xf32> -> vector<8x256xf32>
    %139 = arith.addf %137, %138 : vector<8x256xf32>
    %140 = arith.negf %139 : vector<8x256xf32>
    %141 = math.exp %140 : vector<8x256xf32>
    %cst_40 = arith.constant 1.000000e+00 : f32
    %142 = vector.broadcast %cst_40 : f32 to vector<8x256xf32>
    %143 = arith.addf %142, %141 : vector<8x256xf32>
    %144 = arith.divf %142, %143 : vector<8x256xf32>
    %145 = vector.extract_strided_slice %144 {offsets = [0, 0], sizes = [8, 32], strides = [1, 1]} : vector<8x256xf32> to vector<8x32xf32>
    %146 = vector.extract_strided_slice %144 {offsets = [0, 128], sizes = [8, 32], strides = [1, 1]} : vector<8x256xf32> to vector<8x32xf32>
    %147 = tpu.concatenate %145, %146 in 1 : vector<8x32xf32>, vector<8x32xf32> -> vector<8x64xf32>
    %148 = vector.extract_strided_slice %144 {offsets = [0, 32], sizes = [8, 32], strides = [1, 1]} : vector<8x256xf32> to vector<8x32xf32>
    %149 = vector.extract_strided_slice %144 {offsets = [0, 160], sizes = [8, 32], strides = [1, 1]} : vector<8x256xf32> to vector<8x32xf32>
    %150 = tpu.concatenate %148, %149 in 1 : vector<8x32xf32>, vector<8x32xf32> -> vector<8x64xf32>
    %151 = vector.extract_strided_slice %144 {offsets = [0, 64], sizes = [8, 32], strides = [1, 1]} : vector<8x256xf32> to vector<8x32xf32>
    %152 = vector.extract_strided_slice %144 {offsets = [0, 192], sizes = [8, 32], strides = [1, 1]} : vector<8x256xf32> to vector<8x32xf32>
    %153 = tpu.concatenate %151, %152 in 1 : vector<8x32xf32>, vector<8x32xf32> -> vector<8x64xf32>
    %cst_41 = arith.constant 2.000000e+00 : f32
    %154 = vector.broadcast %cst_41 : f32 to vector<8x64xf32>
    %155 = arith.mulf %153, %154 : vector<8x64xf32>
    %cst_42 = arith.constant 1.000000e+00 : f32
    %156 = vector.broadcast %cst_42 : f32 to vector<8x64xf32>
    %157 = arith.subf %155, %156 : vector<8x64xf32>
    %158 = vector.extract_strided_slice %144 {offsets = [0, 96], sizes = [8, 32], strides = [1, 1]} : vector<8x256xf32> to vector<8x32xf32>
    %159 = vector.extract_strided_slice %144 {offsets = [0, 224], sizes = [8, 32], strides = [1, 1]} : vector<8x256xf32> to vector<8x32xf32>
    %160 = tpu.concatenate %158, %159 in 1 : vector<8x32xf32>, vector<8x32xf32> -> vector<8x64xf32>
    %161 = arith.mulf %150, %129 : vector<8x64xf32>
    %162 = arith.mulf %147, %157 : vector<8x64xf32>
    %163 = arith.addf %161, %162 : vector<8x64xf32>
    %164 = math.tanh %163 : vector<8x64xf32>
    %165 = arith.mulf %160, %164 : vector<8x64xf32>
    %166 = arith.truncf %165 : vector<8x64xf32> to vector<8x64xbf16>
    %167 = vector.extract_strided_slice %165 {offsets = [0, 0], sizes = [8, 32], strides = [1, 1]} : vector<8x64xf32> to vector<8x32xf32>
    %c24_43 = arith.constant 24 : index
    %c0_44 = arith.constant 0 : index
    %168 = vector.load %arg8[%c24_43, %c0_44] : memref<40x64xf32, #tpu.memory_space<vmem>>, vector<8x32xf32>
    tpu.vector_store %arg8[%c24_43, %c0_44], %167 {strides = array<i32>} : memref<40x64xf32, #tpu.memory_space<vmem>>, vector<8x32xf32>,
    %169 = vector.extract_strided_slice %165 {offsets = [0, 32], sizes = [8, 32], strides = [1, 1]} : vector<8x64xf32> to vector<8x32xf32>
    %c8_45 = arith.constant 8 : index
    %c32_46 = arith.constant 32 : index
    %170 = vector.load %arg8[%c8_45, %c32_46] : memref<40x64xf32, #tpu.memory_space<vmem>>, vector<8x32xf32>
    tpu.vector_store %arg8[%c8_45, %c32_46], %169 {strides = array<i32>} : memref<40x64xf32, #tpu.memory_space<vmem>>, vector<8x32xf32>,
    %171 = vector.extract_strided_slice %32 {offsets = [32, 0], sizes = [8, 256], strides = [1, 1]} : vector<40x256xf32> to vector<8x256xf32>
    %cst_47 = arith.constant dense<0.000000e+00> : vector<8x256xf32>
    %172 = tpu.matmul %166, %18, %cst_47 {dimension_numbers = #tpu.dot_dimension_numbers<[1], [0], [0], [1], [0, 0, 1, 1], [], []>} : vector<8x64xbf16>, vector<64x256xbf16>, vector<8x256xf32> -> vector<8x256xf32>
    %173 = arith.addf %171, %172 : vector<8x256xf32>
    %174 = arith.negf %173 : vector<8x256xf32>
    %175 = math.exp %174 : vector<8x256xf32>
    %cst_48 = arith.constant 1.000000e+00 : f32
    %176 = vector.broadcast %cst_48 : f32 to vector<8x256xf32>
    %177 = arith.addf %176, %175 : vector<8x256xf32>
    %178 = arith.divf %176, %177 : vector<8x256xf32>
    %179 = vector.extract_strided_slice %178 {offsets = [0, 0], sizes = [8, 32], strides = [1, 1]} : vector<8x256xf32> to vector<8x32xf32>
    %180 = vector.extract_strided_slice %178 {offsets = [0, 128], sizes = [8, 32], strides = [1, 1]} : vector<8x256xf32> to vector<8x32xf32>
    %181 = tpu.concatenate %179, %180 in 1 : vector<8x32xf32>, vector<8x32xf32> -> vector<8x64xf32>
    %182 = vector.extract_strided_slice %178 {offsets = [0, 32], sizes = [8, 32], strides = [1, 1]} : vector<8x256xf32> to vector<8x32xf32>
    %183 = vector.extract_strided_slice %178 {offsets = [0, 160], sizes = [8, 32], strides = [1, 1]} : vector<8x256xf32> to vector<8x32xf32>
    %184 = tpu.concatenate %182, %183 in 1 : vector<8x32xf32>, vector<8x32xf32> -> vector<8x64xf32>
    %185 = vector.extract_strided_slice %178 {offsets = [0, 64], sizes = [8, 32], strides = [1, 1]} : vector<8x256xf32> to vector<8x32xf32>
    %186 = vector.extract_strided_slice %178 {offsets = [0, 192], sizes = [8, 32], strides = [1, 1]} : vector<8x256xf32> to vector<8x32xf32>
    %187 = tpu.concatenate %185, %186 in 1 : vector<8x32xf32>, vector<8x32xf32> -> vector<8x64xf32>
    %cst_49 = arith.constant 2.000000e+00 : f32
    %188 = vector.broadcast %cst_49 : f32 to vector<8x64xf32>
    %189 = arith.mulf %187, %188 : vector<8x64xf32>
    %cst_50 = arith.constant 1.000000e+00 : f32
    %190 = vector.broadcast %cst_50 : f32 to vector<8x64xf32>
    %191 = arith.subf %189, %190 : vector<8x64xf32>
    %192 = vector.extract_strided_slice %178 {offsets = [0, 96], sizes = [8, 32], strides = [1, 1]} : vector<8x256xf32> to vector<8x32xf32>
    %193 = vector.extract_strided_slice %178 {offsets = [0, 224], sizes = [8, 32], strides = [1, 1]} : vector<8x256xf32> to vector<8x32xf32>
    %194 = tpu.concatenate %192, %193 in 1 : vector<8x32xf32>, vector<8x32xf32> -> vector<8x64xf32>
    %195 = arith.mulf %184, %163 : vector<8x64xf32>
    %196 = arith.mulf %181, %191 : vector<8x64xf32>
    %197 = arith.addf %195, %196 : vector<8x64xf32>
    %198 = math.tanh %197 : vector<8x64xf32>
    %199 = arith.mulf %194, %198 : vector<8x64xf32>
    %200 = vector.extract_strided_slice %199 {offsets = [0, 0], sizes = [8, 32], strides = [1, 1]} : vector<8x64xf32> to vector<8x32xf32>
    %c32_51 = arith.constant 32 : index
    %c0_52 = arith.constant 0 : index
    %201 = vector.load %arg8[%c32_51, %c0_52] : memref<40x64xf32, #tpu.memory_space<vmem>>, vector<8x32xf32>
    tpu.vector_store %arg8[%c32_51, %c0_52], %200 {strides = array<i32>} : memref<40x64xf32, #tpu.memory_space<vmem>>, vector<8x32xf32>,
    %202 = vector.extract_strided_slice %199 {offsets = [0, 32], sizes = [8, 32], strides = [1, 1]} : vector<8x64xf32> to vector<8x32xf32>
    %c0_53 = arith.constant 0 : index
    %c32_54 = arith.constant 32 : index
    %203 = vector.load %arg8[%c0_53, %c32_54] : memref<40x64xf32, #tpu.memory_space<vmem>>, vector<8x32xf32>
    tpu.vector_store %arg8[%c0_53, %c32_54], %202 {strides = array<i32>} : memref<40x64xf32, #tpu.memory_space<vmem>>, vector<8x32xf32>,
    %c2 = arith.constant 2 : index
    %c0_55 = arith.constant 0 : index
    %c0_56 = arith.constant 0 : index
    %204 = vector.load %arg2[%c2, %c0_55, %c0_56] : memref<8x64x256xbf16, #tpu.memory_space<vmem>>, vector<1x64x256xbf16>
    %205 = vector.shape_cast %204 : vector<1x64x256xbf16> to vector<64x256xbf16>
    %c3 = arith.constant 3 : index
    %c0_57 = arith.constant 0 : index
    %c0_58 = arith.constant 0 : index
    %206 = vector.load %arg2[%c3, %c0_57, %c0_58] : memref<8x64x256xbf16, #tpu.memory_space<vmem>>, vector<1x64x256xbf16>
    %207 = vector.shape_cast %206 : vector<1x64x256xbf16> to vector<64x256xbf16>
    %208 = vector.extract_strided_slice %0 {offsets = [2, 0], sizes = [1, 256], strides = [1, 1]} : vector<8x256xf32> to vector<1x256xf32>
    %c0_59 = arith.constant 0 : index
    %c0_60 = arith.constant 0 : index
    %209 = vector.load %arg8[%c0_59, %c0_60] : memref<40x64xf32, #tpu.memory_space<vmem>>, vector<40x64xf32>
    %210 = arith.truncf %209 : vector<40x64xf32> to vector<40x64xbf16>
    %cst_61 = arith.constant dense<0.000000e+00> : vector<40x256xf32>
    %211 = tpu.matmul %210, %205, %cst_61 {dimension_numbers = #tpu.dot_dimension_numbers<[1], [0], [0], [1], [0, 0, 1, 1], [], []>} : vector<40x64xbf16>, vector<64x256xbf16>, vector<40x256xf32> -> vector<40x256xf32>
    %212 = vector.broadcast %208 : vector<1x256xf32> to vector<40x256xf32>
    %213 = arith.addf %211, %212 : vector<40x256xf32>
    %214 = vector.extract_strided_slice %213 {offsets = [32, 128], sizes = [8, 128], strides = [1, 1]} : vector<40x256xf32> to vector<8x128xf32>
    %215 = vector.extract_strided_slice %213 {offsets = [24, 128], sizes = [8, 128], strides = [1, 1]} : vector<40x256xf32> to vector<8x128xf32>
    %216 = vector.extract_strided_slice %213 {offsets = [16, 128], sizes = [8, 128], strides = [1, 1]} : vector<40x256xf32> to vector<8x128xf32>
    %217 = vector.extract_strided_slice %213 {offsets = [8, 128], sizes = [8, 128], strides = [1, 1]} : vector<40x256xf32> to vector<8x128xf32>
    %218 = vector.extract_strided_slice %213 {offsets = [0, 128], sizes = [8, 128], strides = [1, 1]} : vector<40x256xf32> to vector<8x128xf32>
    %219 = tpu.concatenate %214, %215, %216, %217, %218 in 0 : vector<8x128xf32>, vector<8x128xf32>, vector<8x128xf32>, vector<8x128xf32>, vector<8x128xf32> -> vector<40x128xf32>
    %220 = vector.extract_strided_slice %213 {offsets = [0, 0], sizes = [40, 128], strides = [1, 1]} : vector<40x256xf32> to vector<40x128xf32>
    %221 = tpu.concatenate %220, %219 in 1 : vector<40x128xf32>, vector<40x128xf32> -> vector<40x256xf32>
    %cst_62 = arith.constant 0.000000e+00 : bf16
    %222 = vector.broadcast %cst_62 : bf16 to vector<8x64xbf16>
    %cst_63 = arith.constant 0.000000e+00 : f32
    %223 = vector.broadcast %cst_63 : f32 to vector<8x64xf32>
    %224 = vector.extract_strided_slice %221 {offsets = [0, 0], sizes = [8, 256], strides = [1, 1]} : vector<40x256xf32> to vector<8x256xf32>
    %cst_64 = arith.constant dense<0.000000e+00> : vector<8x256xf32>
    %225 = tpu.matmul %222, %207, %cst_64 {dimension_numbers = #tpu.dot_dimension_numbers<[1], [0], [0], [1], [0, 0, 1, 1], [], []>} : vector<8x64xbf16>, vector<64x256xbf16>, vector<8x256xf32> -> vector<8x256xf32>
    %226 = arith.addf %224, %225 : vector<8x256xf32>
    %227 = arith.negf %226 : vector<8x256xf32>
    %228 = math.exp %227 : vector<8x256xf32>
    %cst_65 = arith.constant 1.000000e+00 : f32
    %229 = vector.broadcast %cst_65 : f32 to vector<8x256xf32>
    %230 = arith.addf %229, %228 : vector<8x256xf32>
    %231 = arith.divf %229, %230 : vector<8x256xf32>
    %232 = vector.extract_strided_slice %231 {offsets = [0, 0], sizes = [8, 32], strides = [1, 1]} : vector<8x256xf32> to vector<8x32xf32>
    %233 = vector.extract_strided_slice %231 {offsets = [0, 128], sizes = [8, 32], strides = [1, 1]} : vector<8x256xf32> to vector<8x32xf32>
    %234 = tpu.concatenate %232, %233 in 1 : vector<8x32xf32>, vector<8x32xf32> -> vector<8x64xf32>
    %235 = vector.extract_strided_slice %231 {offsets = [0, 32], sizes = [8, 32], strides = [1, 1]} : vector<8x256xf32> to vector<8x32xf32>
    %236 = vector.extract_strided_slice %231 {offsets = [0, 160], sizes = [8, 32], strides = [1, 1]} : vector<8x256xf32> to vector<8x32xf32>
    %237 = tpu.concatenate %235, %236 in 1 : vector<8x32xf32>, vector<8x32xf32> -> vector<8x64xf32>
    %238 = vector.extract_strided_slice %231 {offsets = [0, 64], sizes = [8, 32], strides = [1, 1]} : vector<8x256xf32> to vector<8x32xf32>
    %239 = vector.extract_strided_slice %231 {offsets = [0, 192], sizes = [8, 32], strides = [1, 1]} : vector<8x256xf32> to vector<8x32xf32>
    %240 = tpu.concatenate %238, %239 in 1 : vector<8x32xf32>, vector<8x32xf32> -> vector<8x64xf32>
    %cst_66 = arith.constant 2.000000e+00 : f32
    %241 = vector.broadcast %cst_66 : f32 to vector<8x64xf32>
    %242 = arith.mulf %240, %241 : vector<8x64xf32>
    %cst_67 = arith.constant 1.000000e+00 : f32
    %243 = vector.broadcast %cst_67 : f32 to vector<8x64xf32>
    %244 = arith.subf %242, %243 : vector<8x64xf32>
    %245 = vector.extract_strided_slice %231 {offsets = [0, 96], sizes = [8, 32], strides = [1, 1]} : vector<8x256xf32> to vector<8x32xf32>
    %246 = vector.extract_strided_slice %231 {offsets = [0, 224], sizes = [8, 32], strides = [1, 1]} : vector<8x256xf32> to vector<8x32xf32>
    %247 = tpu.concatenate %245, %246 in 1 : vector<8x32xf32>, vector<8x32xf32> -> vector<8x64xf32>
    %248 = arith.mulf %237, %223 : vector<8x64xf32>
    %249 = arith.mulf %234, %244 : vector<8x64xf32>
    %250 = arith.addf %248, %249 : vector<8x64xf32>
    %251 = math.tanh %250 : vector<8x64xf32>
    %252 = arith.mulf %247, %251 : vector<8x64xf32>
    %253 = arith.truncf %252 : vector<8x64xf32> to vector<8x64xbf16>
    %254 = vector.extract_strided_slice %252 {offsets = [0, 0], sizes = [8, 32], strides = [1, 1]} : vector<8x64xf32> to vector<8x32xf32>
    %c0_68 = arith.constant 0 : index
    %c0_69 = arith.constant 0 : index
    %255 = vector.load %arg7[%c0_68, %c0_69] : memref<40x64xf32, #tpu.memory_space<vmem>>, vector<8x32xf32>
    tpu.vector_store %arg7[%c0_68, %c0_69], %254 {strides = array<i32>} : memref<40x64xf32, #tpu.memory_space<vmem>>, vector<8x32xf32>,
    %256 = vector.extract_strided_slice %252 {offsets = [0, 32], sizes = [8, 32], strides = [1, 1]} : vector<8x64xf32> to vector<8x32xf32>
    %c32_70 = arith.constant 32 : index
    %c32_71 = arith.constant 32 : index
    %257 = vector.load %arg7[%c32_70, %c32_71] : memref<40x64xf32, #tpu.memory_space<vmem>>, vector<8x32xf32>
    tpu.vector_store %arg7[%c32_70, %c32_71], %256 {strides = array<i32>} : memref<40x64xf32, #tpu.memory_space<vmem>>, vector<8x32xf32>,
    %258 = vector.extract_strided_slice %221 {offsets = [8, 0], sizes = [8, 256], strides = [1, 1]} : vector<40x256xf32> to vector<8x256xf32>
    %cst_72 = arith.constant dense<0.000000e+00> : vector<8x256xf32>
    %259 = tpu.matmul %253, %207, %cst_72 {dimension_numbers = #tpu.dot_dimension_numbers<[1], [0], [0], [1], [0, 0, 1, 1], [], []>} : vector<8x64xbf16>, vector<64x256xbf16>, vector<8x256xf32> -> vector<8x256xf32>
    %260 = arith.addf %258, %259 : vector<8x256xf32>
    %261 = arith.negf %260 : vector<8x256xf32>
    %262 = math.exp %261 : vector<8x256xf32>
    %cst_73 = arith.constant 1.000000e+00 : f32
    %263 = vector.broadcast %cst_73 : f32 to vector<8x256xf32>
    %264 = arith.addf %263, %262 : vector<8x256xf32>
    %265 = arith.divf %263, %264 : vector<8x256xf32>
    %266 = vector.extract_strided_slice %265 {offsets = [0, 0], sizes = [8, 32], strides = [1, 1]} : vector<8x256xf32> to vector<8x32xf32>
    %267 = vector.extract_strided_slice %265 {offsets = [0, 128], sizes = [8, 32], strides = [1, 1]} : vector<8x256xf32> to vector<8x32xf32>
    %268 = tpu.concatenate %266, %267 in 1 : vector<8x32xf32>, vector<8x32xf32> -> vector<8x64xf32>
    %269 = vector.extract_strided_slice %265 {offsets = [0, 32], sizes = [8, 32], strides = [1, 1]} : vector<8x256xf32> to vector<8x32xf32>
    %270 = vector.extract_strided_slice %265 {offsets = [0, 160], sizes = [8, 32], strides = [1, 1]} : vector<8x256xf32> to vector<8x32xf32>
    %271 = tpu.concatenate %269, %270 in 1 : vector<8x32xf32>, vector<8x32xf32> -> vector<8x64xf32>
    %272 = vector.extract_strided_slice %265 {offsets = [0, 64], sizes = [8, 32], strides = [1, 1]} : vector<8x256xf32> to vector<8x32xf32>
    %273 = vector.extract_strided_slice %265 {offsets = [0, 192], sizes = [8, 32], strides = [1, 1]} : vector<8x256xf32> to vector<8x32xf32>
    %274 = tpu.concatenate %272, %273 in 1 : vector<8x32xf32>, vector<8x32xf32> -> vector<8x64xf32>
    %cst_74 = arith.constant 2.000000e+00 : f32
    %275 = vector.broadcast %cst_74 : f32 to vector<8x64xf32>
    %276 = arith.mulf %274, %275 : vector<8x64xf32>
    %cst_75 = arith.constant 1.000000e+00 : f32
    %277 = vector.broadcast %cst_75 : f32 to vector<8x64xf32>
    %278 = arith.subf %276, %277 : vector<8x64xf32>
    %279 = vector.extract_strided_slice %265 {offsets = [0, 96], sizes = [8, 32], strides = [1, 1]} : vector<8x256xf32> to vector<8x32xf32>
    %280 = vector.extract_strided_slice %265 {offsets = [0, 224], sizes = [8, 32], strides = [1, 1]} : vector<8x256xf32> to vector<8x32xf32>
    %281 = tpu.concatenate %279, %280 in 1 : vector<8x32xf32>, vector<8x32xf32> -> vector<8x64xf32>
    %282 = arith.mulf %271, %250 : vector<8x64xf32>
    %283 = arith.mulf %268, %278 : vector<8x64xf32>
    %284 = arith.addf %282, %283 : vector<8x64xf32>
    %285 = math.tanh %284 : vector<8x64xf32>
    %286 = arith.mulf %281, %285 : vector<8x64xf32>
    %287 = arith.truncf %286 : vector<8x64xf32> to vector<8x64xbf16>
    %288 = vector.extract_strided_slice %286 {offsets = [0, 0], sizes = [8, 32], strides = [1, 1]} : vector<8x64xf32> to vector<8x32xf32>
    %c8_76 = arith.constant 8 : index
    %c0_77 = arith.constant 0 : index
    %289 = vector.load %arg7[%c8_76, %c0_77] : memref<40x64xf32, #tpu.memory_space<vmem>>, vector<8x32xf32>
    tpu.vector_store %arg7[%c8_76, %c0_77], %288 {strides = array<i32>} : memref<40x64xf32, #tpu.memory_space<vmem>>, vector<8x32xf32>,
    %290 = vector.extract_strided_slice %286 {offsets = [0, 32], sizes = [8, 32], strides = [1, 1]} : vector<8x64xf32> to vector<8x32xf32>
    %c24_78 = arith.constant 24 : index
    %c32_79 = arith.constant 32 : index
    %291 = vector.load %arg7[%c24_78, %c32_79] : memref<40x64xf32, #tpu.memory_space<vmem>>, vector<8x32xf32>
    tpu.vector_store %arg7[%c24_78, %c32_79], %290 {strides = array<i32>} : memref<40x64xf32, #tpu.memory_space<vmem>>, vector<8x32xf32>,
    %292 = vector.extract_strided_slice %221 {offsets = [16, 0], sizes = [8, 256], strides = [1, 1]} : vector<40x256xf32> to vector<8x256xf32>
    %cst_80 = arith.constant dense<0.000000e+00> : vector<8x256xf32>
    %293 = tpu.matmul %287, %207, %cst_80 {dimension_numbers = #tpu.dot_dimension_numbers<[1], [0], [0], [1], [0, 0, 1, 1], [], []>} : vector<8x64xbf16>, vector<64x256xbf16>, vector<8x256xf32> -> vector<8x256xf32>
    %294 = arith.addf %292, %293 : vector<8x256xf32>
    %295 = arith.negf %294 : vector<8x256xf32>
    %296 = math.exp %295 : vector<8x256xf32>
    %cst_81 = arith.constant 1.000000e+00 : f32
    %297 = vector.broadcast %cst_81 : f32 to vector<8x256xf32>
    %298 = arith.addf %297, %296 : vector<8x256xf32>
    %299 = arith.divf %297, %298 : vector<8x256xf32>
    %300 = vector.extract_strided_slice %299 {offsets = [0, 0], sizes = [8, 32], strides = [1, 1]} : vector<8x256xf32> to vector<8x32xf32>
    %301 = vector.extract_strided_slice %299 {offsets = [0, 128], sizes = [8, 32], strides = [1, 1]} : vector<8x256xf32> to vector<8x32xf32>
    %302 = tpu.concatenate %300, %301 in 1 : vector<8x32xf32>, vector<8x32xf32> -> vector<8x64xf32>
    %303 = vector.extract_strided_slice %299 {offsets = [0, 32], sizes = [8, 32], strides = [1, 1]} : vector<8x256xf32> to vector<8x32xf32>
    %304 = vector.extract_strided_slice %299 {offsets = [0, 160], sizes = [8, 32], strides = [1, 1]} : vector<8x256xf32> to vector<8x32xf32>
    %305 = tpu.concatenate %303, %304 in 1 : vector<8x32xf32>, vector<8x32xf32> -> vector<8x64xf32>
    %306 = vector.extract_strided_slice %299 {offsets = [0, 64], sizes = [8, 32], strides = [1, 1]} : vector<8x256xf32> to vector<8x32xf32>
    %307 = vector.extract_strided_slice %299 {offsets = [0, 192], sizes = [8, 32], strides = [1, 1]} : vector<8x256xf32> to vector<8x32xf32>
    %308 = tpu.concatenate %306, %307 in 1 : vector<8x32xf32>, vector<8x32xf32> -> vector<8x64xf32>
    %cst_82 = arith.constant 2.000000e+00 : f32
    %309 = vector.broadcast %cst_82 : f32 to vector<8x64xf32>
    %310 = arith.mulf %308, %309 : vector<8x64xf32>
    %cst_83 = arith.constant 1.000000e+00 : f32
    %311 = vector.broadcast %cst_83 : f32 to vector<8x64xf32>
    %312 = arith.subf %310, %311 : vector<8x64xf32>
    %313 = vector.extract_strided_slice %299 {offsets = [0, 96], sizes = [8, 32], strides = [1, 1]} : vector<8x256xf32> to vector<8x32xf32>
    %314 = vector.extract_strided_slice %299 {offsets = [0, 224], sizes = [8, 32], strides = [1, 1]} : vector<8x256xf32> to vector<8x32xf32>
    %315 = tpu.concatenate %313, %314 in 1 : vector<8x32xf32>, vector<8x32xf32> -> vector<8x64xf32>
    %316 = arith.mulf %305, %284 : vector<8x64xf32>
    %317 = arith.mulf %302, %312 : vector<8x64xf32>
    %318 = arith.addf %316, %317 : vector<8x64xf32>
    %319 = math.tanh %318 : vector<8x64xf32>
    %320 = arith.mulf %315, %319 : vector<8x64xf32>
    %321 = arith.truncf %320 : vector<8x64xf32> to vector<8x64xbf16>
    %322 = vector.extract_strided_slice %320 {offsets = [0, 0], sizes = [8, 32], strides = [1, 1]} : vector<8x64xf32> to vector<8x32xf32>
    %c16_84 = arith.constant 16 : index
    %c0_85 = arith.constant 0 : index
    %323 = vector.load %arg7[%c16_84, %c0_85] : memref<40x64xf32, #tpu.memory_space<vmem>>, vector<8x32xf32>
    tpu.vector_store %arg7[%c16_84, %c0_85], %322 {strides = array<i32>} : memref<40x64xf32, #tpu.memory_space<vmem>>, vector<8x32xf32>,
    %324 = vector.extract_strided_slice %320 {offsets = [0, 32], sizes = [8, 32], strides = [1, 1]} : vector<8x64xf32> to vector<8x32xf32>
    %c16_86 = arith.constant 16 : index
    %c32_87 = arith.constant 32 : index
    %325 = vector.load %arg7[%c16_86, %c32_87] : memref<40x64xf32, #tpu.memory_space<vmem>>, vector<8x32xf32>
    tpu.vector_store %arg7[%c16_86, %c32_87], %324 {strides = array<i32>} : memref<40x64xf32, #tpu.memory_space<vmem>>, vector<8x32xf32>,
    %326 = vector.extract_strided_slice %221 {offsets = [24, 0], sizes = [8, 256], strides = [1, 1]} : vector<40x256xf32> to vector<8x256xf32>
    %cst_88 = arith.constant dense<0.000000e+00> : vector<8x256xf32>
    %327 = tpu.matmul %321, %207, %cst_88 {dimension_numbers = #tpu.dot_dimension_numbers<[1], [0], [0], [1], [0, 0, 1, 1], [], []>} : vector<8x64xbf16>, vector<64x256xbf16>, vector<8x256xf32> -> vector<8x256xf32>
    %328 = arith.addf %326, %327 : vector<8x256xf32>
    %329 = arith.negf %328 : vector<8x256xf32>
    %330 = math.exp %329 : vector<8x256xf32>
    %cst_89 = arith.constant 1.000000e+00 : f32
    %331 = vector.broadcast %cst_89 : f32 to vector<8x256xf32>
    %332 = arith.addf %331, %330 : vector<8x256xf32>
    %333 = arith.divf %331, %332 : vector<8x256xf32>
    %334 = vector.extract_strided_slice %333 {offsets = [0, 0], sizes = [8, 32], strides = [1, 1]} : vector<8x256xf32> to vector<8x32xf32>
    %335 = vector.extract_strided_slice %333 {offsets = [0, 128], sizes = [8, 32], strides = [1, 1]} : vector<8x256xf32> to vector<8x32xf32>
    %336 = tpu.concatenate %334, %335 in 1 : vector<8x32xf32>, vector<8x32xf32> -> vector<8x64xf32>
    %337 = vector.extract_strided_slice %333 {offsets = [0, 32], sizes = [8, 32], strides = [1, 1]} : vector<8x256xf32> to vector<8x32xf32>
    %338 = vector.extract_strided_slice %333 {offsets = [0, 160], sizes = [8, 32], strides = [1, 1]} : vector<8x256xf32> to vector<8x32xf32>
    %339 = tpu.concatenate %337, %338 in 1 : vector<8x32xf32>, vector<8x32xf32> -> vector<8x64xf32>
    %340 = vector.extract_strided_slice %333 {offsets = [0, 64], sizes = [8, 32], strides = [1, 1]} : vector<8x256xf32> to vector<8x32xf32>
    %341 = vector.extract_strided_slice %333 {offsets = [0, 192], sizes = [8, 32], strides = [1, 1]} : vector<8x256xf32> to vector<8x32xf32>
    %342 = tpu.concatenate %340, %341 in 1 : vector<8x32xf32>, vector<8x32xf32> -> vector<8x64xf32>
    %cst_90 = arith.constant 2.000000e+00 : f32
    %343 = vector.broadcast %cst_90 : f32 to vector<8x64xf32>
    %344 = arith.mulf %342, %343 : vector<8x64xf32>
    %cst_91 = arith.constant 1.000000e+00 : f32
    %345 = vector.broadcast %cst_91 : f32 to vector<8x64xf32>
    %346 = arith.subf %344, %345 : vector<8x64xf32>
    %347 = vector.extract_strided_slice %333 {offsets = [0, 96], sizes = [8, 32], strides = [1, 1]} : vector<8x256xf32> to vector<8x32xf32>
    %348 = vector.extract_strided_slice %333 {offsets = [0, 224], sizes = [8, 32], strides = [1, 1]} : vector<8x256xf32> to vector<8x32xf32>
    %349 = tpu.concatenate %347, %348 in 1 : vector<8x32xf32>, vector<8x32xf32> -> vector<8x64xf32>
    %350 = arith.mulf %339, %318 : vector<8x64xf32>
    %351 = arith.mulf %336, %346 : vector<8x64xf32>
    %352 = arith.addf %350, %351 : vector<8x64xf32>
    %353 = math.tanh %352 : vector<8x64xf32>
    %354 = arith.mulf %349, %353 : vector<8x64xf32>
    %355 = arith.truncf %354 : vector<8x64xf32> to vector<8x64xbf16>
    %356 = vector.extract_strided_slice %354 {offsets = [0, 0], sizes = [8, 32], strides = [1, 1]} : vector<8x64xf32> to vector<8x32xf32>
    %c24_92 = arith.constant 24 : index
    %c0_93 = arith.constant 0 : index
    %357 = vector.load %arg7[%c24_92, %c0_93] : memref<40x64xf32, #tpu.memory_space<vmem>>, vector<8x32xf32>
    tpu.vector_store %arg7[%c24_92, %c0_93], %356 {strides = array<i32>} : memref<40x64xf32, #tpu.memory_space<vmem>>, vector<8x32xf32>,
    %358 = vector.extract_strided_slice %354 {offsets = [0, 32], sizes = [8, 32], strides = [1, 1]} : vector<8x64xf32> to vector<8x32xf32>
    %c8_94 = arith.constant 8 : index
    %c32_95 = arith.constant 32 : index
    %359 = vector.load %arg7[%c8_94, %c32_95] : memref<40x64xf32, #tpu.memory_space<vmem>>, vector<8x32xf32>
    tpu.vector_store %arg7[%c8_94, %c32_95], %358 {strides = array<i32>} : memref<40x64xf32, #tpu.memory_space<vmem>>, vector<8x32xf32>,
    %360 = vector.extract_strided_slice %221 {offsets = [32, 0], sizes = [8, 256], strides = [1, 1]} : vector<40x256xf32> to vector<8x256xf32>
    %cst_96 = arith.constant dense<0.000000e+00> : vector<8x256xf32>
    %361 = tpu.matmul %355, %207, %cst_96 {dimension_numbers = #tpu.dot_dimension_numbers<[1], [0], [0], [1], [0, 0, 1, 1], [], []>} : vector<8x64xbf16>, vector<64x256xbf16>, vector<8x256xf32> -> vector<8x256xf32>
    %362 = arith.addf %360, %361 : vector<8x256xf32>
    %363 = arith.negf %362 : vector<8x256xf32>
    %364 = math.exp %363 : vector<8x256xf32>
    %cst_97 = arith.constant 1.000000e+00 : f32
    %365 = vector.broadcast %cst_97 : f32 to vector<8x256xf32>
    %366 = arith.addf %365, %364 : vector<8x256xf32>
    %367 = arith.divf %365, %366 : vector<8x256xf32>
    %368 = vector.extract_strided_slice %367 {offsets = [0, 0], sizes = [8, 32], strides = [1, 1]} : vector<8x256xf32> to vector<8x32xf32>
    %369 = vector.extract_strided_slice %367 {offsets = [0, 128], sizes = [8, 32], strides = [1, 1]} : vector<8x256xf32> to vector<8x32xf32>
    %370 = tpu.concatenate %368, %369 in 1 : vector<8x32xf32>, vector<8x32xf32> -> vector<8x64xf32>
    %371 = vector.extract_strided_slice %367 {offsets = [0, 32], sizes = [8, 32], strides = [1, 1]} : vector<8x256xf32> to vector<8x32xf32>
    %372 = vector.extract_strided_slice %367 {offsets = [0, 160], sizes = [8, 32], strides = [1, 1]} : vector<8x256xf32> to vector<8x32xf32>
    %373 = tpu.concatenate %371, %372 in 1 : vector<8x32xf32>, vector<8x32xf32> -> vector<8x64xf32>
    %374 = vector.extract_strided_slice %367 {offsets = [0, 64], sizes = [8, 32], strides = [1, 1]} : vector<8x256xf32> to vector<8x32xf32>
    %375 = vector.extract_strided_slice %367 {offsets = [0, 192], sizes = [8, 32], strides = [1, 1]} : vector<8x256xf32> to vector<8x32xf32>
    %376 = tpu.concatenate %374, %375 in 1 : vector<8x32xf32>, vector<8x32xf32> -> vector<8x64xf32>
    %cst_98 = arith.constant 2.000000e+00 : f32
    %377 = vector.broadcast %cst_98 : f32 to vector<8x64xf32>
    %378 = arith.mulf %376, %377 : vector<8x64xf32>
    %cst_99 = arith.constant 1.000000e+00 : f32
    %379 = vector.broadcast %cst_99 : f32 to vector<8x64xf32>
    %380 = arith.subf %378, %379 : vector<8x64xf32>
    %381 = vector.extract_strided_slice %367 {offsets = [0, 96], sizes = [8, 32], strides = [1, 1]} : vector<8x256xf32> to vector<8x32xf32>
    %382 = vector.extract_strided_slice %367 {offsets = [0, 224], sizes = [8, 32], strides = [1, 1]} : vector<8x256xf32> to vector<8x32xf32>
    %383 = tpu.concatenate %381, %382 in 1 : vector<8x32xf32>, vector<8x32xf32> -> vector<8x64xf32>
    %384 = arith.mulf %373, %352 : vector<8x64xf32>
    %385 = arith.mulf %370, %380 : vector<8x64xf32>
    %386 = arith.addf %384, %385 : vector<8x64xf32>
    %387 = math.tanh %386 : vector<8x64xf32>
    %388 = arith.mulf %383, %387 : vector<8x64xf32>
    %389 = vector.extract_strided_slice %388 {offsets = [0, 0], sizes = [8, 32], strides = [1, 1]} : vector<8x64xf32> to vector<8x32xf32>
    %c32_100 = arith.constant 32 : index
    %c0_101 = arith.constant 0 : index
    %390 = vector.load %arg7[%c32_100, %c0_101] : memref<40x64xf32, #tpu.memory_space<vmem>>, vector<8x32xf32>
    tpu.vector_store %arg7[%c32_100, %c0_101], %389 {strides = array<i32>} : memref<40x64xf32, #tpu.memory_space<vmem>>, vector<8x32xf32>,
    %391 = vector.extract_strided_slice %388 {offsets = [0, 32], sizes = [8, 32], strides = [1, 1]} : vector<8x64xf32> to vector<8x32xf32>
    %c0_102 = arith.constant 0 : index
    %c32_103 = arith.constant 32 : index
    %392 = vector.load %arg7[%c0_102, %c32_103] : memref<40x64xf32, #tpu.memory_space<vmem>>, vector<8x32xf32>
    tpu.vector_store %arg7[%c0_102, %c32_103], %391 {strides = array<i32>} : memref<40x64xf32, #tpu.memory_space<vmem>>, vector<8x32xf32>,
    %c4 = arith.constant 4 : index
    %c0_104 = arith.constant 0 : index
    %c0_105 = arith.constant 0 : index
    %393 = vector.load %arg2[%c4, %c0_104, %c0_105] : memref<8x64x256xbf16, #tpu.memory_space<vmem>>, vector<1x64x256xbf16>
    %394 = vector.shape_cast %393 : vector<1x64x256xbf16> to vector<64x256xbf16>
    %c5 = arith.constant 5 : index
    %c0_106 = arith.constant 0 : index
    %c0_107 = arith.constant 0 : index
    %395 = vector.load %arg2[%c5, %c0_106, %c0_107] : memref<8x64x256xbf16, #tpu.memory_space<vmem>>, vector<1x64x256xbf16>
    %396 = vector.shape_cast %395 : vector<1x64x256xbf16> to vector<64x256xbf16>
    %397 = vector.extract_strided_slice %0 {offsets = [3, 0], sizes = [1, 256], strides = [1, 1]} : vector<8x256xf32> to vector<1x256xf32>
    %c0_108 = arith.constant 0 : index
    %c0_109 = arith.constant 0 : index
    %398 = vector.load %arg7[%c0_108, %c0_109] : memref<40x64xf32, #tpu.memory_space<vmem>>, vector<40x64xf32>
    %399 = arith.truncf %398 : vector<40x64xf32> to vector<40x64xbf16>
    %cst_110 = arith.constant dense<0.000000e+00> : vector<40x256xf32>
    %400 = tpu.matmul %399, %394, %cst_110 {dimension_numbers = #tpu.dot_dimension_numbers<[1], [0], [0], [1], [0, 0, 1, 1], [], []>} : vector<40x64xbf16>, vector<64x256xbf16>, vector<40x256xf32> -> vector<40x256xf32>
    %401 = vector.broadcast %397 : vector<1x256xf32> to vector<40x256xf32>
    %402 = arith.addf %400, %401 : vector<40x256xf32>
    %403 = vector.extract_strided_slice %402 {offsets = [32, 128], sizes = [8, 128], strides = [1, 1]} : vector<40x256xf32> to vector<8x128xf32>
    %404 = vector.extract_strided_slice %402 {offsets = [24, 128], sizes = [8, 128], strides = [1, 1]} : vector<40x256xf32> to vector<8x128xf32>
    %405 = vector.extract_strided_slice %402 {offsets = [16, 128], sizes = [8, 128], strides = [1, 1]} : vector<40x256xf32> to vector<8x128xf32>
    %406 = vector.extract_strided_slice %402 {offsets = [8, 128], sizes = [8, 128], strides = [1, 1]} : vector<40x256xf32> to vector<8x128xf32>
    %407 = vector.extract_strided_slice %402 {offsets = [0, 128], sizes = [8, 128], strides = [1, 1]} : vector<40x256xf32> to vector<8x128xf32>
    %408 = tpu.concatenate %403, %404, %405, %406, %407 in 0 : vector<8x128xf32>, vector<8x128xf32>, vector<8x128xf32>, vector<8x128xf32>, vector<8x128xf32> -> vector<40x128xf32>
    %409 = vector.extract_strided_slice %402 {offsets = [0, 0], sizes = [40, 128], strides = [1, 1]} : vector<40x256xf32> to vector<40x128xf32>
    %410 = tpu.concatenate %409, %408 in 1 : vector<40x128xf32>, vector<40x128xf32> -> vector<40x256xf32>
    %cst_111 = arith.constant 0.000000e+00 : bf16
    %411 = vector.broadcast %cst_111 : bf16 to vector<8x64xbf16>
    %cst_112 = arith.constant 0.000000e+00 : f32
    %412 = vector.broadcast %cst_112 : f32 to vector<8x64xf32>
    %413 = vector.extract_strided_slice %410 {offsets = [0, 0], sizes = [8, 256], strides = [1, 1]} : vector<40x256xf32> to vector<8x256xf32>
    %cst_113 = arith.constant dense<0.000000e+00> : vector<8x256xf32>
    %414 = tpu.matmul %411, %396, %cst_113 {dimension_numbers = #tpu.dot_dimension_numbers<[1], [0], [0], [1], [0, 0, 1, 1], [], []>} : vector<8x64xbf16>, vector<64x256xbf16>, vector<8x256xf32> -> vector<8x256xf32>
    %415 = arith.addf %413, %414 : vector<8x256xf32>
    %416 = arith.negf %415 : vector<8x256xf32>
    %417 = math.exp %416 : vector<8x256xf32>
    %cst_114 = arith.constant 1.000000e+00 : f32
    %418 = vector.broadcast %cst_114 : f32 to vector<8x256xf32>
    %419 = arith.addf %418, %417 : vector<8x256xf32>
    %420 = arith.divf %418, %419 : vector<8x256xf32>
    %421 = vector.extract_strided_slice %420 {offsets = [0, 0], sizes = [8, 32], strides = [1, 1]} : vector<8x256xf32> to vector<8x32xf32>
    %422 = vector.extract_strided_slice %420 {offsets = [0, 128], sizes = [8, 32], strides = [1, 1]} : vector<8x256xf32> to vector<8x32xf32>
    %423 = tpu.concatenate %421, %422 in 1 : vector<8x32xf32>, vector<8x32xf32> -> vector<8x64xf32>
    %424 = vector.extract_strided_slice %420 {offsets = [0, 32], sizes = [8, 32], strides = [1, 1]} : vector<8x256xf32> to vector<8x32xf32>
    %425 = vector.extract_strided_slice %420 {offsets = [0, 160], sizes = [8, 32], strides = [1, 1]} : vector<8x256xf32> to vector<8x32xf32>
    %426 = tpu.concatenate %424, %425 in 1 : vector<8x32xf32>, vector<8x32xf32> -> vector<8x64xf32>
    %427 = vector.extract_strided_slice %420 {offsets = [0, 64], sizes = [8, 32], strides = [1, 1]} : vector<8x256xf32> to vector<8x32xf32>
    %428 = vector.extract_strided_slice %420 {offsets = [0, 192], sizes = [8, 32], strides = [1, 1]} : vector<8x256xf32> to vector<8x32xf32>
    %429 = tpu.concatenate %427, %428 in 1 : vector<8x32xf32>, vector<8x32xf32> -> vector<8x64xf32>
    %cst_115 = arith.constant 2.000000e+00 : f32
    %430 = vector.broadcast %cst_115 : f32 to vector<8x64xf32>
    %431 = arith.mulf %429, %430 : vector<8x64xf32>
    %cst_116 = arith.constant 1.000000e+00 : f32
    %432 = vector.broadcast %cst_116 : f32 to vector<8x64xf32>
    %433 = arith.subf %431, %432 : vector<8x64xf32>
    %434 = vector.extract_strided_slice %420 {offsets = [0, 96], sizes = [8, 32], strides = [1, 1]} : vector<8x256xf32> to vector<8x32xf32>
    %435 = vector.extract_strided_slice %420 {offsets = [0, 224], sizes = [8, 32], strides = [1, 1]} : vector<8x256xf32> to vector<8x32xf32>
    %436 = tpu.concatenate %434, %435 in 1 : vector<8x32xf32>, vector<8x32xf32> -> vector<8x64xf32>
    %437 = arith.mulf %426, %412 : vector<8x64xf32>
    %438 = arith.mulf %423, %433 : vector<8x64xf32>
    %439 = arith.addf %437, %438 : vector<8x64xf32>
    %440 = math.tanh %439 : vector<8x64xf32>
    %441 = arith.mulf %436, %440 : vector<8x64xf32>
    %442 = arith.truncf %441 : vector<8x64xf32> to vector<8x64xbf16>
    %443 = vector.extract_strided_slice %441 {offsets = [0, 0], sizes = [8, 32], strides = [1, 1]} : vector<8x64xf32> to vector<8x32xf32>
    %c0_117 = arith.constant 0 : index
    %c0_118 = arith.constant 0 : index
    %444 = vector.load %arg8[%c0_117, %c0_118] : memref<40x64xf32, #tpu.memory_space<vmem>>, vector<8x32xf32>
    tpu.vector_store %arg8[%c0_117, %c0_118], %443 {strides = array<i32>} : memref<40x64xf32, #tpu.memory_space<vmem>>, vector<8x32xf32>,
    %445 = vector.extract_strided_slice %441 {offsets = [0, 32], sizes = [8, 32], strides = [1, 1]} : vector<8x64xf32> to vector<8x32xf32>
    %c32_119 = arith.constant 32 : index
    %c32_120 = arith.constant 32 : index
    %446 = vector.load %arg8[%c32_119, %c32_120] : memref<40x64xf32, #tpu.memory_space<vmem>>, vector<8x32xf32>
    tpu.vector_store %arg8[%c32_119, %c32_120], %445 {strides = array<i32>} : memref<40x64xf32, #tpu.memory_space<vmem>>, vector<8x32xf32>,
    %447 = vector.extract_strided_slice %410 {offsets = [8, 0], sizes = [8, 256], strides = [1, 1]} : vector<40x256xf32> to vector<8x256xf32>
    %cst_121 = arith.constant dense<0.000000e+00> : vector<8x256xf32>
    %448 = tpu.matmul %442, %396, %cst_121 {dimension_numbers = #tpu.dot_dimension_numbers<[1], [0], [0], [1], [0, 0, 1, 1], [], []>} : vector<8x64xbf16>, vector<64x256xbf16>, vector<8x256xf32> -> vector<8x256xf32>
    %449 = arith.addf %447, %448 : vector<8x256xf32>
    %450 = arith.negf %449 : vector<8x256xf32>
    %451 = math.exp %450 : vector<8x256xf32>
    %cst_122 = arith.constant 1.000000e+00 : f32
    %452 = vector.broadcast %cst_122 : f32 to vector<8x256xf32>
    %453 = arith.addf %452, %451 : vector<8x256xf32>
    %454 = arith.divf %452, %453 : vector<8x256xf32>
    %455 = vector.extract_strided_slice %454 {offsets = [0, 0], sizes = [8, 32], strides = [1, 1]} : vector<8x256xf32> to vector<8x32xf32>
    %456 = vector.extract_strided_slice %454 {offsets = [0, 128], sizes = [8, 32], strides = [1, 1]} : vector<8x256xf32> to vector<8x32xf32>
    %457 = tpu.concatenate %455, %456 in 1 : vector<8x32xf32>, vector<8x32xf32> -> vector<8x64xf32>
    %458 = vector.extract_strided_slice %454 {offsets = [0, 32], sizes = [8, 32], strides = [1, 1]} : vector<8x256xf32> to vector<8x32xf32>
    %459 = vector.extract_strided_slice %454 {offsets = [0, 160], sizes = [8, 32], strides = [1, 1]} : vector<8x256xf32> to vector<8x32xf32>
    %460 = tpu.concatenate %458, %459 in 1 : vector<8x32xf32>, vector<8x32xf32> -> vector<8x64xf32>
    %461 = vector.extract_strided_slice %454 {offsets = [0, 64], sizes = [8, 32], strides = [1, 1]} : vector<8x256xf32> to vector<8x32xf32>
    %462 = vector.extract_strided_slice %454 {offsets = [0, 192], sizes = [8, 32], strides = [1, 1]} : vector<8x256xf32> to vector<8x32xf32>
    %463 = tpu.concatenate %461, %462 in 1 : vector<8x32xf32>, vector<8x32xf32> -> vector<8x64xf32>
    %cst_123 = arith.constant 2.000000e+00 : f32
    %464 = vector.broadcast %cst_123 : f32 to vector<8x64xf32>
    %465 = arith.mulf %463, %464 : vector<8x64xf32>
    %cst_124 = arith.constant 1.000000e+00 : f32
    %466 = vector.broadcast %cst_124 : f32 to vector<8x64xf32>
    %467 = arith.subf %465, %466 : vector<8x64xf32>
    %468 = vector.extract_strided_slice %454 {offsets = [0, 96], sizes = [8, 32], strides = [1, 1]} : vector<8x256xf32> to vector<8x32xf32>
    %469 = vector.extract_strided_slice %454 {offsets = [0, 224], sizes = [8, 32], strides = [1, 1]} : vector<8x256xf32> to vector<8x32xf32>
    %470 = tpu.concatenate %468, %469 in 1 : vector<8x32xf32>, vector<8x32xf32> -> vector<8x64xf32>
    %471 = arith.mulf %460, %439 : vector<8x64xf32>
    %472 = arith.mulf %457, %467 : vector<8x64xf32>
    %473 = arith.addf %471, %472 : vector<8x64xf32>
    %474 = math.tanh %473 : vector<8x64xf32>
    %475 = arith.mulf %470, %474 : vector<8x64xf32>
    %476 = arith.truncf %475 : vector<8x64xf32> to vector<8x64xbf16>
    %477 = vector.extract_strided_slice %475 {offsets = [0, 0], sizes = [8, 32], strides = [1, 1]} : vector<8x64xf32> to vector<8x32xf32>
    %c8_125 = arith.constant 8 : index
    %c0_126 = arith.constant 0 : index
    %478 = vector.load %arg8[%c8_125, %c0_126] : memref<40x64xf32, #tpu.memory_space<vmem>>, vector<8x32xf32>
    tpu.vector_store %arg8[%c8_125, %c0_126], %477 {strides = array<i32>} : memref<40x64xf32, #tpu.memory_space<vmem>>, vector<8x32xf32>,
    %479 = vector.extract_strided_slice %475 {offsets = [0, 32], sizes = [8, 32], strides = [1, 1]} : vector<8x64xf32> to vector<8x32xf32>
    %c24_127 = arith.constant 24 : index
    %c32_128 = arith.constant 32 : index
    %480 = vector.load %arg8[%c24_127, %c32_128] : memref<40x64xf32, #tpu.memory_space<vmem>>, vector<8x32xf32>
    tpu.vector_store %arg8[%c24_127, %c32_128], %479 {strides = array<i32>} : memref<40x64xf32, #tpu.memory_space<vmem>>, vector<8x32xf32>,
    %481 = vector.extract_strided_slice %410 {offsets = [16, 0], sizes = [8, 256], strides = [1, 1]} : vector<40x256xf32> to vector<8x256xf32>
    %cst_129 = arith.constant dense<0.000000e+00> : vector<8x256xf32>
    %482 = tpu.matmul %476, %396, %cst_129 {dimension_numbers = #tpu.dot_dimension_numbers<[1], [0], [0], [1], [0, 0, 1, 1], [], []>} : vector<8x64xbf16>, vector<64x256xbf16>, vector<8x256xf32> -> vector<8x256xf32>
    %483 = arith.addf %481, %482 : vector<8x256xf32>
    %484 = arith.negf %483 : vector<8x256xf32>
    %485 = math.exp %484 : vector<8x256xf32>
    %cst_130 = arith.constant 1.000000e+00 : f32
    %486 = vector.broadcast %cst_130 : f32 to vector<8x256xf32>
    %487 = arith.addf %486, %485 : vector<8x256xf32>
    %488 = arith.divf %486, %487 : vector<8x256xf32>
    %489 = vector.extract_strided_slice %488 {offsets = [0, 0], sizes = [8, 32], strides = [1, 1]} : vector<8x256xf32> to vector<8x32xf32>
    %490 = vector.extract_strided_slice %488 {offsets = [0, 128], sizes = [8, 32], strides = [1, 1]} : vector<8x256xf32> to vector<8x32xf32>
    %491 = tpu.concatenate %489, %490 in 1 : vector<8x32xf32>, vector<8x32xf32> -> vector<8x64xf32>
    %492 = vector.extract_strided_slice %488 {offsets = [0, 32], sizes = [8, 32], strides = [1, 1]} : vector<8x256xf32> to vector<8x32xf32>
    %493 = vector.extract_strided_slice %488 {offsets = [0, 160], sizes = [8, 32], strides = [1, 1]} : vector<8x256xf32> to vector<8x32xf32>
    %494 = tpu.concatenate %492, %493 in 1 : vector<8x32xf32>, vector<8x32xf32> -> vector<8x64xf32>
    %495 = vector.extract_strided_slice %488 {offsets = [0, 64], sizes = [8, 32], strides = [1, 1]} : vector<8x256xf32> to vector<8x32xf32>
    %496 = vector.extract_strided_slice %488 {offsets = [0, 192], sizes = [8, 32], strides = [1, 1]} : vector<8x256xf32> to vector<8x32xf32>
    %497 = tpu.concatenate %495, %496 in 1 : vector<8x32xf32>, vector<8x32xf32> -> vector<8x64xf32>
    %cst_131 = arith.constant 2.000000e+00 : f32
    %498 = vector.broadcast %cst_131 : f32 to vector<8x64xf32>
    %499 = arith.mulf %497, %498 : vector<8x64xf32>
    %cst_132 = arith.constant 1.000000e+00 : f32
    %500 = vector.broadcast %cst_132 : f32 to vector<8x64xf32>
    %501 = arith.subf %499, %500 : vector<8x64xf32>
    %502 = vector.extract_strided_slice %488 {offsets = [0, 96], sizes = [8, 32], strides = [1, 1]} : vector<8x256xf32> to vector<8x32xf32>
    %503 = vector.extract_strided_slice %488 {offsets = [0, 224], sizes = [8, 32], strides = [1, 1]} : vector<8x256xf32> to vector<8x32xf32>
    %504 = tpu.concatenate %502, %503 in 1 : vector<8x32xf32>, vector<8x32xf32> -> vector<8x64xf32>
    %505 = arith.mulf %494, %473 : vector<8x64xf32>
    %506 = arith.mulf %491, %501 : vector<8x64xf32>
    %507 = arith.addf %505, %506 : vector<8x64xf32>
    %508 = math.tanh %507 : vector<8x64xf32>
    %509 = arith.mulf %504, %508 : vector<8x64xf32>
    %510 = arith.truncf %509 : vector<8x64xf32> to vector<8x64xbf16>
    %511 = vector.extract_strided_slice %509 {offsets = [0, 0], sizes = [8, 32], strides = [1, 1]} : vector<8x64xf32> to vector<8x32xf32>
    %c16_133 = arith.constant 16 : index
    %c0_134 = arith.constant 0 : index
    %512 = vector.load %arg8[%c16_133, %c0_134] : memref<40x64xf32, #tpu.memory_space<vmem>>, vector<8x32xf32>
    tpu.vector_store %arg8[%c16_133, %c0_134], %511 {strides = array<i32>} : memref<40x64xf32, #tpu.memory_space<vmem>>, vector<8x32xf32>,
    %513 = vector.extract_strided_slice %509 {offsets = [0, 32], sizes = [8, 32], strides = [1, 1]} : vector<8x64xf32> to vector<8x32xf32>
    %c16_135 = arith.constant 16 : index
    %c32_136 = arith.constant 32 : index
    %514 = vector.load %arg8[%c16_135, %c32_136] : memref<40x64xf32, #tpu.memory_space<vmem>>, vector<8x32xf32>
    tpu.vector_store %arg8[%c16_135, %c32_136], %513 {strides = array<i32>} : memref<40x64xf32, #tpu.memory_space<vmem>>, vector<8x32xf32>,
    %515 = vector.extract_strided_slice %410 {offsets = [24, 0], sizes = [8, 256], strides = [1, 1]} : vector<40x256xf32> to vector<8x256xf32>
    %cst_137 = arith.constant dense<0.000000e+00> : vector<8x256xf32>
    %516 = tpu.matmul %510, %396, %cst_137 {dimension_numbers = #tpu.dot_dimension_numbers<[1], [0], [0], [1], [0, 0, 1, 1], [], []>} : vector<8x64xbf16>, vector<64x256xbf16>, vector<8x256xf32> -> vector<8x256xf32>
    %517 = arith.addf %515, %516 : vector<8x256xf32>
    %518 = arith.negf %517 : vector<8x256xf32>
    %519 = math.exp %518 : vector<8x256xf32>
    %cst_138 = arith.constant 1.000000e+00 : f32
    %520 = vector.broadcast %cst_138 : f32 to vector<8x256xf32>
    %521 = arith.addf %520, %519 : vector<8x256xf32>
    %522 = arith.divf %520, %521 : vector<8x256xf32>
    %523 = vector.extract_strided_slice %522 {offsets = [0, 0], sizes = [8, 32], strides = [1, 1]} : vector<8x256xf32> to vector<8x32xf32>
    %524 = vector.extract_strided_slice %522 {offsets = [0, 128], sizes = [8, 32], strides = [1, 1]} : vector<8x256xf32> to vector<8x32xf32>
    %525 = tpu.concatenate %523, %524 in 1 : vector<8x32xf32>, vector<8x32xf32> -> vector<8x64xf32>
    %526 = vector.extract_strided_slice %522 {offsets = [0, 32], sizes = [8, 32], strides = [1, 1]} : vector<8x256xf32> to vector<8x32xf32>
    %527 = vector.extract_strided_slice %522 {offsets = [0, 160], sizes = [8, 32], strides = [1, 1]} : vector<8x256xf32> to vector<8x32xf32>
    %528 = tpu.concatenate %526, %527 in 1 : vector<8x32xf32>, vector<8x32xf32> -> vector<8x64xf32>
    %529 = vector.extract_strided_slice %522 {offsets = [0, 64], sizes = [8, 32], strides = [1, 1]} : vector<8x256xf32> to vector<8x32xf32>
    %530 = vector.extract_strided_slice %522 {offsets = [0, 192], sizes = [8, 32], strides = [1, 1]} : vector<8x256xf32> to vector<8x32xf32>
    %531 = tpu.concatenate %529, %530 in 1 : vector<8x32xf32>, vector<8x32xf32> -> vector<8x64xf32>
    %cst_139 = arith.constant 2.000000e+00 : f32
    %532 = vector.broadcast %cst_139 : f32 to vector<8x64xf32>
    %533 = arith.mulf %531, %532 : vector<8x64xf32>
    %cst_140 = arith.constant 1.000000e+00 : f32
    %534 = vector.broadcast %cst_140 : f32 to vector<8x64xf32>
    %535 = arith.subf %533, %534 : vector<8x64xf32>
    %536 = vector.extract_strided_slice %522 {offsets = [0, 96], sizes = [8, 32], strides = [1, 1]} : vector<8x256xf32> to vector<8x32xf32>
    %537 = vector.extract_strided_slice %522 {offsets = [0, 224], sizes = [8, 32], strides = [1, 1]} : vector<8x256xf32> to vector<8x32xf32>
    %538 = tpu.concatenate %536, %537 in 1 : vector<8x32xf32>, vector<8x32xf32> -> vector<8x64xf32>
    %539 = arith.mulf %528, %507 : vector<8x64xf32>
    %540 = arith.mulf %525, %535 : vector<8x64xf32>
    %541 = arith.addf %539, %540 : vector<8x64xf32>
    %542 = math.tanh %541 : vector<8x64xf32>
    %543 = arith.mulf %538, %542 : vector<8x64xf32>
    %544 = arith.truncf %543 : vector<8x64xf32> to vector<8x64xbf16>
    %545 = vector.extract_strided_slice %543 {offsets = [0, 0], sizes = [8, 32], strides = [1, 1]} : vector<8x64xf32> to vector<8x32xf32>
    %c24_141 = arith.constant 24 : index
    %c0_142 = arith.constant 0 : index
    %546 = vector.load %arg8[%c24_141, %c0_142] : memref<40x64xf32, #tpu.memory_space<vmem>>, vector<8x32xf32>
    tpu.vector_store %arg8[%c24_141, %c0_142], %545 {strides = array<i32>} : memref<40x64xf32, #tpu.memory_space<vmem>>, vector<8x32xf32>,
    %547 = vector.extract_strided_slice %543 {offsets = [0, 32], sizes = [8, 32], strides = [1, 1]} : vector<8x64xf32> to vector<8x32xf32>
    %c8_143 = arith.constant 8 : index
    %c32_144 = arith.constant 32 : index
    %548 = vector.load %arg8[%c8_143, %c32_144] : memref<40x64xf32, #tpu.memory_space<vmem>>, vector<8x32xf32>
    tpu.vector_store %arg8[%c8_143, %c32_144], %547 {strides = array<i32>} : memref<40x64xf32, #tpu.memory_space<vmem>>, vector<8x32xf32>,
    %549 = vector.extract_strided_slice %410 {offsets = [32, 0], sizes = [8, 256], strides = [1, 1]} : vector<40x256xf32> to vector<8x256xf32>
    %cst_145 = arith.constant dense<0.000000e+00> : vector<8x256xf32>
    %550 = tpu.matmul %544, %396, %cst_145 {dimension_numbers = #tpu.dot_dimension_numbers<[1], [0], [0], [1], [0, 0, 1, 1], [], []>} : vector<8x64xbf16>, vector<64x256xbf16>, vector<8x256xf32> -> vector<8x256xf32>
    %551 = arith.addf %549, %550 : vector<8x256xf32>
    %552 = arith.negf %551 : vector<8x256xf32>
    %553 = math.exp %552 : vector<8x256xf32>
    %cst_146 = arith.constant 1.000000e+00 : f32
    %554 = vector.broadcast %cst_146 : f32 to vector<8x256xf32>
    %555 = arith.addf %554, %553 : vector<8x256xf32>
    %556 = arith.divf %554, %555 : vector<8x256xf32>
    %557 = vector.extract_strided_slice %556 {offsets = [0, 0], sizes = [8, 32], strides = [1, 1]} : vector<8x256xf32> to vector<8x32xf32>
    %558 = vector.extract_strided_slice %556 {offsets = [0, 128], sizes = [8, 32], strides = [1, 1]} : vector<8x256xf32> to vector<8x32xf32>
    %559 = tpu.concatenate %557, %558 in 1 : vector<8x32xf32>, vector<8x32xf32> -> vector<8x64xf32>
    %560 = vector.extract_strided_slice %556 {offsets = [0, 32], sizes = [8, 32], strides = [1, 1]} : vector<8x256xf32> to vector<8x32xf32>
    %561 = vector.extract_strided_slice %556 {offsets = [0, 160], sizes = [8, 32], strides = [1, 1]} : vector<8x256xf32> to vector<8x32xf32>
    %562 = tpu.concatenate %560, %561 in 1 : vector<8x32xf32>, vector<8x32xf32> -> vector<8x64xf32>
    %563 = vector.extract_strided_slice %556 {offsets = [0, 64], sizes = [8, 32], strides = [1, 1]} : vector<8x256xf32> to vector<8x32xf32>
    %564 = vector.extract_strided_slice %556 {offsets = [0, 192], sizes = [8, 32], strides = [1, 1]} : vector<8x256xf32> to vector<8x32xf32>
    %565 = tpu.concatenate %563, %564 in 1 : vector<8x32xf32>, vector<8x32xf32> -> vector<8x64xf32>
    %cst_147 = arith.constant 2.000000e+00 : f32
    %566 = vector.broadcast %cst_147 : f32 to vector<8x64xf32>
    %567 = arith.mulf %565, %566 : vector<8x64xf32>
    %cst_148 = arith.constant 1.000000e+00 : f32
    %568 = vector.broadcast %cst_148 : f32 to vector<8x64xf32>
    %569 = arith.subf %567, %568 : vector<8x64xf32>
    %570 = vector.extract_strided_slice %556 {offsets = [0, 96], sizes = [8, 32], strides = [1, 1]} : vector<8x256xf32> to vector<8x32xf32>
    %571 = vector.extract_strided_slice %556 {offsets = [0, 224], sizes = [8, 32], strides = [1, 1]} : vector<8x256xf32> to vector<8x32xf32>
    %572 = tpu.concatenate %570, %571 in 1 : vector<8x32xf32>, vector<8x32xf32> -> vector<8x64xf32>
    %573 = arith.mulf %562, %541 : vector<8x64xf32>
    %574 = arith.mulf %559, %569 : vector<8x64xf32>
    %575 = arith.addf %573, %574 : vector<8x64xf32>
    %576 = math.tanh %575 : vector<8x64xf32>
    %577 = arith.mulf %572, %576 : vector<8x64xf32>
    %578 = vector.extract_strided_slice %577 {offsets = [0, 0], sizes = [8, 32], strides = [1, 1]} : vector<8x64xf32> to vector<8x32xf32>
    %c32_149 = arith.constant 32 : index
    %c0_150 = arith.constant 0 : index
    %579 = vector.load %arg8[%c32_149, %c0_150] : memref<40x64xf32, #tpu.memory_space<vmem>>, vector<8x32xf32>
    tpu.vector_store %arg8[%c32_149, %c0_150], %578 {strides = array<i32>} : memref<40x64xf32, #tpu.memory_space<vmem>>, vector<8x32xf32>,
    %580 = vector.extract_strided_slice %577 {offsets = [0, 32], sizes = [8, 32], strides = [1, 1]} : vector<8x64xf32> to vector<8x32xf32>
    %c0_151 = arith.constant 0 : index
    %c32_152 = arith.constant 32 : index
    %581 = vector.load %arg8[%c0_151, %c32_152] : memref<40x64xf32, #tpu.memory_space<vmem>>, vector<8x32xf32>
    tpu.vector_store %arg8[%c0_151, %c32_152], %580 {strides = array<i32>} : memref<40x64xf32, #tpu.memory_space<vmem>>, vector<8x32xf32>,
    %c0_153 = arith.constant 0 : index
    %c0_154 = arith.constant 0 : index
    %582 = vector.load %arg8[%c0_153, %c0_154] : memref<40x64xf32, #tpu.memory_space<vmem>>, vector<40x64xf32>
    %583 = arith.truncf %582 : vector<40x64xf32> to vector<40x64xbf16>
    %c0_155 = arith.constant 0 : index
    %c0_156 = arith.constant 0 : index
    %c0_157 = arith.constant 0 : index
    %584 = vector.load %arg4[%c0_155, %c0_156, %c0_157] : memref<2x64x128xbf16, #tpu.memory_space<vmem>>, vector<1x64x128xbf16>
    %585 = vector.shape_cast %584 : vector<1x64x128xbf16> to vector<64x128xbf16>
    %cst_158 = arith.constant dense<0.000000e+00> : vector<40x128xf32>
    %586 = tpu.matmul %583, %585, %cst_158 {dimension_numbers = #tpu.dot_dimension_numbers<[1], [0], [0], [1], [0, 0, 1, 1], [], []>} : vector<40x64xbf16>, vector<64x128xbf16>, vector<40x128xf32> -> vector<40x128xf32>
    %587 = vector.extract_strided_slice %0 {offsets = [5, 0], sizes = [1, 128], strides = [1, 1]} : vector<8x256xf32> to vector<1x128xf32>
    %588 = vector.broadcast %587 : vector<1x128xf32> to vector<40x128xf32>
    %589 = arith.addf %586, %588 : vector<40x128xf32>
    %c0_159 = arith.constant 0 : index
    %c0_160 = arith.constant 0 : index
    %590 = vector.load %arg5[%c0_159, %c0_160] : memref<40x128xf32, #tpu.memory_space<vmem>>, vector<40x128xf32>
    tpu.vector_store %arg5[%c0_159, %c0_160], %589 {strides = array<i32>} : memref<40x128xf32, #tpu.memory_space<vmem>>, vector<40x128xf32>,
    %c6 = arith.constant 6 : index
    %c0_161 = arith.constant 0 : index
    %c0_162 = arith.constant 0 : index
    %591 = vector.load %arg2[%c6, %c0_161, %c0_162] : memref<8x64x256xbf16, #tpu.memory_space<vmem>>, vector<1x64x256xbf16>
    %592 = vector.shape_cast %591 : vector<1x64x256xbf16> to vector<64x256xbf16>
    %c7 = arith.constant 7 : index
    %c0_163 = arith.constant 0 : index
    %c0_164 = arith.constant 0 : index
    %593 = vector.load %arg2[%c7, %c0_163, %c0_164] : memref<8x64x256xbf16, #tpu.memory_space<vmem>>, vector<1x64x256xbf16>
    %594 = vector.shape_cast %593 : vector<1x64x256xbf16> to vector<64x256xbf16>
    %595 = vector.extract_strided_slice %0 {offsets = [4, 0], sizes = [1, 256], strides = [1, 1]} : vector<8x256xf32> to vector<1x256xf32>
    %c0_165 = arith.constant 0 : index
    %c0_166 = arith.constant 0 : index
    %596 = vector.load %arg8[%c0_165, %c0_166] : memref<40x64xf32, #tpu.memory_space<vmem>>, vector<40x64xf32>
    %597 = arith.truncf %596 : vector<40x64xf32> to vector<40x64xbf16>
    %cst_167 = arith.constant dense<0.000000e+00> : vector<40x256xf32>
    %598 = tpu.matmul %597, %592, %cst_167 {dimension_numbers = #tpu.dot_dimension_numbers<[1], [0], [0], [1], [0, 0, 1, 1], [], []>} : vector<40x64xbf16>, vector<64x256xbf16>, vector<40x256xf32> -> vector<40x256xf32>
    %599 = vector.broadcast %595 : vector<1x256xf32> to vector<40x256xf32>
    %600 = arith.addf %598, %599 : vector<40x256xf32>
    %601 = vector.extract_strided_slice %600 {offsets = [32, 128], sizes = [8, 128], strides = [1, 1]} : vector<40x256xf32> to vector<8x128xf32>
    %602 = vector.extract_strided_slice %600 {offsets = [24, 128], sizes = [8, 128], strides = [1, 1]} : vector<40x256xf32> to vector<8x128xf32>
    %603 = vector.extract_strided_slice %600 {offsets = [16, 128], sizes = [8, 128], strides = [1, 1]} : vector<40x256xf32> to vector<8x128xf32>
    %604 = vector.extract_strided_slice %600 {offsets = [8, 128], sizes = [8, 128], strides = [1, 1]} : vector<40x256xf32> to vector<8x128xf32>
    %605 = vector.extract_strided_slice %600 {offsets = [0, 128], sizes = [8, 128], strides = [1, 1]} : vector<40x256xf32> to vector<8x128xf32>
    %606 = tpu.concatenate %601, %602, %603, %604, %605 in 0 : vector<8x128xf32>, vector<8x128xf32>, vector<8x128xf32>, vector<8x128xf32>, vector<8x128xf32> -> vector<40x128xf32>
    %607 = vector.extract_strided_slice %600 {offsets = [0, 0], sizes = [40, 128], strides = [1, 1]} : vector<40x256xf32> to vector<40x128xf32>
    %608 = tpu.concatenate %607, %606 in 1 : vector<40x128xf32>, vector<40x128xf32> -> vector<40x256xf32>
    %cst_168 = arith.constant 0.000000e+00 : bf16
    %609 = vector.broadcast %cst_168 : bf16 to vector<8x64xbf16>
    %cst_169 = arith.constant 0.000000e+00 : f32
    %610 = vector.broadcast %cst_169 : f32 to vector<8x64xf32>
    %611 = vector.extract_strided_slice %608 {offsets = [0, 0], sizes = [8, 256], strides = [1, 1]} : vector<40x256xf32> to vector<8x256xf32>
    %cst_170 = arith.constant dense<0.000000e+00> : vector<8x256xf32>
    %612 = tpu.matmul %609, %594, %cst_170 {dimension_numbers = #tpu.dot_dimension_numbers<[1], [0], [0], [1], [0, 0, 1, 1], [], []>} : vector<8x64xbf16>, vector<64x256xbf16>, vector<8x256xf32> -> vector<8x256xf32>
    %613 = arith.addf %611, %612 : vector<8x256xf32>
    %614 = arith.negf %613 : vector<8x256xf32>
    %615 = math.exp %614 : vector<8x256xf32>
    %cst_171 = arith.constant 1.000000e+00 : f32
    %616 = vector.broadcast %cst_171 : f32 to vector<8x256xf32>
    %617 = arith.addf %616, %615 : vector<8x256xf32>
    %618 = arith.divf %616, %617 : vector<8x256xf32>
    %619 = vector.extract_strided_slice %618 {offsets = [0, 0], sizes = [8, 32], strides = [1, 1]} : vector<8x256xf32> to vector<8x32xf32>
    %620 = vector.extract_strided_slice %618 {offsets = [0, 128], sizes = [8, 32], strides = [1, 1]} : vector<8x256xf32> to vector<8x32xf32>
    %621 = tpu.concatenate %619, %620 in 1 : vector<8x32xf32>, vector<8x32xf32> -> vector<8x64xf32>
    %622 = vector.extract_strided_slice %618 {offsets = [0, 32], sizes = [8, 32], strides = [1, 1]} : vector<8x256xf32> to vector<8x32xf32>
    %623 = vector.extract_strided_slice %618 {offsets = [0, 160], sizes = [8, 32], strides = [1, 1]} : vector<8x256xf32> to vector<8x32xf32>
    %624 = tpu.concatenate %622, %623 in 1 : vector<8x32xf32>, vector<8x32xf32> -> vector<8x64xf32>
    %625 = vector.extract_strided_slice %618 {offsets = [0, 64], sizes = [8, 32], strides = [1, 1]} : vector<8x256xf32> to vector<8x32xf32>
    %626 = vector.extract_strided_slice %618 {offsets = [0, 192], sizes = [8, 32], strides = [1, 1]} : vector<8x256xf32> to vector<8x32xf32>
    %627 = tpu.concatenate %625, %626 in 1 : vector<8x32xf32>, vector<8x32xf32> -> vector<8x64xf32>
    %cst_172 = arith.constant 2.000000e+00 : f32
    %628 = vector.broadcast %cst_172 : f32 to vector<8x64xf32>
    %629 = arith.mulf %627, %628 : vector<8x64xf32>
    %cst_173 = arith.constant 1.000000e+00 : f32
    %630 = vector.broadcast %cst_173 : f32 to vector<8x64xf32>
    %631 = arith.subf %629, %630 : vector<8x64xf32>
    %632 = vector.extract_strided_slice %618 {offsets = [0, 96], sizes = [8, 32], strides = [1, 1]} : vector<8x256xf32> to vector<8x32xf32>
    %633 = vector.extract_strided_slice %618 {offsets = [0, 224], sizes = [8, 32], strides = [1, 1]} : vector<8x256xf32> to vector<8x32xf32>
    %634 = tpu.concatenate %632, %633 in 1 : vector<8x32xf32>, vector<8x32xf32> -> vector<8x64xf32>
    %635 = arith.mulf %624, %610 : vector<8x64xf32>
    %636 = arith.mulf %621, %631 : vector<8x64xf32>
    %637 = arith.addf %635, %636 : vector<8x64xf32>
    %638 = math.tanh %637 : vector<8x64xf32>
    %639 = arith.mulf %634, %638 : vector<8x64xf32>
    %640 = arith.truncf %639 : vector<8x64xf32> to vector<8x64xbf16>
    %641 = vector.extract_strided_slice %639 {offsets = [0, 0], sizes = [8, 32], strides = [1, 1]} : vector<8x64xf32> to vector<8x32xf32>
    %c0_174 = arith.constant 0 : index
    %c0_175 = arith.constant 0 : index
    %642 = vector.load %arg7[%c0_174, %c0_175] : memref<40x64xf32, #tpu.memory_space<vmem>>, vector<8x32xf32>
    tpu.vector_store %arg7[%c0_174, %c0_175], %641 {strides = array<i32>} : memref<40x64xf32, #tpu.memory_space<vmem>>, vector<8x32xf32>,
    %643 = vector.extract_strided_slice %639 {offsets = [0, 32], sizes = [8, 32], strides = [1, 1]} : vector<8x64xf32> to vector<8x32xf32>
    %c32_176 = arith.constant 32 : index
    %c32_177 = arith.constant 32 : index
    %644 = vector.load %arg7[%c32_176, %c32_177] : memref<40x64xf32, #tpu.memory_space<vmem>>, vector<8x32xf32>
    tpu.vector_store %arg7[%c32_176, %c32_177], %643 {strides = array<i32>} : memref<40x64xf32, #tpu.memory_space<vmem>>, vector<8x32xf32>,
    %645 = vector.extract_strided_slice %608 {offsets = [8, 0], sizes = [8, 256], strides = [1, 1]} : vector<40x256xf32> to vector<8x256xf32>
    %cst_178 = arith.constant dense<0.000000e+00> : vector<8x256xf32>
    %646 = tpu.matmul %640, %594, %cst_178 {dimension_numbers = #tpu.dot_dimension_numbers<[1], [0], [0], [1], [0, 0, 1, 1], [], []>} : vector<8x64xbf16>, vector<64x256xbf16>, vector<8x256xf32> -> vector<8x256xf32>
    %647 = arith.addf %645, %646 : vector<8x256xf32>
    %648 = arith.negf %647 : vector<8x256xf32>
    %649 = math.exp %648 : vector<8x256xf32>
    %cst_179 = arith.constant 1.000000e+00 : f32
    %650 = vector.broadcast %cst_179 : f32 to vector<8x256xf32>
    %651 = arith.addf %650, %649 : vector<8x256xf32>
    %652 = arith.divf %650, %651 : vector<8x256xf32>
    %653 = vector.extract_strided_slice %652 {offsets = [0, 0], sizes = [8, 32], strides = [1, 1]} : vector<8x256xf32> to vector<8x32xf32>
    %654 = vector.extract_strided_slice %652 {offsets = [0, 128], sizes = [8, 32], strides = [1, 1]} : vector<8x256xf32> to vector<8x32xf32>
    %655 = tpu.concatenate %653, %654 in 1 : vector<8x32xf32>, vector<8x32xf32> -> vector<8x64xf32>
    %656 = vector.extract_strided_slice %652 {offsets = [0, 32], sizes = [8, 32], strides = [1, 1]} : vector<8x256xf32> to vector<8x32xf32>
    %657 = vector.extract_strided_slice %652 {offsets = [0, 160], sizes = [8, 32], strides = [1, 1]} : vector<8x256xf32> to vector<8x32xf32>
    %658 = tpu.concatenate %656, %657 in 1 : vector<8x32xf32>, vector<8x32xf32> -> vector<8x64xf32>
    %659 = vector.extract_strided_slice %652 {offsets = [0, 64], sizes = [8, 32], strides = [1, 1]} : vector<8x256xf32> to vector<8x32xf32>
    %660 = vector.extract_strided_slice %652 {offsets = [0, 192], sizes = [8, 32], strides = [1, 1]} : vector<8x256xf32> to vector<8x32xf32>
    %661 = tpu.concatenate %659, %660 in 1 : vector<8x32xf32>, vector<8x32xf32> -> vector<8x64xf32>
    %cst_180 = arith.constant 2.000000e+00 : f32
    %662 = vector.broadcast %cst_180 : f32 to vector<8x64xf32>
    %663 = arith.mulf %661, %662 : vector<8x64xf32>
    %cst_181 = arith.constant 1.000000e+00 : f32
    %664 = vector.broadcast %cst_181 : f32 to vector<8x64xf32>
    %665 = arith.subf %663, %664 : vector<8x64xf32>
    %666 = vector.extract_strided_slice %652 {offsets = [0, 96], sizes = [8, 32], strides = [1, 1]} : vector<8x256xf32> to vector<8x32xf32>
    %667 = vector.extract_strided_slice %652 {offsets = [0, 224], sizes = [8, 32], strides = [1, 1]} : vector<8x256xf32> to vector<8x32xf32>
    %668 = tpu.concatenate %666, %667 in 1 : vector<8x32xf32>, vector<8x32xf32> -> vector<8x64xf32>
    %669 = arith.mulf %658, %637 : vector<8x64xf32>
    %670 = arith.mulf %655, %665 : vector<8x64xf32>
    %671 = arith.addf %669, %670 : vector<8x64xf32>
    %672 = math.tanh %671 : vector<8x64xf32>
    %673 = arith.mulf %668, %672 : vector<8x64xf32>
    %674 = arith.truncf %673 : vector<8x64xf32> to vector<8x64xbf16>
    %675 = vector.extract_strided_slice %673 {offsets = [0, 0], sizes = [8, 32], strides = [1, 1]} : vector<8x64xf32> to vector<8x32xf32>
    %c8_182 = arith.constant 8 : index
    %c0_183 = arith.constant 0 : index
    %676 = vector.load %arg7[%c8_182, %c0_183] : memref<40x64xf32, #tpu.memory_space<vmem>>, vector<8x32xf32>
    tpu.vector_store %arg7[%c8_182, %c0_183], %675 {strides = array<i32>} : memref<40x64xf32, #tpu.memory_space<vmem>>, vector<8x32xf32>,
    %677 = vector.extract_strided_slice %673 {offsets = [0, 32], sizes = [8, 32], strides = [1, 1]} : vector<8x64xf32> to vector<8x32xf32>
    %c24_184 = arith.constant 24 : index
    %c32_185 = arith.constant 32 : index
    %678 = vector.load %arg7[%c24_184, %c32_185] : memref<40x64xf32, #tpu.memory_space<vmem>>, vector<8x32xf32>
    tpu.vector_store %arg7[%c24_184, %c32_185], %677 {strides = array<i32>} : memref<40x64xf32, #tpu.memory_space<vmem>>, vector<8x32xf32>,
    %679 = vector.extract_strided_slice %608 {offsets = [16, 0], sizes = [8, 256], strides = [1, 1]} : vector<40x256xf32> to vector<8x256xf32>
    %cst_186 = arith.constant dense<0.000000e+00> : vector<8x256xf32>
    %680 = tpu.matmul %674, %594, %cst_186 {dimension_numbers = #tpu.dot_dimension_numbers<[1], [0], [0], [1], [0, 0, 1, 1], [], []>} : vector<8x64xbf16>, vector<64x256xbf16>, vector<8x256xf32> -> vector<8x256xf32>
    %681 = arith.addf %679, %680 : vector<8x256xf32>
    %682 = arith.negf %681 : vector<8x256xf32>
    %683 = math.exp %682 : vector<8x256xf32>
    %cst_187 = arith.constant 1.000000e+00 : f32
    %684 = vector.broadcast %cst_187 : f32 to vector<8x256xf32>
    %685 = arith.addf %684, %683 : vector<8x256xf32>
    %686 = arith.divf %684, %685 : vector<8x256xf32>
    %687 = vector.extract_strided_slice %686 {offsets = [0, 0], sizes = [8, 32], strides = [1, 1]} : vector<8x256xf32> to vector<8x32xf32>
    %688 = vector.extract_strided_slice %686 {offsets = [0, 128], sizes = [8, 32], strides = [1, 1]} : vector<8x256xf32> to vector<8x32xf32>
    %689 = tpu.concatenate %687, %688 in 1 : vector<8x32xf32>, vector<8x32xf32> -> vector<8x64xf32>
    %690 = vector.extract_strided_slice %686 {offsets = [0, 32], sizes = [8, 32], strides = [1, 1]} : vector<8x256xf32> to vector<8x32xf32>
    %691 = vector.extract_strided_slice %686 {offsets = [0, 160], sizes = [8, 32], strides = [1, 1]} : vector<8x256xf32> to vector<8x32xf32>
    %692 = tpu.concatenate %690, %691 in 1 : vector<8x32xf32>, vector<8x32xf32> -> vector<8x64xf32>
    %693 = vector.extract_strided_slice %686 {offsets = [0, 64], sizes = [8, 32], strides = [1, 1]} : vector<8x256xf32> to vector<8x32xf32>
    %694 = vector.extract_strided_slice %686 {offsets = [0, 192], sizes = [8, 32], strides = [1, 1]} : vector<8x256xf32> to vector<8x32xf32>
    %695 = tpu.concatenate %693, %694 in 1 : vector<8x32xf32>, vector<8x32xf32> -> vector<8x64xf32>
    %cst_188 = arith.constant 2.000000e+00 : f32
    %696 = vector.broadcast %cst_188 : f32 to vector<8x64xf32>
    %697 = arith.mulf %695, %696 : vector<8x64xf32>
    %cst_189 = arith.constant 1.000000e+00 : f32
    %698 = vector.broadcast %cst_189 : f32 to vector<8x64xf32>
    %699 = arith.subf %697, %698 : vector<8x64xf32>
    %700 = vector.extract_strided_slice %686 {offsets = [0, 96], sizes = [8, 32], strides = [1, 1]} : vector<8x256xf32> to vector<8x32xf32>
    %701 = vector.extract_strided_slice %686 {offsets = [0, 224], sizes = [8, 32], strides = [1, 1]} : vector<8x256xf32> to vector<8x32xf32>
    %702 = tpu.concatenate %700, %701 in 1 : vector<8x32xf32>, vector<8x32xf32> -> vector<8x64xf32>
    %703 = arith.mulf %692, %671 : vector<8x64xf32>
    %704 = arith.mulf %689, %699 : vector<8x64xf32>
    %705 = arith.addf %703, %704 : vector<8x64xf32>
    %706 = math.tanh %705 : vector<8x64xf32>
    %707 = arith.mulf %702, %706 : vector<8x64xf32>
    %708 = arith.truncf %707 : vector<8x64xf32> to vector<8x64xbf16>
    %709 = vector.extract_strided_slice %707 {offsets = [0, 0], sizes = [8, 32], strides = [1, 1]} : vector<8x64xf32> to vector<8x32xf32>
    %c16_190 = arith.constant 16 : index
    %c0_191 = arith.constant 0 : index
    %710 = vector.load %arg7[%c16_190, %c0_191] : memref<40x64xf32, #tpu.memory_space<vmem>>, vector<8x32xf32>
    tpu.vector_store %arg7[%c16_190, %c0_191], %709 {strides = array<i32>} : memref<40x64xf32, #tpu.memory_space<vmem>>, vector<8x32xf32>,
    %711 = vector.extract_strided_slice %707 {offsets = [0, 32], sizes = [8, 32], strides = [1, 1]} : vector<8x64xf32> to vector<8x32xf32>
    %c16_192 = arith.constant 16 : index
    %c32_193 = arith.constant 32 : index
    %712 = vector.load %arg7[%c16_192, %c32_193] : memref<40x64xf32, #tpu.memory_space<vmem>>, vector<8x32xf32>
    tpu.vector_store %arg7[%c16_192, %c32_193], %711 {strides = array<i32>} : memref<40x64xf32, #tpu.memory_space<vmem>>, vector<8x32xf32>,
    %713 = vector.extract_strided_slice %608 {offsets = [24, 0], sizes = [8, 256], strides = [1, 1]} : vector<40x256xf32> to vector<8x256xf32>
    %cst_194 = arith.constant dense<0.000000e+00> : vector<8x256xf32>
    %714 = tpu.matmul %708, %594, %cst_194 {dimension_numbers = #tpu.dot_dimension_numbers<[1], [0], [0], [1], [0, 0, 1, 1], [], []>} : vector<8x64xbf16>, vector<64x256xbf16>, vector<8x256xf32> -> vector<8x256xf32>
    %715 = arith.addf %713, %714 : vector<8x256xf32>
    %716 = arith.negf %715 : vector<8x256xf32>
    %717 = math.exp %716 : vector<8x256xf32>
    %cst_195 = arith.constant 1.000000e+00 : f32
    %718 = vector.broadcast %cst_195 : f32 to vector<8x256xf32>
    %719 = arith.addf %718, %717 : vector<8x256xf32>
    %720 = arith.divf %718, %719 : vector<8x256xf32>
    %721 = vector.extract_strided_slice %720 {offsets = [0, 0], sizes = [8, 32], strides = [1, 1]} : vector<8x256xf32> to vector<8x32xf32>
    %722 = vector.extract_strided_slice %720 {offsets = [0, 128], sizes = [8, 32], strides = [1, 1]} : vector<8x256xf32> to vector<8x32xf32>
    %723 = tpu.concatenate %721, %722 in 1 : vector<8x32xf32>, vector<8x32xf32> -> vector<8x64xf32>
    %724 = vector.extract_strided_slice %720 {offsets = [0, 32], sizes = [8, 32], strides = [1, 1]} : vector<8x256xf32> to vector<8x32xf32>
    %725 = vector.extract_strided_slice %720 {offsets = [0, 160], sizes = [8, 32], strides = [1, 1]} : vector<8x256xf32> to vector<8x32xf32>
    %726 = tpu.concatenate %724, %725 in 1 : vector<8x32xf32>, vector<8x32xf32> -> vector<8x64xf32>
    %727 = vector.extract_strided_slice %720 {offsets = [0, 64], sizes = [8, 32], strides = [1, 1]} : vector<8x256xf32> to vector<8x32xf32>
    %728 = vector.extract_strided_slice %720 {offsets = [0, 192], sizes = [8, 32], strides = [1, 1]} : vector<8x256xf32> to vector<8x32xf32>
    %729 = tpu.concatenate %727, %728 in 1 : vector<8x32xf32>, vector<8x32xf32> -> vector<8x64xf32>
    %cst_196 = arith.constant 2.000000e+00 : f32
    %730 = vector.broadcast %cst_196 : f32 to vector<8x64xf32>
    %731 = arith.mulf %729, %730 : vector<8x64xf32>
    %cst_197 = arith.constant 1.000000e+00 : f32
    %732 = vector.broadcast %cst_197 : f32 to vector<8x64xf32>
    %733 = arith.subf %731, %732 : vector<8x64xf32>
    %734 = vector.extract_strided_slice %720 {offsets = [0, 96], sizes = [8, 32], strides = [1, 1]} : vector<8x256xf32> to vector<8x32xf32>
    %735 = vector.extract_strided_slice %720 {offsets = [0, 224], sizes = [8, 32], strides = [1, 1]} : vector<8x256xf32> to vector<8x32xf32>
    %736 = tpu.concatenate %734, %735 in 1 : vector<8x32xf32>, vector<8x32xf32> -> vector<8x64xf32>
    %737 = arith.mulf %726, %705 : vector<8x64xf32>
    %738 = arith.mulf %723, %733 : vector<8x64xf32>
    %739 = arith.addf %737, %738 : vector<8x64xf32>
    %740 = math.tanh %739 : vector<8x64xf32>
    %741 = arith.mulf %736, %740 : vector<8x64xf32>
    %742 = arith.truncf %741 : vector<8x64xf32> to vector<8x64xbf16>
    %743 = vector.extract_strided_slice %741 {offsets = [0, 0], sizes = [8, 32], strides = [1, 1]} : vector<8x64xf32> to vector<8x32xf32>
    %c24_198 = arith.constant 24 : index
    %c0_199 = arith.constant 0 : index
    %744 = vector.load %arg7[%c24_198, %c0_199] : memref<40x64xf32, #tpu.memory_space<vmem>>, vector<8x32xf32>
    tpu.vector_store %arg7[%c24_198, %c0_199], %743 {strides = array<i32>} : memref<40x64xf32, #tpu.memory_space<vmem>>, vector<8x32xf32>,
    %745 = vector.extract_strided_slice %741 {offsets = [0, 32], sizes = [8, 32], strides = [1, 1]} : vector<8x64xf32> to vector<8x32xf32>
    %c8_200 = arith.constant 8 : index
    %c32_201 = arith.constant 32 : index
    %746 = vector.load %arg7[%c8_200, %c32_201] : memref<40x64xf32, #tpu.memory_space<vmem>>, vector<8x32xf32>
    tpu.vector_store %arg7[%c8_200, %c32_201], %745 {strides = array<i32>} : memref<40x64xf32, #tpu.memory_space<vmem>>, vector<8x32xf32>,
    %747 = vector.extract_strided_slice %608 {offsets = [32, 0], sizes = [8, 256], strides = [1, 1]} : vector<40x256xf32> to vector<8x256xf32>
    %cst_202 = arith.constant dense<0.000000e+00> : vector<8x256xf32>
    %748 = tpu.matmul %742, %594, %cst_202 {dimension_numbers = #tpu.dot_dimension_numbers<[1], [0], [0], [1], [0, 0, 1, 1], [], []>} : vector<8x64xbf16>, vector<64x256xbf16>, vector<8x256xf32> -> vector<8x256xf32>
    %749 = arith.addf %747, %748 : vector<8x256xf32>
    %750 = arith.negf %749 : vector<8x256xf32>
    %751 = math.exp %750 : vector<8x256xf32>
    %cst_203 = arith.constant 1.000000e+00 : f32
    %752 = vector.broadcast %cst_203 : f32 to vector<8x256xf32>
    %753 = arith.addf %752, %751 : vector<8x256xf32>
    %754 = arith.divf %752, %753 : vector<8x256xf32>
    %755 = vector.extract_strided_slice %754 {offsets = [0, 0], sizes = [8, 32], strides = [1, 1]} : vector<8x256xf32> to vector<8x32xf32>
    %756 = vector.extract_strided_slice %754 {offsets = [0, 128], sizes = [8, 32], strides = [1, 1]} : vector<8x256xf32> to vector<8x32xf32>
    %757 = tpu.concatenate %755, %756 in 1 : vector<8x32xf32>, vector<8x32xf32> -> vector<8x64xf32>
    %758 = vector.extract_strided_slice %754 {offsets = [0, 32], sizes = [8, 32], strides = [1, 1]} : vector<8x256xf32> to vector<8x32xf32>
    %759 = vector.extract_strided_slice %754 {offsets = [0, 160], sizes = [8, 32], strides = [1, 1]} : vector<8x256xf32> to vector<8x32xf32>
    %760 = tpu.concatenate %758, %759 in 1 : vector<8x32xf32>, vector<8x32xf32> -> vector<8x64xf32>
    %761 = vector.extract_strided_slice %754 {offsets = [0, 64], sizes = [8, 32], strides = [1, 1]} : vector<8x256xf32> to vector<8x32xf32>
    %762 = vector.extract_strided_slice %754 {offsets = [0, 192], sizes = [8, 32], strides = [1, 1]} : vector<8x256xf32> to vector<8x32xf32>
    %763 = tpu.concatenate %761, %762 in 1 : vector<8x32xf32>, vector<8x32xf32> -> vector<8x64xf32>
    %cst_204 = arith.constant 2.000000e+00 : f32
    %764 = vector.broadcast %cst_204 : f32 to vector<8x64xf32>
    %765 = arith.mulf %763, %764 : vector<8x64xf32>
    %cst_205 = arith.constant 1.000000e+00 : f32
    %766 = vector.broadcast %cst_205 : f32 to vector<8x64xf32>
    %767 = arith.subf %765, %766 : vector<8x64xf32>
    %768 = vector.extract_strided_slice %754 {offsets = [0, 96], sizes = [8, 32], strides = [1, 1]} : vector<8x256xf32> to vector<8x32xf32>
    %769 = vector.extract_strided_slice %754 {offsets = [0, 224], sizes = [8, 32], strides = [1, 1]} : vector<8x256xf32> to vector<8x32xf32>
    %770 = tpu.concatenate %768, %769 in 1 : vector<8x32xf32>, vector<8x32xf32> -> vector<8x64xf32>
    %771 = arith.mulf %760, %739 : vector<8x64xf32>
    %772 = arith.mulf %757, %767 : vector<8x64xf32>
    %773 = arith.addf %771, %772 : vector<8x64xf32>
    %774 = math.tanh %773 : vector<8x64xf32>
    %775 = arith.mulf %770, %774 : vector<8x64xf32>
    %776 = vector.extract_strided_slice %775 {offsets = [0, 0], sizes = [8, 32], strides = [1, 1]} : vector<8x64xf32> to vector<8x32xf32>
    %c32_206 = arith.constant 32 : index
    %c0_207 = arith.constant 0 : index
    %777 = vector.load %arg7[%c32_206, %c0_207] : memref<40x64xf32, #tpu.memory_space<vmem>>, vector<8x32xf32>
    tpu.vector_store %arg7[%c32_206, %c0_207], %776 {strides = array<i32>} : memref<40x64xf32, #tpu.memory_space<vmem>>, vector<8x32xf32>,
    %778 = vector.extract_strided_slice %775 {offsets = [0, 32], sizes = [8, 32], strides = [1, 1]} : vector<8x64xf32> to vector<8x32xf32>
    %c0_208 = arith.constant 0 : index
    %c32_209 = arith.constant 32 : index
    %779 = vector.load %arg7[%c0_208, %c32_209] : memref<40x64xf32, #tpu.memory_space<vmem>>, vector<8x32xf32>
    tpu.vector_store %arg7[%c0_208, %c32_209], %778 {strides = array<i32>} : memref<40x64xf32, #tpu.memory_space<vmem>>, vector<8x32xf32>,
    %c32_210 = arith.constant 32 : index
    %c0_211 = arith.constant 0 : index
    %780 = vector.load %arg7[%c32_210, %c0_211] : memref<40x64xf32, #tpu.memory_space<vmem>>, vector<8x64xf32>
    %781 = arith.truncf %780 : vector<8x64xf32> to vector<8x64xbf16>
    %c1_212 = arith.constant 1 : index
    %c0_213 = arith.constant 0 : index
    %c0_214 = arith.constant 0 : index
    %782 = vector.load %arg4[%c1_212, %c0_213, %c0_214] : memref<2x64x128xbf16, #tpu.memory_space<vmem>>, vector<1x64x128xbf16>
    %783 = vector.shape_cast %782 : vector<1x64x128xbf16> to vector<64x128xbf16>
    %cst_215 = arith.constant dense<0.000000e+00> : vector<8x128xf32>
    %784 = tpu.matmul %781, %783, %cst_215 {dimension_numbers = #tpu.dot_dimension_numbers<[1], [0], [0], [1], [0, 0, 1, 1], [], []>} : vector<8x64xbf16>, vector<64x128xbf16>, vector<8x128xf32> -> vector<8x128xf32>
    %785 = vector.extract_strided_slice %0 {offsets = [6, 0], sizes = [1, 128], strides = [1, 1]} : vector<8x256xf32> to vector<1x128xf32>
    %786 = vector.broadcast %785 : vector<1x128xf32> to vector<8x128xf32>
    %787 = arith.addf %784, %786 : vector<8x128xf32>
    %c0_216 = arith.constant 0 : index
    %c0_217 = arith.constant 0 : index
    %788 = vector.load %arg6[%c0_216, %c0_217] : memref<8x128xf32, #tpu.memory_space<vmem>>, vector<8x128xf32>
    tpu.vector_store %arg6[%c0_216, %c0_217], %787 {strides = array<i32>} : memref<8x128xf32, #tpu.memory_space<vmem>>, vector<8x128xf32>,
    return
  }
}

</mosaic_0001>

<bundles_post_ra>
// kernel: forward.1
= control target key start
LH: loop header
LB: loop body
LE: loop exit
PB: predicated region body
PF: predicated region fallthrough
CT: control target
= control target key end

     0   :  { %v3608_v0 = vmov 0.0   ;;  %vm3609_vm0 = vmmov 0   ;;  %vm79_vm1 = vcmask 523264   ;;  %v3610_v24 = vmov 0   ;;  %s3611_s19 = smov 64   ;;  %s3612_s20 = smov 32   ;;  %s4611_s1 = inlined_call_operand.vmem [shape: bf16[64,64], index: 1, kind: input, shape index: {}]   ;;  %s4612_s0 = inlined_call_operand.vmem [shape: bf16[40,64], index: 0, kind: input, shape index: {}]   ;;  %s4613_s2 = inlined_call_operand.vmem [shape: bf16[8,64,256], index: 2, kind: input, shape index: {}]   ;;  %s4614_s3 = inlined_call_operand.vmem [shape: f32[8,256], index: 3, kind: input, shape index: {}]   ;;  %s4615_s4 = inlined_call_operand.vmem [shape: bf16[2,64,128], index: 4, kind: input, shape index: {}]   ;;  %s4616_s5 = inlined_call_operand.vmem [shape: f32[40,128], index: 5, kind: output, shape index: {0}]   ;;  %s4617_s6 = inlined_call_operand.vmem [shape: f32[8,128], index: 6, kind: output, shape index: {1}]  }
   0x1   :  { %3216 = vmatprep.subr.bf16.mxu0 %v3608_v0  ;;  %v3274_v1 = vld [vmem:[%s4611_s1] sm:$0xff]   ;;  %3224 = vmatprep.mubr.msk.bf16.mxu0 %vm3609_vm0, %v3608_v0  ;;  %v3275_v2 = vld [vmem:[%s4611_s1 + $0x8] sm:$0xff]   ;;  %v3276_v3 = vld [vmem:[%s4611_s1 + $0x10] sm:$0xff]   ;;  %v38_v25 = vlaneseq  ;;  %s3613_s21 = smov 96   ;;  %vm430_vm2 = vcmask 261120   ;;  %vm460_vm3 = vcmask 523520  }
   0x2   :  { %3217 = vmatpush3.bf16.msra.mxu0 %v3274_v1  ;;  %v3277_v4 = vld [vmem:[%s4611_s1 + $0x18] sm:$0xff]   ;;  %v3278_v5 = vld [vmem:[%s4612_s0] sm:$0xff]   ;;  %v3279_v6 = vld [vmem:[%s4612_s0 + $0x8] sm:$0xff]   ;;  %299 = vmatprep.mubr.bf16.mxu1 %v3610_v24 }
   0x3   :  { %3218 = vmatprep.subr.bf16.mxu0 %v3608_v0  ;;  %v3280_v7 = vld [vmem:[%s4612_s0 + $0x10] ss:$0 sps:$4 sm:$0xff]   ;;  %v3281_v8 = vld [vmem:[%s4613_s2 + $0x4] ss:$8 sps:$4 sm:$0xff]   ;;  %v3283_v9 = vld [vmem:[%s4613_s2] ss:$8 sps:$4 sm:$0xff]  }
   0x4   :  { %267 = vmatprep.subr.bf16.mxu1 %v3281_v8  ;;  %v3692_v10 = vld [vmem:[%s4613_s2 + $0x44] ss:$8 sps:$4 sm:$0xff]   ;;  %v3697_v11 = vld [vmem:[%s4613_s2 + $0x40] ss:$8 sps:$4 sm:$0xff]   ;;  %v3287_v12 = vld [vmem:[%s4613_s2 + $0x14] ss:$8 sps:$4 sm:$0xff]  }
   0x5   :  { %268 = vmatpush1.bf16.msra.mxu1 %v3283_v9  ;;  %v3289_v13 = vld [vmem:[%s4613_s2 + $0x10] ss:$8 sps:$4 sm:$0xff]   ;;  %v3710_v14 = vld [vmem:[%s4613_s2 + $0x54] ss:$8 sps:$4 sm:$0xff]   ;;  %v3293_v16 = vld [vmem:[%s4613_s2 + $0x24] ss:$8 sps:$4 sm:$0xff]  }
   0x6   :  { %3219 = vmatpush3.bf16.msra.mxu0 %v3275_v2  ;;  %269 = vmatprep.subr.bf16.mxu1 %v3287_v12  ;;  %v3715_v15 = vld [vmem:[%s4613_s2 + $0x50] ss:$8 sps:$4 sm:$0xff]   ;;  %v3295_v17 = vld [vmem:[%s4613_s2 + $0x20] ss:$8 sps:$4 sm:$0xff]   ;;  %v3728_v18 = vld [vmem:[%s4613_s2 + $0x64] ss:$8 sps:$4 sm:$0xff]  }
   0x7   :  { %3220 = vmatprep.subr.bf16.mxu0 %v3608_v0  ;;  %v3733_v19 = vld [vmem:[%s4613_s2 + $0x60] ss:$8 sps:$4 sm:$0xff]   ;;  %v3299_v20 = vld [vmem:[%s4613_s2 + $0x34] ss:$8 sps:$4 sm:$0xff]   ;;  %v3301_v21 = vld [vmem:[%s4613_s2 + $0x30] ss:$8 sps:$4 sm:$0xff]  }
   0x8   :  { %v3746_v22 = vld [vmem:[%s4613_s2 + $0x74] ss:$8 sps:$4 sm:$0xff]   ;;  %v3751_v23 = vld [vmem:[%s4613_s2 + $0x70] ss:$8 sps:$4 sm:$0xff]   ;;  %v3769_v26 = vshrl.u32 %v38_v25, 7  ;;  %v3775_v28 = vld [vmem:[%s4614_s3] sm:$0xff] }
   0x9   :  { %270 = vmatpush1.bf16.msra.mxu1 %v3289_v13 }
   0xa   :  { %3221 = vmatpush3.bf16.msra.mxu0 %v3276_v3  ;;  %271 = vmatprep.subr.bf16.mxu1 %v3293_v16  ;;  %v40_v27 = vsub.s32 0, %v3769_v26 }
   0xb   :  { %3222 = vmatprep.subr.bf16.mxu0 %v3608_v0 }
   0xc   :  { %v41_v29 = vrot.slane %v3775_v28, %v40_v27 }
   0xd   :  { %272 = vmatpush1.bf16.msra.mxu1 %v3295_v17 }
   0xe   :  { %3223 = vmatpush3.bf16.msra.mxu0 %v3277_v4  ;;  %273 = vmatprep.subr.bf16.mxu1 %v3299_v20 }
   0xf   :  { %371 = vmatprep.subr.bf16.mxu0 %v3692_v10 }
  0x11   :  { %3225 = vmatmul.mubr.msk.bf16.vlgmr.msra.gmra.mrb[0].mxu0 %vm79_vm1, %v3278_v5  ;;  %274 = vmatpush1.bf16.msra.mxu1 %v3301_v21 }
  0x12   :  { %3228 = vmatprep.mubr.msk.bf16.mxu0 %vm3609_vm0, %v3608_v0  ;;  %372 = vmatpush1.bf16.msra.mxu0 %v3697_v11 }
  0x13   :  { %373 = vmatprep.subr.bf16.mxu0 %v3710_v14  ;;  %465 = vmatprep.subr.bf16.mxu1 %v3692_v10 }
  0x16   :  { %374 = vmatpush1.bf16.msra.mxu0 %v3715_v15 }
  0x17   :  { %375 = vmatprep.subr.bf16.mxu0 %v3728_v18 }
  0x19   :  { %3229 = vmatmul.mubr.msk.bf16.gmra.mrb[4].mxu0 %vm79_vm1, %v3279_v6 }
  0x1a   :  { %3232 = vmatprep.mubr.msk.bf16.mxu0 %vm3609_vm0, %v3608_v0  ;;  %376 = vmatpush1.bf16.msra.mxu0 %v3733_v19 }
  0x1b   :  { %377 = vmatprep.subr.bf16.mxu0 %v3746_v22 }
  0x1e   :  { %378 = vmatpush1.bf16.msra.mxu0 %v3751_v23 }
  0x1f   :  { %557 = vmatprep.subr.bf16.mxu0 %v3692_v10 }
  0x21   :  { %3233 = vmatmul.mubr.msk.bf16.gmra.mrb[8].mxu0 %vm79_vm1, %v3280_v7 }
  0x22   :  { %403 = vmatprep.mubr.bf16.mxu0 %v3610_v24 }
  0x29   :  { %404 = vmatmul.mubr.bf16.vlgmr.msra.gmra.mrb[12].mxu0 %v3610_v24 }
  0x2a   :  { %558 = vmatpush1.bf16.msra.mxu0 %v3697_v11  ;;  %589 = vmatprep.mubr.bf16.mxu0 %v3610_v24 }
  0x2b   :  { %559 = vmatprep.subr.bf16.mxu0 %v3710_v14 }
  0x2e   :  { %560 = vmatpush1.bf16.msra.mxu0 %v3715_v15 }
  0x2f   :  { %561 = vmatprep.subr.bf16.mxu0 %v3728_v18 }
  0x32   :  { %562 = vmatpush1.bf16.msra.mxu0 %v3733_v19 }
  0x33   :  { %563 = vmatprep.subr.bf16.mxu0 %v3746_v22 }
  0x36   :  { %564 = vmatpush1.bf16.msra.mxu0 %v3751_v23 }
  0x37   :  { %741 = vmatprep.subr.bf16.mxu0 %v3692_v10 }
  0xe4   :  { %v123_v30 = vpop.f32.mrb[0].mxu0 }
  0xe5   :  { %v124_v31 = vadd.f32 %v123_v30, %v41_v29  ;;  %v3226_v32 = vpop.f32.mrb[1].mxu0 }
  0xe6   :  { %v126_v33 = vpop.f32.mrb[2].mxu0  ;;  %v212_v32 = vsub.s32 1, %v3769_v26 }
  0xe7   :  { %v145_v34 = vmax.f32 %v124_v31, 0.0  ;;  %v127_v35 = vadd.f32 %v126_v33, %v41_v29  ;;  %v3227_v36 = vpop.f32.mrb[3].mxu0  ;;  %v3801_v33 = vld [vmem:[%s4614_s3 + $0x8] sm:$0xff] }
  0xe9   :  { %v2964_v37 = vmul.f32 -1.442695, %v145_v34  ;;  %v146_v38 = vmax.f32 %v127_v35, 0.0  ;;  %v213_v34 = vrot.slane %v3775_v28, %v212_v32  ;;  %v217_v35 = vrot.slane %v3801_v33, %v212_v32 }
  0xeb   :  { %3385 = vpow2.f32 %v2964_v37  ;;  %v2965_v39 = vmul.f32 -1.442695, %v146_v38 }
  0xec   :  { %v131_v40 = vpop.f32.mrb[4].mxu0 }
  0xed   :  { %3387 = vpow2.f32 %v2965_v39  ;;  %v132_v41 = vadd.f32 %v131_v40, %v41_v29  ;;  %v3230_v42 = vpop.f32.mrb[5].mxu0 }
  0xee   :  { %v134_v43 = vpop.f32.mrb[6].mxu0 }
  0xef   :  { %v147_v44 = vmax.f32 %v132_v41, 0.0  ;;  %v135_v45 = vadd.f32 %v134_v43, %v41_v29  ;;  %v3231_v46 = vpop.f32.mrb[7].mxu0 }
  0xf1   :  { %v2966_v47 = vmul.f32 -1.442695, %v147_v44  ;;  %v148_v48 = vmax.f32 %v135_v45, 0.0 }
  0xf3   :  { %3389 = vpow2.f32 %v2966_v47  ;;  %v2967_v49 = vmul.f32 -1.442695, %v148_v48 }
  0xf4   :  { %v139_v50 = vpop.f32.mrb[8].mxu0 }
  0xf5   :  { %v3386_v51 = vpop.eup %3385  ;;  %3391 = vpow2.f32 %v2967_v49  ;;  %v140_v52 = vadd.f32 %v139_v50, %v41_v29  ;;  %v3234_v53 = vpop.f32.mrb[9].mxu0 }
  0xf6   :  { %v165_v54 = vadd.f32 1.0, %v3386_v51  ;;  %v142_v55 = vpop.f32.mrb[10].mxu0 }
  0xf7   :  { %v3388_v56 = vpop.eup %3387  ;;  %v149_v57 = vmax.f32 %v140_v52, 0.0  ;;  %v3235_v58 = vpop.f32.mrb[11].mxu0 }
  0xf8   :  { %3393 = vrcp.f32 %v165_v54  ;;  %v166_v59 = vadd.f32 1.0, %v3388_v56 }
  0xf9   :  { %v2968_v60 = vmul.f32 -1.442695, %v149_v57 }
  0xfa   :  { %3395 = vrcp.f32 %v166_v59 }
  0xfb   :  { %3397 = vpow2.f32 %v2968_v60 }
  0xfc   :  { %v405_v27 = vpop.f32.mrb[12].mxu0 }
  0xfd   :  { %v3390_v61 = vpop.eup %3389  ;;  %v407_v29 = vpop.f32.mrb[13].mxu0 }
  0xfe   :  { %v167_v62 = vadd.f32 1.0, %v3390_v61  ;;  %v409_v30 = vpop.f32.mrb[14].mxu0 }
  0xff   :  { %v3392_v63 = vpop.eup %3391  ;;  %v410_v31 = vpop.f32.mrb[15].mxu0 }
 0x100   :  { %3399 = vrcp.f32 %v167_v62  ;;  %v168_v1 = vadd.f32 1.0, %v3392_v63 }
 0x102   :  { %v3394_v2 = vpop.eup %3393  ;;  %3401 = vrcp.f32 %v168_v1 }
 0x103   :  { %180 = vst.msk [vmem:[#allocation2] sm:$0xff] %vm79_vm1, %v3394_v2 }
 0x104   :  { %v3396_v3 = vpop.eup %3395 }
 0x105   :  { %v3398_v4 = vpop.eup %3397  ;;  %181 = vst.msk [vmem:[#allocation2 + $0x8] sm:$0xff] %vm79_vm1, %v3396_v3 }
 0x106   :  { %v169_v5 = vadd.f32 1.0, %v3398_v4 }
 0x108   :  { %3403 = vrcp.f32 %v169_v5 }
 0x10a   :  { %v3400_v6 = vpop.eup %3399  ;;  %v202_v8 = vld [vmem:[#allocation2] sm:$0xff] }
 0x10b   :  { %182 = vst.msk [vmem:[#allocation2 + $0x10] sm:$0xff] %vm79_vm1, %v3400_v6 }
 0x10c   :  { %v3402_v7 = vpop.eup %3401  ;;  %v203_v9 = vld [vmem:[#allocation2 + $0x8] sm:$0xff] }
 0x10d   :  { %183 = vst.msk [vmem:[#allocation2 + $0x18] sm:$0xff] %vm79_vm1, %v3402_v7  ;;  %v207_v12 = vpack.c.bf16 %v203_v9, %v202_v8 }
 0x10f   :  { %2985 = vmatmul.mubr.msk.bf16.vlgmr.msra.gmra.mrb[0].mxu1 %vm79_vm1, %v207_v12 }
 0x110   :  { %309 = vmatprep.mubr.bf16.mxu1 %v3610_v24  ;;  %466 = vmatpush1.bf16.msra.mxu1 %v3697_v11 }
 0x111   :  { %467 = vmatprep.subr.bf16.mxu1 %v3710_v14 }
 0x112   :  { %v3404_v13 = vpop.eup %3403  ;;  %v204_v16 = vld [vmem:[#allocation2 + $0x10] sm:$0xff] }
 0x113   :  { %184 = vst.msk [vmem:[#allocation2 + $0x20] sm:$0xff] %vm79_vm1, %v3404_v13 }
 0x114   :  { %v205_v17 = vld [vmem:[#allocation2 + $0x18] sm:$0xff]  ;;  %468 = vmatpush1.bf16.msra.mxu1 %v3715_v15 }
 0x115   :  { %v208_v20 = vpack.c.bf16 %v205_v17, %v204_v16  ;;  %469 = vmatprep.subr.bf16.mxu1 %v3728_v18 }
 0x117   :  { %2986 = vmatmul.mubr.msk.bf16.gmra.mrb[4].mxu1 %vm79_vm1, %v208_v20 }
 0x118   :  { %319 = vmatprep.mubr.bf16.mxu1 %v3610_v24  ;;  %470 = vmatpush1.bf16.msra.mxu1 %v3733_v19 }
 0x119   :  { %471 = vmatprep.subr.bf16.mxu1 %v3746_v22 }
 0x11a   :  { %v206_v21 = vld [vmem:[#allocation2 + $0x20] sm:$0xff] }
 0x11b   :  { %v209_v25 = vpack.c.bf16 %v206_v21, %v206_v21 }
 0x11c   :  { %472 = vmatpush1.bf16.msra.mxu1 %v3751_v23 }
 0x11d   :  { %649 = vmatprep.subr.bf16.mxu1 %v3692_v10 }
 0x11f   :  { %2987 = vmatmul.mubr.msk.bf16.gmra.mrb[8].mxu1 %vm79_vm1, %v209_v25 }
 0x120   :  { %497 = vmatprep.mubr.bf16.mxu1 %v3610_v24 }
 0x1e2   :  { %v301_v10 = vpop.f32.mrb[0].mxu1 }
 0x1e3   :  { %v302_v36 = vadd.f32 %v301_v10, %v213_v34  ;;  %v303_v37 = vpop.f32.mrb[1].mxu1 }
 0x1e4   :  { %v3805_v38 = vadd.f32 %v303_v37, %v217_v35  ;;  %v305_v39 = vpop.f32.mrb[2].mxu1 }
 0x1e5   :  { %v3807_v40 = vadd.f32 %v305_v39, %v213_v34  ;;  %v412_v41 = vadd.f32 %v405_v27, %v302_v36  ;;  %v307_v42 = vpop.f32.mrb[3].mxu1 }
 0x1e6   :  { %v3809_v43 = vadd.f32 %v307_v42, %v217_v35 }
 0x1e7   :  { %v2996_v44 = vmul.f32 -1.442695, %v412_v41 }
 0x1e9   :  { %3405 = vpow2.f32 %v2996_v44 }
 0x1ea   :  { %v311_v45 = vpop.f32.mrb[4].mxu1 }
 0x1eb   :  { %v3811_v46 = vadd.f32 %v311_v45, %v213_v34  ;;  %v313_v47 = vpop.f32.mrb[5].mxu1 }
 0x1ec   :  { %v3813_v48 = vadd.f32 %v313_v47, %v217_v35  ;;  %v315_v49 = vpop.f32.mrb[6].mxu1 }
 0x1ed   :  { %v3815_v50 = vadd.f32 %v315_v49, %v213_v34  ;;  %v317_v51 = vpop.f32.mrb[7].mxu1 }
 0x1ee   :  { %v318_v52 = vadd.f32 %v317_v51, %v217_v35 }
 0x1f2   :  { %v321_v53 = vpop.f32.mrb[8].mxu1 }
 0x1f3   :  { %v3406_v54 = vpop.eup %3405  ;;  %v3817_v55 = vadd.f32 %v321_v53, %v213_v34  ;;  %v323_v56 = vpop.f32.mrb[9].mxu1 }
 0x1f4   :  { %v420_v57 = vadd.f32 1.0, %v3406_v54  ;;  %v324_v58 = vadd.f32 %v323_v56, %v217_v35  ;;  %v325_v59 = vpop.f32.mrb[10].mxu1 }
 0x1f5   :  { %v326_v60 = vpop.f32.mrb[11].mxu1 }
 0x1f6   :  { %3407 = vrcp.f32 %v420_v57  ;;  %v413_v61 = vadd.f32 %v407_v29, %v324_v58 }
 0x1f8   :  { %v2997_v62 = vmul.f32 -1.442695, %v413_v61 }
 0x1fa   :  { %3409 = vpow2.f32 %v2997_v62 }
 0x200   :  { %v3408_v63 = vpop.eup %3407 }
 0x201   :  { %437 = vrot.lane.b32.xlu0 %v3408_v63, %s3611_s19 }
 0x204   :  { %v3410_v1 = vpop.eup %3409 }
 0x205   :  { %v421_v2 = vadd.f32 1.0, %v3410_v1 }
 0x207   :  { %3411 = vrcp.f32 %v421_v2 }
 0x211   :  { %v3412_v3 = vpop.eup %3411 }
 0x212   :  { %427 = vrot.lane.b32.xlu1 %v3412_v3, %s3612_s20  ;;  %440 = vrot.lane.b32.xlu0 %v3412_v3, %s3613_s21 }
 0x216   :  { %433 = vrot.lane.b32.xlu1 %v3408_v63, %s3613_s21  ;;  %446 = vrot.lane.b32.xlu0 %v3408_v63, %s3612_s20 }
 0x21a   :  { %449 = vrot.lane.b32.xlu1 %v3412_v3, %s3611_s19 }
 0x273   :  { %v438_v4 = vpop.permute.xlu0 %437 }
 0x284   :  { %v428_v5 = vpop.permute.xlu1 %427  ;;  %v441_v6 = vpop.permute.xlu0 %440 }
 0x285   :  { %v443_v7 = vsel %vm430_vm2, %v438_v4, %v441_v6  ;;  %v431_v13 = vsel %vm430_vm2, %v3408_v63, %v428_v5 }
 0x286   :  { %v444_v8 = vmul.f32 2.0, %v443_v7 }
 0x288   :  { %v2998_v9 = vadd.f32 -1.0, %v444_v8  ;;  %v434_v12 = vpop.permute.xlu1 %433  ;;  %v447_v27 = vpop.permute.xlu0 %446 }
 0x289   :  { %v436_v16 = vsel %vm430_vm2, %v434_v12, %v3412_v3 }
 0x28a   :  { %v454_v17 = vmul.f32 %v2998_v9, %v431_v13  ;;  %v453_v20 = vmul.f32 0.0, %v436_v16 }
 0x28c   :  { %v455_v21 = vadd.f32 %v454_v17, %v453_v20  ;;  %v450_v25 = vpop.permute.xlu1 %449 }
 0x28d   :  { %v452_v30 = vsel %vm430_vm2, %v447_v27, %v450_v25 }
 0x28e   :  { %3413 = vtanh.f32 %v455_v21 }
 0x298   :  { %v3414_v29 = vpop.eup %3413 }
 0x299   :  { %v457_v31 = vmul.f32 %v3414_v29, %v452_v30 }
 0x29b   :  { %v458_v32 = vpack.c.bf16 %v457_v31, %v457_v31  ;;  %459 = vst.msk [vmem:[#allocation3] sm:$0xff] %vm430_vm2, %v457_v31 }
 0x29c   :  { %461 = vst.msk [vmem:[#allocation3 + $0x20] sm:$0xff] %vm460_vm3, %v457_v31 }
 0x29d   :  { %2999 = vmatmul.mubr.msk.bf16.vlgmr.msra.gmra.mrb[12].mxu1 %vm79_vm1, %v458_v32 }
 0x29e   :  { %650 = vmatpush1.bf16.msra.mxu1 %v3697_v11  ;;  %681 = vmatprep.mubr.bf16.mxu1 %v3610_v24 }
 0x29f   :  { %651 = vmatprep.subr.bf16.mxu1 %v3710_v14 }
 0x2a2   :  { %652 = vmatpush1.bf16.msra.mxu1 %v3715_v15 }
 0x2a3   :  { %653 = vmatprep.subr.bf16.mxu1 %v3728_v18 }
 0x2a6   :  { %654 = vmatpush1.bf16.msra.mxu1 %v3733_v19 }
 0x2a7   :  { %655 = vmatprep.subr.bf16.mxu1 %v3746_v22 }
 0x2aa   :  { %656 = vmatpush1.bf16.msra.mxu1 %v3751_v23 }
 0x370   :  { %v499_v34 = vpop.f32.mrb[12].mxu1 }
 0x371   :  { %v506_v35 = vadd.f32 %v499_v34, %v3807_v40  ;;  %v501_v10 = vpop.f32.mrb[13].mxu1 }
 0x372   :  { %v507_v36 = vadd.f32 %v501_v10, %v318_v52  ;;  %v503_v37 = vpop.f32.mrb[14].mxu1 }
 0x373   :  { %v3000_v39 = vmul.f32 -1.442695, %v506_v35  ;;  %v504_v41 = vpop.f32.mrb[15].mxu1 }
 0x374   :  { %v3001_v42 = vmul.f32 -1.442695, %v507_v36 }
 0x375   :  { %3415 = vpow2.f32 %v3000_v39 }
 0x376   :  { %3417 = vpow2.f32 %v3001_v42 }
 0x37f   :  { %v3416_v44 = vpop.eup %3415 }
 0x380   :  { %v3418_v45 = vpop.eup %3417  ;;  %v514_v47 = vadd.f32 1.0, %v3416_v44 }
 0x381   :  { %v515_v49 = vadd.f32 1.0, %v3418_v45 }
 0x382   :  { %3419 = vrcp.f32 %v514_v47 }
 0x383   :  { %3421 = vrcp.f32 %v515_v49 }
 0x38c   :  { %v3420_v51 = vpop.eup %3419 }
 0x38d   :  { %v3422_v53 = vpop.eup %3421  ;;  %530 = vrot.lane.b32.xlu0 %v3420_v51, %s3611_s19 }
 0x38e   :  { %533 = vrot.lane.b32.xlu1 %v3422_v53, %s3613_s21 }
 0x391   :  { %521 = vrot.lane.b32.xlu0 %v3422_v53, %s3612_s20 }
 0x392   :  { %526 = vrot.lane.b32.xlu1 %v3420_v51, %s3613_s21 }
 0x395   :  { %539 = vrot.lane.b32.xlu0 %v3420_v51, %s3612_s20 }
 0x396   :  { %542 = vrot.lane.b32.xlu1 %v3422_v53, %s3611_s19 }
 0x3ff   :  { %v531_v40 = vpop.permute.xlu0 %530 }
 0x400   :  { %v534_v52 = vpop.permute.xlu1 %533 }
 0x401   :  { %v536_v54 = vsel %vm430_vm2, %v531_v40, %v534_v52 }
 0x402   :  { %v537_v56 = vmul.f32 2.0, %v536_v54 }
 0x403   :  { %v522_v57 = vpop.permute.xlu0 %521 }
 0x404   :  { %v3002_v58 = vadd.f32 -1.0, %v537_v56  ;;  %v524_v59 = vsel %vm430_vm2, %v3420_v51, %v522_v57  ;;  %v527_v60 = vpop.permute.xlu1 %526 }
 0x405   :  { %v529_v61 = vsel %vm430_vm2, %v527_v60, %v3422_v53 }
 0x406   :  { %v547_v62 = vmul.f32 %v3002_v58, %v524_v59  ;;  %v546_v63 = vmul.f32 %v529_v61, %v455_v21 }
 0x407   :  { %v540_v2 = vpop.permute.xlu0 %539 }
 0x408   :  { %v548_v1 = vadd.f32 %v547_v62, %v546_v63  ;;  %v543_v3 = vpop.permute.xlu1 %542 }
 0x409   :  { %v545_v5 = vsel %vm430_vm2, %v540_v2, %v543_v3 }
 0x40a   :  { %3423 = vtanh.f32 %v548_v1 }
 0x414   :  { %v3424_v4 = vpop.eup %3423 }
 0x415   :  { %v550_v6 = vmul.f32 %v3424_v4, %v545_v5 }
 0x417   :  { %v551_v7 = vpack.c.bf16 %v550_v6, %v550_v6  ;;  %552 = vst.msk [vmem:[#allocation3 + $0x8] sm:$0xff] %vm430_vm2, %v550_v6 }
 0x418   :  { %553 = vst.msk [vmem:[#allocation3 + $0x18] sm:$0xff] %vm460_vm3, %v550_v6 }
 0x419   :  { %3003 = vmatmul.mubr.msk.bf16.vlgmr.msra.gmra.mrb[16].mxu0 %vm79_vm1, %v551_v7 }
 0x41a   :  { %742 = vmatpush1.bf16.msra.mxu0 %v3697_v11  ;;  %773 = vmatprep.mubr.bf16.mxu0 %v3610_v24 }
 0x41b   :  { %743 = vmatprep.subr.bf16.mxu0 %v3710_v14 }
 0x41e   :  { %744 = vmatpush1.bf16.msra.mxu0 %v3715_v15 }
 0x41f   :  { %745 = vmatprep.subr.bf16.mxu0 %v3728_v18 }
 0x422   :  { %746 = vmatpush1.bf16.msra.mxu0 %v3733_v19 }
 0x423   :  { %747 = vmatprep.subr.bf16.mxu0 %v3746_v22 }
 0x426   :  { %748 = vmatpush1.bf16.msra.mxu0 %v3751_v23 }
 0x4ec   :  { %v591_v8 = vpop.f32.mrb[16].mxu0 }
 0x4ed   :  { %v598_v9 = vadd.f32 %v591_v8, %v3811_v46  ;;  %v593_v12 = vpop.f32.mrb[17].mxu0 }
 0x4ee   :  { %v599_v11 = vadd.f32 %v593_v12, %v3813_v48  ;;  %v595_v13 = vpop.f32.mrb[18].mxu0 }
 0x4ef   :  { %v3004_v16 = vmul.f32 -1.442695, %v598_v9  ;;  %v596_v17 = vpop.f32.mrb[19].mxu0 }
 0x4f0   :  { %v3005_v14 = vmul.f32 -1.442695, %v599_v11 }
 0x4f1   :  { %3425 = vpow2.f32 %v3004_v16 }
 0x4f2   :  { %3427 = vpow2.f32 %v3005_v14 }
 0x4fb   :  { %v3426_v15 = vpop.eup %3425 }
 0x4fc   :  { %v3428_v18 = vpop.eup %3427  ;;  %v606_v20 = vadd.f32 1.0, %v3426_v15 }
 0x4fd   :  { %v607_v19 = vadd.f32 1.0, %v3428_v18 }
 0x4fe   :  { %3429 = vrcp.f32 %v606_v20 }
 0x4ff   :  { %3431 = vrcp.f32 %v607_v19 }
 0x508   :  { %v3430_v22 = vpop.eup %3429 }
 0x509   :  { %v3432_v23 = vpop.eup %3431  ;;  %622 = vrot.lane.b32.xlu0 %v3430_v22, %s3611_s19 }
 0x50a   :  { %625 = vrot.lane.b32.xlu1 %v3432_v23, %s3613_s21 }
 0x50d   :  { %613 = vrot.lane.b32.xlu0 %v3432_v23, %s3612_s20 }
 0x50e   :  { %618 = vrot.lane.b32.xlu1 %v3430_v22, %s3613_s21 }
 0x511   :  { %631 = vrot.lane.b32.xlu0 %v3430_v22, %s3612_s20 }
 0x512   :  { %634 = vrot.lane.b32.xlu1 %v3432_v23, %s3611_s19 }
 0x57b   :  { %v623_v46 = vpop.permute.xlu0 %622 }
 0x57c   :  { %v626_v48 = vpop.permute.xlu1 %625 }
 0x57d   :  { %v628_v21 = vsel %vm430_vm2, %v623_v46, %v626_v48 }
 0x57e   :  { %v629_v25 = vmul.f32 2.0, %v628_v21 }
 0x57f   :  { %v614_v27 = vpop.permute.xlu0 %613 }
 0x580   :  { %v3006_v29 = vadd.f32 -1.0, %v629_v25  ;;  %v616_v30 = vsel %vm430_vm2, %v3430_v22, %v614_v27  ;;  %v619_v31 = vpop.permute.xlu1 %618 }
 0x581   :  { %v621_v32 = vsel %vm430_vm2, %v619_v31, %v3432_v23  ;;  %v3911_v31 = vld [vmem:[%s4613_s2 + $0xc4] ss:$8 sps:$4 sm:$0xff]  }
 0x582   :  { %v639_v34 = vmul.f32 %v3006_v29, %v616_v30  ;;  %v638_v35 = vmul.f32 %v621_v32, %v548_v1  ;;  %v3917_v32 = vld [vmem:[%s4613_s2 + $0xc0] ss:$8 sps:$4 sm:$0xff]   ;;  %1013 = vmatprep.subr.bf16.mxu0 %v3911_v31 }
 0x583   :  { %v632_v36 = vpop.permute.xlu0 %631 }
 0x584   :  { %v640_v10 = vadd.f32 %v639_v34, %v638_v35  ;;  %v635_v37 = vpop.permute.xlu1 %634  ;;  %v3313_v34 = vld [vmem:[%s4613_s2 + $0x94] ss:$8 sps:$4 sm:$0xff]   ;;  %v3311_v35 = vld [vmem:[%s4613_s2 + $0x90] ss:$8 sps:$4 sm:$0xff]  }
 0x585   :  { %v637_v41 = vsel %vm430_vm2, %v632_v36, %v635_v37  ;;  %v3937_v36 = vld [vmem:[%s4613_s2 + $0xd0] ss:$8 sps:$4 sm:$0xff]   ;;  %v3317_v37 = vld [vmem:[%s4613_s2 + $0xa0] ss:$8 sps:$4 sm:$0xff]  }
 0x586   :  { %3433 = vtanh.f32 %v640_v10 }
 0x590   :  { %v3434_v39 = vpop.eup %3433 }
 0x591   :  { %v642_v42 = vmul.f32 %v3434_v39, %v637_v41  ;;  %v3319_v39 = vld [vmem:[%s4613_s2 + $0xa4] ss:$8 sps:$4 sm:$0xff]  }
 0x592   :  { %v3949_v41 = vld [vmem:[%s4613_s2 + $0xe4] ss:$8 sps:$4 sm:$0xff]  }
 0x593   :  { %v643_v44 = vpack.c.bf16 %v642_v42, %v642_v42  ;;  %644 = vst.msk [vmem:[#allocation3 + $0x10] sm:$0xff] %vm430_vm2, %v642_v42 }
 0x594   :  { %645 = vst.msk [vmem:[#allocation3 + $0x10] sm:$0xff] %vm460_vm3, %v642_v42  ;;  %v3955_v42 = vld [vmem:[%s4613_s2 + $0xe0] ss:$8 sps:$4 sm:$0xff]  }
 0x595   :  { %3007 = vmatmul.mubr.msk.bf16.vlgmr.msra.gmra.mrb[16].mxu1 %vm79_vm1, %v643_v44  ;;  %v3325_v44 = vld [vmem:[%s4613_s2 + $0xb4] ss:$8 sps:$4 sm:$0xff]  }
 0x596   :  { %944 = vmatprep.mubr.bf16.mxu1 %v3610_v24 }
 0x668   :  { %v683_v45 = vpop.f32.mrb[16].mxu1 }
 0x669   :  { %v690_v47 = vadd.f32 %v683_v45, %v3815_v50  ;;  %v685_v49 = vpop.f32.mrb[17].mxu1  ;;  %v3964_v45 = vld [vmem:[%s4613_s2 + $0xf4] ss:$8 sps:$4 sm:$0xff]  }
 0x66a   :  { %v691_v51 = vadd.f32 %v685_v49, %v3809_v43  ;;  %v687_v53 = vpop.f32.mrb[18].mxu1  ;;  %v3973_v49 = vld [vmem:[%s4613_s2 + $0xf0] ss:$8 sps:$4 sm:$0xff]  }
 0x66b   :  { %v3008_v40 = vmul.f32 -1.442695, %v690_v47  ;;  %v688_v52 = vpop.f32.mrb[19].mxu1  ;;  %v3323_v47 = vld [vmem:[%s4613_s2 + $0xb0] ss:$8 sps:$4 sm:$0xff]  }
 0x66c   :  { %v3009_v54 = vmul.f32 -1.442695, %v691_v51 }
 0x66d   :  { %3435 = vpow2.f32 %v3008_v40 }
 0x66e   :  { %3437 = vpow2.f32 %v3009_v54 }
 0x677   :  { %v3436_v56 = vpop.eup %3435 }
 0x678   :  { %v3438_v57 = vpop.eup %3437  ;;  %v698_v58 = vadd.f32 1.0, %v3436_v56 }
 0x679   :  { %v699_v59 = vadd.f32 1.0, %v3438_v57 }
 0x67a   :  { %3439 = vrcp.f32 %v698_v58 }
 0x67b   :  { %3441 = vrcp.f32 %v699_v59 }
 0x684   :  { %v3440_v60 = vpop.eup %3439 }
 0x685   :  { %v3442_v61 = vpop.eup %3441  ;;  %714 = vrot.lane.b32.xlu0 %v3440_v60, %s3611_s19 }
 0x686   :  { %717 = vrot.lane.b32.xlu1 %v3442_v61, %s3613_s21 }
 0x689   :  { %705 = vrot.lane.b32.xlu0 %v3442_v61, %s3612_s20 }
 0x68a   :  { %710 = vrot.lane.b32.xlu1 %v3440_v60, %s3613_s21 }
 0x68d   :  { %723 = vrot.lane.b32.xlu0 %v3440_v60, %s3612_s20 }
 0x68e   :  { %726 = vrot.lane.b32.xlu1 %v3442_v61, %s3611_s19 }
 0x6f7   :  { %v715_v43 = vpop.permute.xlu0 %714 }
 0x6f8   :  { %v718_v50 = vpop.permute.xlu1 %717 }
 0x6f9   :  { %v720_v62 = vsel %vm430_vm2, %v715_v43, %v718_v50 }
 0x6fa   :  { %v721_v63 = vmul.f32 2.0, %v720_v62 }
 0x6fb   :  { %v706_v1 = vpop.permute.xlu0 %705 }
 0x6fc   :  { %v3010_v2 = vadd.f32 -1.0, %v721_v63  ;;  %v708_v3 = vsel %vm430_vm2, %v3440_v60, %v706_v1  ;;  %v711_v4 = vpop.permute.xlu1 %710 }
 0x6fd   :  { %v713_v5 = vsel %vm430_vm2, %v711_v4, %v3442_v61 }
 0x6fe   :  { %v731_v6 = vmul.f32 %v3010_v2, %v708_v3  ;;  %v730_v7 = vmul.f32 %v713_v5, %v640_v10  ;;  %v3931_v10 = vld [vmem:[%s4613_s2 + $0xd4] ss:$8 sps:$4 sm:$0xff]  }
 0x6ff   :  { %v724_v9 = vpop.permute.xlu0 %723 }
 0x700   :  { %v3889_v8 = vadd.f32 %v731_v6, %v730_v7  ;;  %v727_v12 = vpop.permute.xlu1 %726  ;;  %v849_v7 = vld [vmem:[#allocation3 + $0x10] sm:$0xff] }
 0x701   :  { %v729_v13 = vsel %vm430_vm2, %v724_v9, %v727_v12 }
 0x702   :  { %3443 = vtanh.f32 %v3889_v8 }
 0x70c   :  { %v3444_v11 = vpop.eup %3443 }
 0x70d   :  { %v734_v16 = vmul.f32 %v3444_v11, %v729_v13 }
 0x70f   :  { %v735_v17 = vpack.c.bf16 %v734_v16, %v734_v16  ;;  %736 = vst.msk [vmem:[#allocation3 + $0x18] sm:$0xff] %vm430_vm2, %v734_v16 }
 0x710   :  { %737 = vst.msk [vmem:[#allocation3 + $0x8] sm:$0xff] %vm460_vm3, %v734_v16 }
 0x711   :  { %3011 = vmatmul.mubr.msk.bf16.vlgmr.msra.gmra.mrb[20].mxu0 %vm79_vm1, %v735_v17 }
 0x712   :  { %1045 = vmatprep.mubr.bf16.mxu0 %v3610_v24  ;;  %1014 = vmatpush1.bf16.msra.mxu0 %v3917_v32 }
 0x713   :  { %1015 = vmatprep.subr.bf16.mxu0 %v3931_v10 }
 0x716   :  { %1016 = vmatpush1.bf16.msra.mxu0 %v3937_v36  ;;  %v850_v6 = vld [vmem:[#allocation3 + $0x18] sm:$0xff] }
 0x717   :  { %1017 = vmatprep.subr.bf16.mxu0 %v3949_v41  ;;  %v848_v4 = vld [vmem:[#allocation3 + $0x8] sm:$0xff] }
 0x71a   :  { %1018 = vmatpush1.bf16.msra.mxu0 %v3955_v42 }
 0x71b   :  { %1019 = vmatprep.subr.bf16.mxu0 %v3964_v45 }
 0x71e   :  { %1020 = vmatpush1.bf16.msra.mxu0 %v3973_v49 }
 0x71f   :  { %1197 = vmatprep.subr.bf16.mxu0 %v3911_v31 }
 0x721   :  { %1046 = vmatmul.mubr.bf16.vlgmr.msra.gmra.mrb[24].mxu0 %v3610_v24 }
 0x722   :  { %1198 = vmatpush1.bf16.msra.mxu0 %v3917_v32  ;;  %1229 = vmatprep.mubr.bf16.mxu0 %v3610_v24 }
 0x723   :  { %1199 = vmatprep.subr.bf16.mxu0 %v3931_v10 }
 0x726   :  { %1200 = vmatpush1.bf16.msra.mxu0 %v3937_v36 }
 0x727   :  { %1201 = vmatprep.subr.bf16.mxu0 %v3949_v41 }
 0x72a   :  { %1202 = vmatpush1.bf16.msra.mxu0 %v3955_v42 }
 0x72b   :  { %1203 = vmatprep.subr.bf16.mxu0 %v3964_v45 }
 0x72e   :  { %1204 = vmatpush1.bf16.msra.mxu0 %v3973_v49 }
 0x72f   :  { %1381 = vmatprep.subr.bf16.mxu0 %v3911_v31 }
 0x7e4   :  { %v775_v14 = vpop.f32.mrb[20].mxu0 }
 0x7e5   :  { %v782_v15 = vadd.f32 %v775_v14, %v3817_v55  ;;  %v777_v18 = vpop.f32.mrb[21].mxu0  ;;  %v3305_v55 = vld [vmem:[%s4613_s2 + $0x80] ss:$8 sps:$4 sm:$0xff]   ;;  %v857_v14 = vsub.s32 2, %v3769_v26 }
 0x7e6   :  { %v783_v20 = vadd.f32 %v777_v18, %v3805_v38  ;;  %v779_v19 = vpop.f32.mrb[22].mxu0  ;;  %v3307_v38 = vld [vmem:[%s4613_s2 + $0x84] ss:$8 sps:$4 sm:$0xff]  }
 0x7e7   :  { %v3012_v22 = vmul.f32 -1.442695, %v782_v15  ;;  %v780_v23 = vpop.f32.mrb[23].mxu0  ;;  %912 = vmatprep.subr.bf16.mxu1 %v3307_v38  ;;  %v858_v15 = vrot.slane %v3775_v28, %v857_v14  ;;  %v862_v18 = vrot.slane %v3801_v33, %v857_v14 }
 0x7e8   :  { %v3013_v46 = vmul.f32 -1.442695, %v783_v20  ;;  %913 = vmatpush1.bf16.msra.mxu1 %v3305_v55 }
 0x7e9   :  { %3445 = vpow2.f32 %v3012_v22  ;;  %914 = vmatprep.subr.bf16.mxu1 %v3313_v34 }
 0x7ea   :  { %3447 = vpow2.f32 %v3013_v46 }
 0x7ec   :  { %915 = vmatpush1.bf16.msra.mxu1 %v3311_v35 }
 0x7ed   :  { %916 = vmatprep.subr.bf16.mxu1 %v3319_v39 }
 0x7f0   :  { %917 = vmatpush1.bf16.msra.mxu1 %v3317_v37 }
 0x7f1   :  { %918 = vmatprep.subr.bf16.mxu1 %v3325_v44 }
 0x7f3   :  { %v3446_v48 = vpop.eup %3445 }
 0x7f4   :  { %v3448_v21 = vpop.eup %3447  ;;  %v790_v25 = vadd.f32 1.0, %v3446_v48  ;;  %919 = vmatpush1.bf16.msra.mxu1 %v3323_v47  ;;  %v1047_v11 = vpop.f32.mrb[24].mxu0 }
 0x7f5   :  { %v791_v27 = vadd.f32 1.0, %v3448_v21  ;;  %1105 = vmatprep.subr.bf16.mxu1 %v3911_v31  ;;  %v1049_v13 = vpop.f32.mrb[25].mxu0 }
 0x7f6   :  { %3449 = vrcp.f32 %v790_v25  ;;  %v1051_v16 = vpop.f32.mrb[26].mxu0 }
 0x7f7   :  { %3451 = vrcp.f32 %v791_v27  ;;  %v1052_v17 = vpop.f32.mrb[27].mxu0 }
 0x800   :  { %v3450_v29 = vpop.eup %3449 }
 0x801   :  { %v3452_v30 = vpop.eup %3451  ;;  %806 = vrot.lane.b32.xlu0 %v3450_v29, %s3611_s19 }
 0x802   :  { %809 = vrot.lane.b32.xlu1 %v3452_v30, %s3613_s21 }
 0x805   :  { %797 = vrot.lane.b32.xlu0 %v3452_v30, %s3612_s20 }
 0x806   :  { %802 = vrot.lane.b32.xlu1 %v3450_v29, %s3613_s21 }
 0x809   :  { %815 = vrot.lane.b32.xlu0 %v3450_v29, %s3612_s20 }
 0x80a   :  { %818 = vrot.lane.b32.xlu1 %v3452_v30, %s3611_s19 }
 0x873   :  { %v807_v51 = vpop.permute.xlu0 %806 }
 0x874   :  { %v810_v53 = vpop.permute.xlu1 %809 }
 0x875   :  { %v812_v40 = vsel %vm430_vm2, %v807_v51, %v810_v53 }
 0x876   :  { %v813_v52 = vmul.f32 2.0, %v812_v40 }
 0x877   :  { %v798_v54 = vpop.permute.xlu0 %797 }
 0x878   :  { %v3014_v56 = vadd.f32 -1.0, %v813_v52  ;;  %v800_v57 = vsel %vm430_vm2, %v3450_v29, %v798_v54  ;;  %v803_v58 = vpop.permute.xlu1 %802 }
 0x879   :  { %v805_v59 = vsel %vm430_vm2, %v803_v58, %v3452_v30 }
 0x87a   :  { %v823_v60 = vmul.f32 %v3014_v56, %v800_v57  ;;  %v822_v61 = vmul.f32 %v805_v59, %v3889_v8  ;;  %v853_v8 = vpack.c.bf16 %v850_v6, %v849_v7 }
 0x87b   :  { %v816_v50 = vpop.permute.xlu0 %815 }
 0x87c   :  { %v824_v43 = vadd.f32 %v823_v60, %v822_v61  ;;  %v819_v62 = vpop.permute.xlu1 %818 }
 0x87d   :  { %v821_v1 = vsel %vm430_vm2, %v816_v50, %v819_v62 }
 0x87e   :  { %3453 = vtanh.f32 %v824_v43 }
 0x888   :  { %v3454_v63 = vpop.eup %3453 }
 0x889   :  { %v826_v2 = vmul.f32 %v3454_v63, %v821_v1 }
 0x88b   :  { %827 = vst.msk [vmem:[#allocation3 + $0x20] sm:$0xff] %vm430_vm2, %v826_v2 }
 0x88c   :  { %828 = vst.msk [vmem:[#allocation3] sm:$0xff] %vm460_vm3, %v826_v2 }
 0x892   :  { %v851_v9 = vld [vmem:[#allocation3 + $0x20] sm:$0xff] }
 0x893   :  { %v847_v3 = vld [vmem:[#allocation3] sm:$0xff]  ;;  %v854_v12 = vpack.c.bf16 %v851_v9, %v851_v9 }
 0x894   :  { %v852_v5 = vpack.c.bf16 %v848_v4, %v847_v3 }
 0x896   :  { %3039 = vmatmul.mubr.msk.bf16.vlgmr.msra.gmra.mrb[20].mxu1 %vm79_vm1, %v852_v5 }
 0x897   :  { %954 = vmatprep.mubr.bf16.mxu1 %v3610_v24  ;;  %1106 = vmatpush1.bf16.msra.mxu1 %v3917_v32 }
 0x898   :  { %1107 = vmatprep.subr.bf16.mxu1 %v3931_v10 }
 0x89b   :  { %1108 = vmatpush1.bf16.msra.mxu1 %v3937_v36 }
 0x89c   :  { %1109 = vmatprep.subr.bf16.mxu1 %v3949_v41 }
 0x89e   :  { %3040 = vmatmul.mubr.msk.bf16.gmra.mrb[24].mxu1 %vm79_vm1, %v853_v8 }
 0x89f   :  { %964 = vmatprep.mubr.bf16.mxu1 %v3610_v24  ;;  %1110 = vmatpush1.bf16.msra.mxu1 %v3955_v42 }
 0x8a0   :  { %1111 = vmatprep.subr.bf16.mxu1 %v3964_v45 }
 0x8a3   :  { %1112 = vmatpush1.bf16.msra.mxu1 %v3973_v49 }
 0x8a4   :  { %1289 = vmatprep.subr.bf16.mxu1 %v3911_v31 }
 0x8a6   :  { %3041 = vmatmul.mubr.msk.bf16.gmra.mrb[28].mxu1 %vm79_vm1, %v854_v12 }
 0x8a7   :  { %1137 = vmatprep.mubr.bf16.mxu1 %v3610_v24 }
 0x969   :  { %v946_v20 = vpop.f32.mrb[20].mxu1 }
 0x96a   :  { %v947_v19 = vadd.f32 %v946_v20, %v858_v15  ;;  %v948_v22 = vpop.f32.mrb[21].mxu1 }
 0x96b   :  { %v4013_v23 = vadd.f32 %v948_v22, %v862_v18  ;;  %v950_v46 = vpop.f32.mrb[22].mxu1 }
 0x96c   :  { %v4015_v48 = vadd.f32 %v950_v46, %v858_v15  ;;  %v1054_v21 = vadd.f32 %v1047_v11, %v947_v19  ;;  %v952_v25 = vpop.f32.mrb[23].mxu1 }
 0x96d   :  { %v4017_v27 = vadd.f32 %v952_v25, %v862_v18 }
 0x96e   :  { %v3050_v29 = vmul.f32 -1.442695, %v1054_v21 }
 0x970   :  { %3455 = vpow2.f32 %v3050_v29 }
 0x971   :  { %v956_v30 = vpop.f32.mrb[24].mxu1 }
 0x972   :  { %v4019_v38 = vadd.f32 %v956_v30, %v858_v15  ;;  %v958_v28 = vpop.f32.mrb[25].mxu1 }
 0x973   :  { %v4021_v55 = vadd.f32 %v958_v28, %v862_v18  ;;  %v960_v33 = vpop.f32.mrb[26].mxu1 }
 0x974   :  { %v4023_v31 = vadd.f32 %v960_v33, %v858_v15  ;;  %v962_v34 = vpop.f32.mrb[27].mxu1 }
 0x975   :  { %v963_v35 = vadd.f32 %v962_v34, %v862_v18 }
 0x979   :  { %v966_v37 = vpop.f32.mrb[28].mxu1 }
 0x97a   :  { %v3456_v39 = vpop.eup %3455  ;;  %v4025_v44 = vadd.f32 %v966_v37, %v858_v15  ;;  %v968_v47 = vpop.f32.mrb[29].mxu1 }
 0x97b   :  { %v1062_v51 = vadd.f32 1.0, %v3456_v39  ;;  %v969_v53 = vadd.f32 %v968_v47, %v862_v18  ;;  %v970_v40 = vpop.f32.mrb[30].mxu1 }
 0x97c   :  { %v971_v52 = vpop.f32.mrb[31].mxu1 }
 0x97d   :  { %3457 = vrcp.f32 %v1062_v51  ;;  %v1055_v54 = vadd.f32 %v1049_v13, %v969_v53 }
 0x97f   :  { %v3051_v56 = vmul.f32 -1.442695, %v1055_v54 }
 0x981   :  { %3459 = vpow2.f32 %v3051_v56 }
 0x987   :  { %v3458_v57 = vpop.eup %3457 }
 0x988   :  { %1078 = vrot.lane.b32.xlu0 %v3458_v57, %s3611_s19 }
 0x98b   :  { %v3460_v58 = vpop.eup %3459 }
 0x98c   :  { %v1063_v59 = vadd.f32 1.0, %v3460_v58 }
 0x98e   :  { %3461 = vrcp.f32 %v1063_v59 }
 0x998   :  { %v3462_v60 = vpop.eup %3461 }
 0x999   :  { %1069 = vrot.lane.b32.xlu0 %v3462_v60, %s3612_s20  ;;  %1081 = vrot.lane.b32.xlu1 %v3462_v60, %s3613_s21 }
 0x99d   :  { %1087 = vrot.lane.b32.xlu0 %v3458_v57, %s3612_s20  ;;  %1074 = vrot.lane.b32.xlu1 %v3458_v57, %s3613_s21 }
 0x9a1   :  { %1090 = vrot.lane.b32.xlu1 %v3462_v60, %s3611_s19 }
 0x9fa   :  { %v1079_v61 = vpop.permute.xlu0 %1078 }
 0xa0b   :  { %v1082_v43 = vpop.permute.xlu1 %1081  ;;  %v1070_v62 = vpop.permute.xlu0 %1069 }
 0xa0c   :  { %v1084_v50 = vsel %vm430_vm2, %v1079_v61, %v1082_v43  ;;  %v1072_v3 = vsel %vm430_vm2, %v3458_v57, %v1070_v62 }
 0xa0d   :  { %v1085_v63 = vmul.f32 2.0, %v1084_v50 }
 0xa0f   :  { %v3052_v1 = vadd.f32 -1.0, %v1085_v63  ;;  %v1075_v2 = vpop.permute.xlu1 %1074  ;;  %v1088_v9 = vpop.permute.xlu0 %1087 }
 0xa10   :  { %v1077_v4 = vsel %vm430_vm2, %v1075_v2, %v3462_v60 }
 0xa11   :  { %v1095_v5 = vmul.f32 %v3052_v1, %v1072_v3  ;;  %v1094_v6 = vmul.f32 0.0, %v1077_v4 }
 0xa13   :  { %v1096_v7 = vadd.f32 %v1095_v5, %v1094_v6  ;;  %v1091_v8 = vpop.permute.xlu1 %1090 }
 0xa14   :  { %v1093_v11 = vsel %vm430_vm2, %v1088_v9, %v1091_v8 }
 0xa15   :  { %3463 = vtanh.f32 %v1096_v7 }
 0xa1f   :  { %v3464_v12 = vpop.eup %3463 }
 0xa20   :  { %v1098_v13 = vmul.f32 %v3464_v12, %v1093_v11 }
 0xa22   :  { %v1099_v16 = vpack.c.bf16 %v1098_v13, %v1098_v13  ;;  %1100 = vst.msk [vmem:[#allocation2] sm:$0xff] %vm430_vm2, %v1098_v13 }
 0xa23   :  { %1101 = vst.msk [vmem:[#allocation2 + $0x20] sm:$0xff] %vm460_vm3, %v1098_v13 }
 0xa24   :  { %3053 = vmatmul.mubr.msk.bf16.vlgmr.msra.gmra.mrb[32].mxu1 %vm79_vm1, %v1099_v16 }
 0xa25   :  { %1290 = vmatpush1.bf16.msra.mxu1 %v3917_v32  ;;  %1321 = vmatprep.mubr.bf16.mxu1 %v3610_v24 }
 0xa26   :  { %1291 = vmatprep.subr.bf16.mxu1 %v3931_v10 }
 0xa29   :  { %1292 = vmatpush1.bf16.msra.mxu1 %v3937_v36 }
 0xa2a   :  { %1293 = vmatprep.subr.bf16.mxu1 %v3949_v41 }
 0xa2d   :  { %1294 = vmatpush1.bf16.msra.mxu1 %v3955_v42 }
 0xa2e   :  { %1295 = vmatprep.subr.bf16.mxu1 %v3964_v45 }
 0xa31   :  { %1296 = vmatpush1.bf16.msra.mxu1 %v3973_v49 }
 0xaf7   :  { %v1139_v17 = vpop.f32.mrb[32].mxu1 }
 0xaf8   :  { %v1146_v14 = vadd.f32 %v1139_v17, %v4015_v48  ;;  %v1141_v15 = vpop.f32.mrb[33].mxu1 }
 0xaf9   :  { %v1147_v18 = vadd.f32 %v1141_v15, %v963_v35  ;;  %v1143_v20 = vpop.f32.mrb[34].mxu1 }
 0xafa   :  { %v3054_v19 = vmul.f32 -1.442695, %v1146_v14  ;;  %v1144_v22 = vpop.f32.mrb[35].mxu1 }
 0xafb   :  { %v3055_v46 = vmul.f32 -1.442695, %v1147_v18 }
 0xafc   :  { %3465 = vpow2.f32 %v3054_v19 }
 0xafd   :  { %3467 = vpow2.f32 %v3055_v46 }
 0xb06   :  { %v3466_v21 = vpop.eup %3465 }
 0xb07   :  { %v3468_v25 = vpop.eup %3467  ;;  %v1154_v29 = vadd.f32 1.0, %v3466_v21 }
 0xb08   :  { %v1155_v30 = vadd.f32 1.0, %v3468_v25 }
 0xb09   :  { %3469 = vrcp.f32 %v1154_v29 }
 0xb0a   :  { %3471 = vrcp.f32 %v1155_v30 }
 0xb13   :  { %v3470_v28 = vpop.eup %3469 }
 0xb14   :  { %v3472_v33 = vpop.eup %3471  ;;  %1170 = vrot.lane.b32.xlu0 %v3470_v28, %s3611_s19 }
 0xb15   :  { %1173 = vrot.lane.b32.xlu1 %v3472_v33, %s3613_s21 }
 0xb18   :  { %1161 = vrot.lane.b32.xlu0 %v3472_v33, %s3612_s20 }
 0xb19   :  { %1166 = vrot.lane.b32.xlu1 %v3470_v28, %s3613_s21 }
 0xb1c   :  { %1179 = vrot.lane.b32.xlu0 %v3470_v28, %s3612_s20 }
 0xb1d   :  { %1182 = vrot.lane.b32.xlu1 %v3472_v33, %s3611_s19 }
 0xb86   :  { %v1171_v48 = vpop.permute.xlu0 %1170 }
 0xb87   :  { %v1174_v34 = vpop.permute.xlu1 %1173 }
 0xb88   :  { %v1176_v35 = vsel %vm430_vm2, %v1171_v48, %v1174_v34 }
 0xb89   :  { %v1177_v37 = vmul.f32 2.0, %v1176_v35 }
 0xb8a   :  { %v1162_v39 = vpop.permute.xlu0 %1161 }
 0xb8b   :  { %v3056_v47 = vadd.f32 -1.0, %v1177_v37  ;;  %v1164_v51 = vsel %vm430_vm2, %v3470_v28, %v1162_v39  ;;  %v1167_v53 = vpop.permute.xlu1 %1166 }
 0xb8c   :  { %v1169_v40 = vsel %vm430_vm2, %v1167_v53, %v3472_v33 }
 0xb8d   :  { %v1187_v52 = vmul.f32 %v3056_v47, %v1164_v51  ;;  %v1186_v54 = vmul.f32 %v1169_v40, %v1096_v7 }
 0xb8e   :  { %v1180_v57 = vpop.permute.xlu0 %1179 }
 0xb8f   :  { %v1188_v56 = vadd.f32 %v1187_v52, %v1186_v54  ;;  %v1183_v58 = vpop.permute.xlu1 %1182 }
 0xb90   :  { %v1185_v60 = vsel %vm430_vm2, %v1180_v57, %v1183_v58 }
 0xb91   :  { %3473 = vtanh.f32 %v1188_v56 }
 0xb9b   :  { %v3474_v59 = vpop.eup %3473 }
 0xb9c   :  { %v1190_v61 = vmul.f32 %v3474_v59, %v1185_v60 }
 0xb9e   :  { %v1191_v43 = vpack.c.bf16 %v1190_v61, %v1190_v61  ;;  %1192 = vst.msk [vmem:[#allocation2 + $0x8] sm:$0xff] %vm430_vm2, %v1190_v61 }
 0xb9f   :  { %1193 = vst.msk [vmem:[#allocation2 + $0x18] sm:$0xff] %vm460_vm3, %v1190_v61 }
 0xba0   :  { %3057 = vmatmul.mubr.msk.bf16.vlgmr.msra.gmra.mrb[28].mxu0 %vm79_vm1, %v1191_v43 }
 0xba1   :  { %1382 = vmatpush1.bf16.msra.mxu0 %v3917_v32  ;;  %1413 = vmatprep.mubr.bf16.mxu0 %v3610_v24 }
 0xba2   :  { %1383 = vmatprep.subr.bf16.mxu0 %v3931_v10 }
 0xba5   :  { %1384 = vmatpush1.bf16.msra.mxu0 %v3937_v36 }
 0xba6   :  { %1385 = vmatprep.subr.bf16.mxu0 %v3949_v41 }
 0xba9   :  { %1386 = vmatpush1.bf16.msra.mxu0 %v3955_v42 }
 0xbaa   :  { %1387 = vmatprep.subr.bf16.mxu0 %v3964_v45 }
 0xbad   :  { %1388 = vmatpush1.bf16.msra.mxu0 %v3973_v49 }
 0xc73   :  { %v1231_v50 = vpop.f32.mrb[28].mxu0 }
 0xc74   :  { %v1238_v62 = vadd.f32 %v1231_v50, %v4019_v38  ;;  %v1233_v63 = vpop.f32.mrb[29].mxu0 }
 0xc75   :  { %v1239_v32 = vadd.f32 %v1233_v63, %v4021_v55  ;;  %v1235_v1 = vpop.f32.mrb[30].mxu0 }
 0xc76   :  { %v3058_v2 = vmul.f32 -1.442695, %v1238_v62  ;;  %v1236_v3 = vpop.f32.mrb[31].mxu0 }
 0xc77   :  { %v3059_v10 = vmul.f32 -1.442695, %v1239_v32 }
 0xc78   :  { %3475 = vpow2.f32 %v3058_v2 }
 0xc79   :  { %3477 = vpow2.f32 %v3059_v10 }
 0xc82   :  { %v3476_v36 = vpop.eup %3475 }
 0xc83   :  { %v3478_v41 = vpop.eup %3477  ;;  %v1246_v4 = vadd.f32 1.0, %v3476_v36 }
 0xc84   :  { %v1247_v42 = vadd.f32 1.0, %v3478_v41 }
 0xc85   :  { %3479 = vrcp.f32 %v1246_v4 }
 0xc86   :  { %3481 = vrcp.f32 %v1247_v42 }
 0xc8f   :  { %v3480_v45 = vpop.eup %3479 }
 0xc90   :  { %v3482_v49 = vpop.eup %3481  ;;  %1262 = vrot.lane.b32.xlu0 %v3480_v45, %s3611_s19 }
 0xc91   :  { %1265 = vrot.lane.b32.xlu1 %v3482_v49, %s3613_s21 }
 0xc94   :  { %1253 = vrot.lane.b32.xlu0 %v3482_v49, %s3612_s20 }
 0xc95   :  { %1258 = vrot.lane.b32.xlu1 %v3480_v45, %s3613_s21 }
 0xc98   :  { %1271 = vrot.lane.b32.xlu0 %v3480_v45, %s3612_s20 }
 0xc99   :  { %1274 = vrot.lane.b32.xlu1 %v3482_v49, %s3611_s19 }
 0xd02   :  { %v1263_v38 = vpop.permute.xlu0 %1262 }
 0xd03   :  { %v1266_v55 = vpop.permute.xlu1 %1265 }
 0xd04   :  { %v1268_v5 = vsel %vm430_vm2, %v1263_v38, %v1266_v55 }
 0xd05   :  { %v1269_v6 = vmul.f32 2.0, %v1268_v5 }
 0xd06   :  { %v1254_v7 = vpop.permute.xlu0 %1253 }
 0xd07   :  { %v3060_v8 = vadd.f32 -1.0, %v1269_v6  ;;  %v1256_v9 = vsel %vm430_vm2, %v3480_v45, %v1254_v7  ;;  %v1259_v12 = vpop.permute.xlu1 %1258 }
 0xd08   :  { %v1261_v11 = vsel %vm430_vm2, %v1259_v12, %v3482_v49  ;;  %v3337_v12 = vld [vmem:[%s4613_s2 + $0x114] ss:$8 sps:$4 sm:$0xff]  }
 0xd09   :  { %v1279_v13 = vmul.f32 %v3060_v8, %v1256_v9  ;;  %v1278_v16 = vmul.f32 %v1261_v11, %v1188_v56  ;;  %v4119_v8 = vld [vmem:[%s4613_s2 + $0x144] ss:$8 sps:$4 sm:$0xff]   ;;  %v4125_v9 = vld [vmem:[%s4613_s2 + $0x140] ss:$8 sps:$4 sm:$0xff]   ;;  %v3335_v11 = vld [vmem:[%s4613_s2 + $0x110] ss:$8 sps:$4 sm:$0xff]  }
 0xd0a   :  { %v1272_v14 = vpop.permute.xlu0 %1271  ;;  %1653 = vmatprep.subr.bf16.mxu0 %v4119_v8 }
 0xd0b   :  { %v1280_v17 = vadd.f32 %v1279_v13, %v1278_v16  ;;  %v1275_v15 = vpop.permute.xlu1 %1274  ;;  %v4139_v13 = vld [vmem:[%s4613_s2 + $0x154] ss:$8 sps:$4 sm:$0xff]   ;;  %v4145_v16 = vld [vmem:[%s4613_s2 + $0x150] ss:$8 sps:$4 sm:$0xff]  }
 0xd0c   :  { %v1277_v20 = vsel %vm430_vm2, %v1272_v14, %v1275_v15  ;;  %v3343_v14 = vld [vmem:[%s4613_s2 + $0x124] ss:$8 sps:$4 sm:$0xff]  }
 0xd0d   :  { %3483 = vtanh.f32 %v1280_v17  ;;  %v4157_v15 = vld [vmem:[%s4613_s2 + $0x164] ss:$8 sps:$4 sm:$0xff]  }
 0xd17   :  { %v3484_v18 = vpop.eup %3483 }
 0xd18   :  { %v1282_v19 = vmul.f32 %v3484_v18, %v1277_v20  ;;  %v4163_v18 = vld [vmem:[%s4613_s2 + $0x160] ss:$8 sps:$4 sm:$0xff]   ;;  %v3349_v20 = vld [vmem:[%s4613_s2 + $0x134] ss:$8 sps:$4 sm:$0xff]  }
 0xd1a   :  { %v1283_v22 = vpack.c.bf16 %v1282_v19, %v1282_v19  ;;  %1284 = vst.msk [vmem:[#allocation2 + $0x10] sm:$0xff] %vm430_vm2, %v1282_v19 }
 0xd1b   :  { %1285 = vst.msk [vmem:[#allocation2 + $0x10] sm:$0xff] %vm460_vm3, %v1282_v19  ;;  %v4172_v19 = vld [vmem:[%s4613_s2 + $0x174] ss:$8 sps:$4 sm:$0xff]  }
 0xd1c   :  { %3061 = vmatmul.mubr.msk.bf16.vlgmr.msra.gmra.mrb[36].mxu1 %vm79_vm1, %v1283_v22  ;;  %v3347_v22 = vld [vmem:[%s4613_s2 + $0x130] ss:$8 sps:$4 sm:$0xff]  }
 0xd1d   :  { %1584 = vmatprep.mubr.bf16.mxu1 %v3610_v24 }
 0xdef   :  { %v1323_v46 = vpop.f32.mrb[36].mxu1 }
 0xdf0   :  { %v1330_v21 = vadd.f32 %v1323_v46, %v4023_v31  ;;  %v1325_v25 = vpop.f32.mrb[37].mxu1  ;;  %v4181_v46 = vld [vmem:[%s4613_s2 + $0x170] ss:$8 sps:$4 sm:$0xff]  }
 0xdf1   :  { %v1331_v29 = vadd.f32 %v1325_v25, %v4017_v27  ;;  %v1327_v30 = vpop.f32.mrb[38].mxu1 }
 0xdf2   :  { %v3062_v28 = vmul.f32 -1.442695, %v1330_v21  ;;  %v1328_v33 = vpop.f32.mrb[39].mxu1 }
 0xdf3   :  { %v3063_v48 = vmul.f32 -1.442695, %v1331_v29 }
 0xdf4   :  { %3485 = vpow2.f32 %v3062_v28 }
 0xdf5   :  { %3487 = vpow2.f32 %v3063_v48 }
 0xdfe   :  { %v3486_v34 = vpop.eup %3485 }
 0xdff   :  { %v3488_v35 = vpop.eup %3487  ;;  %v1338_v37 = vadd.f32 1.0, %v3486_v34 }
 0xe00   :  { %v1339_v39 = vadd.f32 1.0, %v3488_v35 }
 0xe01   :  { %3489 = vrcp.f32 %v1338_v37 }
 0xe02   :  { %3491 = vrcp.f32 %v1339_v39 }
 0xe0b   :  { %v3490_v47 = vpop.eup %3489 }
 0xe0c   :  { %v3492_v51 = vpop.eup %3491  ;;  %1354 = vrot.lane.b32.xlu0 %v3490_v47, %s3611_s19 }
 0xe0d   :  { %1357 = vrot.lane.b32.xlu1 %v3492_v51, %s3613_s21 }
 0xe10   :  { %1345 = vrot.lane.b32.xlu0 %v3492_v51, %s3612_s20 }
 0xe11   :  { %1350 = vrot.lane.b32.xlu1 %v3490_v47, %s3613_s21 }
 0xe14   :  { %1363 = vrot.lane.b32.xlu0 %v3490_v47, %s3612_s20 }
 0xe15   :  { %1366 = vrot.lane.b32.xlu1 %v3492_v51, %s3611_s19 }
 0xe7e   :  { %v1355_v27 = vpop.permute.xlu0 %1354 }
 0xe7f   :  { %v1358_v31 = vpop.permute.xlu1 %1357 }
 0xe80   :  { %v1360_v53 = vsel %vm430_vm2, %v1355_v27, %v1358_v31 }
 0xe81   :  { %v1361_v40 = vmul.f32 2.0, %v1360_v53 }
 0xe82   :  { %v1346_v52 = vpop.permute.xlu0 %1345 }
 0xe83   :  { %v3064_v54 = vadd.f32 -1.0, %v1361_v40  ;;  %v1348_v56 = vsel %vm430_vm2, %v3490_v47, %v1346_v52  ;;  %v1351_v57 = vpop.permute.xlu1 %1350 }
 0xe84   :  { %v1353_v58 = vsel %vm430_vm2, %v1351_v57, %v3492_v51 }
 0xe85   :  { %v1371_v59 = vmul.f32 %v3064_v54, %v1348_v56  ;;  %v1370_v60 = vmul.f32 %v1353_v58, %v1280_v17  ;;  %v3341_v17 = vld [vmem:[%s4613_s2 + $0x120] ss:$8 sps:$4 sm:$0xff]   ;;  %v1489_v58 = vld [vmem:[#allocation2 + $0x10] sm:$0xff] }
 0xe86   :  { %v1364_v43 = vpop.permute.xlu0 %1363 }
 0xe87   :  { %v4097_v61 = vadd.f32 %v1371_v59, %v1370_v60  ;;  %v1367_v50 = vpop.permute.xlu1 %1366 }
 0xe88   :  { %v1369_v63 = vsel %vm430_vm2, %v1364_v43, %v1367_v50 }
 0xe89   :  { %3493 = vtanh.f32 %v4097_v61 }
 0xe93   :  { %v3494_v62 = vpop.eup %3493 }
 0xe94   :  { %v1374_v32 = vmul.f32 %v3494_v62, %v1369_v63 }
 0xe96   :  { %v1375_v1 = vpack.c.bf16 %v1374_v32, %v1374_v32  ;;  %1376 = vst.msk [vmem:[#allocation2 + $0x18] sm:$0xff] %vm430_vm2, %v1374_v32 }
 0xe97   :  { %1377 = vst.msk [vmem:[#allocation2 + $0x8] sm:$0xff] %vm460_vm3, %v1374_v32  ;;  %v1497_v32 = vsub.s32 3, %v3769_v26 }
 0xe98   :  { %3065 = vmatmul.mubr.msk.bf16.vlgmr.msra.gmra.mrb[32].mxu0 %vm79_vm1, %v1375_v1  ;;  %v4222_v1 = vld [vmem:[%s4614_s3] sm:$0xff] }
 0xe99   :  { %1685 = vmatprep.mubr.bf16.mxu0 %v3610_v24  ;;  %1654 = vmatpush1.bf16.msra.mxu0 %v4125_v9 }
 0xe9a   :  { %1655 = vmatprep.subr.bf16.mxu0 %v4139_v13 }
 0xe9d   :  { %1656 = vmatpush1.bf16.msra.mxu0 %v4145_v16  ;;  %v1490_v57 = vld [vmem:[#allocation2 + $0x18] sm:$0xff] }
 0xe9e   :  { %1657 = vmatprep.subr.bf16.mxu0 %v4157_v15  ;;  %v1488_v54 = vld [vmem:[#allocation2 + $0x8] sm:$0xff]  ;;  %v1493_v59 = vpack.c.bf16 %v1490_v57, %v1489_v58 }
 0xea1   :  { %1658 = vmatpush1.bf16.msra.mxu0 %v4163_v18 }
 0xea2   :  { %1659 = vmatprep.subr.bf16.mxu0 %v4172_v19 }
 0xea5   :  { %1660 = vmatpush1.bf16.msra.mxu0 %v4181_v46 }
 0xea6   :  { %1745 = vmatprep.subr.bf16.mxu0 %v4119_v8 }
 0xea8   :  { %1686 = vmatmul.mubr.bf16.vlgmr.msra.gmra.mrb[36].mxu0 %v3610_v24 }
 0xea9   :  { %1746 = vmatpush1.bf16.msra.mxu0 %v4125_v9  ;;  %1777 = vmatprep.mubr.bf16.mxu0 %v3610_v24 }
 0xeaa   :  { %1747 = vmatprep.subr.bf16.mxu0 %v4139_v13 }
 0xead   :  { %1748 = vmatpush1.bf16.msra.mxu0 %v4145_v16 }
 0xeae   :  { %1749 = vmatprep.subr.bf16.mxu0 %v4157_v15 }
 0xeb1   :  { %1750 = vmatpush1.bf16.msra.mxu0 %v4163_v18 }
 0xeb2   :  { %1751 = vmatprep.subr.bf16.mxu0 %v4172_v19 }
 0xeb5   :  { %1752 = vmatpush1.bf16.msra.mxu0 %v4181_v46 }
 0xeb6   :  { %1929 = vmatprep.subr.bf16.mxu0 %v4119_v8 }
 0xf6b   :  { %v1415_v2 = vpop.f32.mrb[32].mxu0 }
 0xf6c   :  { %v1422_v3 = vadd.f32 %v1415_v2, %v4025_v44  ;;  %v1417_v10 = vpop.f32.mrb[33].mxu0  ;;  %v3329_v44 = vld [vmem:[%s4613_s2 + $0x100] ss:$8 sps:$4 sm:$0xff]   ;;  %v1498_v2 = vrot.slane %v4222_v1, %v1497_v32 }
 0xf6d   :  { %v1423_v36 = vadd.f32 %v1417_v10, %v4013_v23  ;;  %v1419_v41 = vpop.f32.mrb[34].mxu0  ;;  %v3331_v23 = vld [vmem:[%s4613_s2 + $0x104] ss:$8 sps:$4 sm:$0xff]  }
 0xf6e   :  { %v3066_v4 = vmul.f32 -1.442695, %v1422_v3  ;;  %v1420_v42 = vpop.f32.mrb[35].mxu0  ;;  %1552 = vmatprep.subr.bf16.mxu1 %v3331_v23  ;;  %v4228_v3 = vld [vmem:[%s4614_s3 + $0x8] sm:$0xff] }
 0xf6f   :  { %v3067_v45 = vmul.f32 -1.442695, %v1423_v36  ;;  %1553 = vmatpush1.bf16.msra.mxu1 %v3329_v44  ;;  %v1502_v10 = vrot.slane %v4228_v3, %v1497_v32 }
 0xf70   :  { %3495 = vpow2.f32 %v3066_v4  ;;  %1554 = vmatprep.subr.bf16.mxu1 %v3337_v12 }
 0xf71   :  { %3497 = vpow2.f32 %v3067_v45 }
 0xf73   :  { %1555 = vmatpush1.bf16.msra.mxu1 %v3335_v11 }
 0xf74   :  { %1556 = vmatprep.subr.bf16.mxu1 %v3343_v14 }
 0xf77   :  { %1557 = vmatpush1.bf16.msra.mxu1 %v3341_v17 }
 0xf78   :  { %1558 = vmatprep.subr.bf16.mxu1 %v3349_v20 }
 0xf7a   :  { %v3496_v49 = vpop.eup %3495 }
 0xf7b   :  { %v3498_v38 = vpop.eup %3497  ;;  %v1430_v55 = vadd.f32 1.0, %v3496_v49  ;;  %1559 = vmatpush1.bf16.msra.mxu1 %v3347_v22  ;;  %v1687_v43 = vpop.f32.mrb[36].mxu0 }
 0xf7c   :  { %v1431_v5 = vadd.f32 1.0, %v3498_v38  ;;  %1837 = vmatprep.subr.bf16.mxu1 %v4119_v8  ;;  %v1689_v50 = vpop.f32.mrb[37].mxu0 }
 0xf7d   :  { %3499 = vrcp.f32 %v1430_v55  ;;  %v1691_v62 = vpop.f32.mrb[38].mxu0 }
 0xf7e   :  { %3501 = vrcp.f32 %v1431_v5  ;;  %v1692_v63 = vpop.f32.mrb[39].mxu0 }
 0xf87   :  { %v3500_v6 = vpop.eup %3499 }
 0xf88   :  { %v3502_v7 = vpop.eup %3501  ;;  %1446 = vrot.lane.b32.xlu0 %v3500_v6, %s3611_s19 }
 0xf89   :  { %1449 = vrot.lane.b32.xlu1 %v3502_v7, %s3613_s21 }
 0xf8c   :  { %1437 = vrot.lane.b32.xlu0 %v3502_v7, %s3612_s20 }
 0xf8d   :  { %1442 = vrot.lane.b32.xlu1 %v3500_v6, %s3613_s21 }
 0xf90   :  { %1455 = vrot.lane.b32.xlu0 %v3500_v6, %s3612_s20 }
 0xf91   :  { %1458 = vrot.lane.b32.xlu1 %v3502_v7, %s3611_s19 }
 0xffa   :  { %v1447_v21 = vpop.permute.xlu0 %1446 }
 0xffb   :  { %v1450_v25 = vpop.permute.xlu1 %1449 }
 0xffc   :  { %v1452_v29 = vsel %vm430_vm2, %v1447_v21, %v1450_v25 }
 0xffd   :  { %v1453_v30 = vmul.f32 2.0, %v1452_v29 }
 0xffe   :  { %v1438_v28 = vpop.permute.xlu0 %1437 }
 0xfff   :  { %v3068_v33 = vadd.f32 -1.0, %v1453_v30  ;;  %v1440_v48 = vsel %vm430_vm2, %v3500_v6, %v1438_v28  ;;  %v1443_v34 = vpop.permute.xlu1 %1442 }
0x1000   :  { %v1445_v35 = vsel %vm430_vm2, %v1443_v34, %v3502_v7 }
0x1001   :  { %v1463_v37 = vmul.f32 %v3068_v33, %v1440_v48  ;;  %v1462_v39 = vmul.f32 %v1445_v35, %v4097_v61 }
0x1002   :  { %v1456_v51 = vpop.permute.xlu0 %1455 }
0x1003   :  { %v1464_v47 = vadd.f32 %v1463_v37, %v1462_v39  ;;  %v1459_v27 = vpop.permute.xlu1 %1458 }
0x1004   :  { %v1461_v53 = vsel %vm430_vm2, %v1456_v51, %v1459_v27 }
0x1005   :  { %3503 = vtanh.f32 %v1464_v47 }
0x100f   :  { %v3504_v31 = vpop.eup %3503 }
0x1010   :  { %v1466_v40 = vmul.f32 %v3504_v31, %v1461_v53 }
0x1012   :  { %1467 = vst.msk [vmem:[#allocation2 + $0x20] sm:$0xff] %vm430_vm2, %v1466_v40 }
0x1013   :  { %1468 = vst.msk [vmem:[#allocation2] sm:$0xff] %vm460_vm3, %v1466_v40 }
0x1019   :  { %v1491_v60 = vld [vmem:[#allocation2 + $0x20] sm:$0xff] }
0x101a   :  { %v1487_v52 = vld [vmem:[#allocation2] sm:$0xff]  ;;  %v1494_v61 = vpack.c.bf16 %v1491_v60, %v1491_v60 }
0x101b   :  { %v1492_v56 = vpack.c.bf16 %v1488_v54, %v1487_v52 }
0x101d   :  { %3093 = vmatmul.mubr.msk.bf16.vlgmr.msra.gmra.mrb[40].mxu1 %vm79_vm1, %v1492_v56 }
0x101e   :  { %1594 = vmatprep.mubr.bf16.mxu1 %v3610_v24  ;;  %1838 = vmatpush1.bf16.msra.mxu1 %v4125_v9 }
0x101f   :  { %1839 = vmatprep.subr.bf16.mxu1 %v4139_v13 }
0x1022   :  { %1840 = vmatpush1.bf16.msra.mxu1 %v4145_v16 }
0x1023   :  { %1841 = vmatprep.subr.bf16.mxu1 %v4157_v15 }
0x1025   :  { %3094 = vmatmul.mubr.msk.bf16.gmra.mrb[44].mxu1 %vm79_vm1, %v1493_v59 }
0x1026   :  { %1604 = vmatprep.mubr.bf16.mxu1 %v3610_v24  ;;  %1842 = vmatpush1.bf16.msra.mxu1 %v4163_v18 }
0x1027   :  { %1843 = vmatprep.subr.bf16.mxu1 %v4172_v19 }
0x102a   :  { %1844 = vmatpush1.bf16.msra.mxu1 %v4181_v46 }
0x102b   :  { %2021 = vmatprep.subr.bf16.mxu1 %v4119_v8 }
0x102d   :  { %3095 = vmatmul.mubr.msk.bf16.gmra.mrb[48].mxu1 %vm79_vm1, %v1494_v61 }
0x102e   :  { %1869 = vmatprep.mubr.bf16.mxu1 %v3610_v24 }
0x10f0   :  { %v1586_v36 = vpop.f32.mrb[40].mxu1 }
0x10f1   :  { %v1587_v41 = vadd.f32 %v1586_v36, %v1498_v2  ;;  %v1588_v4 = vpop.f32.mrb[41].mxu1 }
0x10f2   :  { %v4231_v42 = vadd.f32 %v1588_v4, %v1502_v10  ;;  %v1590_v45 = vpop.f32.mrb[42].mxu1 }
0x10f3   :  { %v4233_v49 = vadd.f32 %v1590_v45, %v1498_v2  ;;  %v1694_v38 = vadd.f32 %v1687_v43, %v1587_v41  ;;  %v1592_v55 = vpop.f32.mrb[43].mxu1 }
0x10f4   :  { %v4235_v5 = vadd.f32 %v1592_v55, %v1502_v10 }
0x10f5   :  { %v3104_v6 = vmul.f32 -1.442695, %v1694_v38 }
0x10f7   :  { %3505 = vpow2.f32 %v3104_v6 }
0x10f8   :  { %v1596_v7 = vpop.f32.mrb[44].mxu1 }
0x10f9   :  { %v4237_v23 = vadd.f32 %v1596_v7, %v1498_v2  ;;  %v1598_v44 = vpop.f32.mrb[45].mxu1 }
0x10fa   :  { %v4239_v8 = vadd.f32 %v1598_v44, %v1502_v10  ;;  %v1600_v12 = vpop.f32.mrb[46].mxu1 }
0x10fb   :  { %v4241_v11 = vadd.f32 %v1600_v12, %v1498_v2  ;;  %v1602_v17 = vpop.f32.mrb[47].mxu1 }
0x10fc   :  { %v1603_v14 = vadd.f32 %v1602_v17, %v1502_v10 }
0x1100   :  { %v1606_v20 = vpop.f32.mrb[48].mxu1 }
0x1101   :  { %v3506_v22 = vpop.eup %3505  ;;  %v4243_v21 = vadd.f32 %v1606_v20, %v1498_v2  ;;  %v1608_v25 = vpop.f32.mrb[49].mxu1 }
0x1102   :  { %v1702_v29 = vadd.f32 1.0, %v3506_v22  ;;  %v1609_v30 = vadd.f32 %v1608_v25, %v1502_v10  ;;  %v1610_v28 = vpop.f32.mrb[50].mxu1 }
0x1103   :  { %v1611_v33 = vpop.f32.mrb[51].mxu1 }
0x1104   :  { %3507 = vrcp.f32 %v1702_v29  ;;  %v1695_v48 = vadd.f32 %v1689_v50, %v1609_v30 }
0x1106   :  { %v3105_v34 = vmul.f32 -1.442695, %v1695_v48 }
0x1108   :  { %3509 = vpow2.f32 %v3105_v34 }
0x110e   :  { %v3508_v35 = vpop.eup %3507 }
0x110f   :  { %1718 = vrot.lane.b32.xlu0 %v3508_v35, %s3611_s19 }
0x1112   :  { %v3510_v37 = vpop.eup %3509 }
0x1113   :  { %v1703_v39 = vadd.f32 1.0, %v3510_v37 }
0x1115   :  { %3511 = vrcp.f32 %v1703_v39 }
0x111f   :  { %v3512_v47 = vpop.eup %3511 }
0x1120   :  { %1709 = vrot.lane.b32.xlu0 %v3512_v47, %s3612_s20  ;;  %1721 = vrot.lane.b32.xlu1 %v3512_v47, %s3613_s21 }
0x1124   :  { %1727 = vrot.lane.b32.xlu0 %v3508_v35, %s3612_s20  ;;  %1714 = vrot.lane.b32.xlu1 %v3508_v35, %s3613_s21 }
0x1128   :  { %1730 = vrot.lane.b32.xlu1 %v3512_v47, %s3611_s19 }
0x1181   :  { %v1719_v51 = vpop.permute.xlu0 %1718 }
0x1192   :  { %v1722_v27 = vpop.permute.xlu1 %1721  ;;  %v1710_v53 = vpop.permute.xlu0 %1709 }
0x1193   :  { %v1724_v31 = vsel %vm430_vm2, %v1719_v51, %v1722_v27  ;;  %v1712_v56 = vsel %vm430_vm2, %v3508_v35, %v1710_v53 }
0x1194   :  { %v1725_v40 = vmul.f32 2.0, %v1724_v31 }
0x1196   :  { %v3106_v52 = vadd.f32 -1.0, %v1725_v40  ;;  %v1715_v54 = vpop.permute.xlu1 %1714  ;;  %v1728_v43 = vpop.permute.xlu0 %1727 }
0x1197   :  { %v1717_v57 = vsel %vm430_vm2, %v1715_v54, %v3512_v47 }
0x1198   :  { %v1735_v58 = vmul.f32 %v3106_v52, %v1712_v56  ;;  %v1734_v59 = vmul.f32 0.0, %v1717_v57 }
0x119a   :  { %v1736_v60 = vadd.f32 %v1735_v58, %v1734_v59  ;;  %v1731_v61 = vpop.permute.xlu1 %1730 }
0x119b   :  { %v1733_v62 = vsel %vm430_vm2, %v1728_v43, %v1731_v61 }
0x119c   :  { %3513 = vtanh.f32 %v1736_v60 }
0x11a6   :  { %v3514_v50 = vpop.eup %3513 }
0x11a7   :  { %v1738_v63 = vmul.f32 %v3514_v50, %v1733_v62 }
0x11a9   :  { %v1739_v32 = vpack.c.bf16 %v1738_v63, %v1738_v63  ;;  %1740 = vst.msk [vmem:[#allocation3] sm:$0xff] %vm430_vm2, %v1738_v63 }
0x11aa   :  { %1741 = vst.msk [vmem:[#allocation3 + $0x20] sm:$0xff] %vm460_vm3, %v1738_v63 }
0x11ab   :  { %3107 = vmatmul.mubr.msk.bf16.vlgmr.msra.gmra.mrb[40].mxu0 %vm79_vm1, %v1739_v32 }
0x11ac   :  { %1930 = vmatpush1.bf16.msra.mxu0 %v4125_v9  ;;  %1961 = vmatprep.mubr.bf16.mxu0 %v3610_v24 }
0x11ad   :  { %1931 = vmatprep.subr.bf16.mxu0 %v4139_v13 }
0x11b0   :  { %1932 = vmatpush1.bf16.msra.mxu0 %v4145_v16 }
0x11b1   :  { %1933 = vmatprep.subr.bf16.mxu0 %v4157_v15 }
0x11b4   :  { %1934 = vmatpush1.bf16.msra.mxu0 %v4163_v18 }
0x11b5   :  { %1935 = vmatprep.subr.bf16.mxu0 %v4172_v19 }
0x11b8   :  { %1936 = vmatpush1.bf16.msra.mxu0 %v4181_v46 }
0x11b9   :  { %3236 = vmatprep.subr.bf16.mxu0 %v3608_v0 }
0x127e   :  { %v1779_v2 = vpop.f32.mrb[40].mxu0 }
0x127f   :  { %v1786_v10 = vadd.f32 %v1779_v2, %v4233_v49  ;;  %v1781_v36 = vpop.f32.mrb[41].mxu0 }
0x1280   :  { %v1787_v41 = vadd.f32 %v1781_v36, %v1603_v14  ;;  %v1783_v4 = vpop.f32.mrb[42].mxu0 }
0x1281   :  { %v3108_v45 = vmul.f32 -1.442695, %v1786_v10  ;;  %v1784_v38 = vpop.f32.mrb[43].mxu0 }
0x1282   :  { %v3109_v55 = vmul.f32 -1.442695, %v1787_v41 }
0x1283   :  { %3515 = vpow2.f32 %v3108_v45 }
0x1284   :  { %3517 = vpow2.f32 %v3109_v55 }
0x128d   :  { %v3516_v6 = vpop.eup %3515 }
0x128e   :  { %v3518_v7 = vpop.eup %3517  ;;  %v1794_v44 = vadd.f32 1.0, %v3516_v6 }
0x128f   :  { %v1795_v12 = vadd.f32 1.0, %v3518_v7 }
0x1290   :  { %3519 = vrcp.f32 %v1794_v44 }
0x1291   :  { %3521 = vrcp.f32 %v1795_v12 }
0x129a   :  { %v3520_v17 = vpop.eup %3519 }
0x129b   :  { %v3522_v20 = vpop.eup %3521  ;;  %1810 = vrot.lane.b32.xlu0 %v3520_v17, %s3611_s19 }
0x129c   :  { %1813 = vrot.lane.b32.xlu1 %v3522_v20, %s3613_s21 }
0x129f   :  { %1801 = vrot.lane.b32.xlu0 %v3522_v20, %s3612_s20 }
0x12a0   :  { %1806 = vrot.lane.b32.xlu1 %v3520_v17, %s3613_s21 }
0x12a3   :  { %1819 = vrot.lane.b32.xlu0 %v3520_v17, %s3612_s20 }
0x12a4   :  { %1822 = vrot.lane.b32.xlu1 %v3522_v20, %s3611_s19 }
0x130d   :  { %v1811_v49 = vpop.permute.xlu0 %1810 }
0x130e   :  { %v1814_v14 = vpop.permute.xlu1 %1813 }
0x130f   :  { %v1816_v22 = vsel %vm430_vm2, %v1811_v49, %v1814_v14 }
0x1310   :  { %v1817_v25 = vmul.f32 2.0, %v1816_v22 }
0x1311   :  { %v1802_v29 = vpop.permute.xlu0 %1801 }
0x1312   :  { %v3110_v30 = vadd.f32 -1.0, %v1817_v25  ;;  %v1804_v28 = vsel %vm430_vm2, %v3520_v17, %v1802_v29  ;;  %v1807_v33 = vpop.permute.xlu1 %1806 }
0x1313   :  { %v1809_v48 = vsel %vm430_vm2, %v1807_v33, %v3522_v20 }
0x1314   :  { %v1827_v34 = vmul.f32 %v3110_v30, %v1804_v28  ;;  %v1826_v35 = vmul.f32 %v1809_v48, %v1736_v60 }
0x1315   :  { %v1820_v39 = vpop.permute.xlu0 %1819 }
0x1316   :  { %v1828_v37 = vadd.f32 %v1827_v34, %v1826_v35  ;;  %v1823_v47 = vpop.permute.xlu1 %1822 }
0x1317   :  { %v1825_v27 = vsel %vm430_vm2, %v1820_v39, %v1823_v47 }
0x1318   :  { %3523 = vtanh.f32 %v1828_v37 }
0x1322   :  { %v3524_v51 = vpop.eup %3523 }
0x1323   :  { %v1830_v31 = vmul.f32 %v3524_v51, %v1825_v27 }
0x1325   :  { %v1831_v53 = vpack.c.bf16 %v1830_v31, %v1830_v31  ;;  %1832 = vst.msk [vmem:[#allocation3 + $0x8] sm:$0xff] %vm430_vm2, %v1830_v31 }
0x1326   :  { %1833 = vst.msk [vmem:[#allocation3 + $0x18] sm:$0xff] %vm460_vm3, %v1830_v31 }
0x1327   :  { %3111 = vmatmul.mubr.msk.bf16.vlgmr.msra.gmra.mrb[52].mxu1 %vm79_vm1, %v1831_v53 }
0x1328   :  { %2022 = vmatpush1.bf16.msra.mxu1 %v4125_v9  ;;  %2053 = vmatprep.mubr.bf16.mxu1 %v3610_v24 }
0x1329   :  { %2023 = vmatprep.subr.bf16.mxu1 %v4139_v13 }
0x132c   :  { %2024 = vmatpush1.bf16.msra.mxu1 %v4145_v16 }
0x132d   :  { %2025 = vmatprep.subr.bf16.mxu1 %v4157_v15 }
0x1330   :  { %2026 = vmatpush1.bf16.msra.mxu1 %v4163_v18 }
0x1331   :  { %2027 = vmatprep.subr.bf16.mxu1 %v4172_v19 }
0x1334   :  { %2028 = vmatpush1.bf16.msra.mxu1 %v4181_v46 }
0x13fa   :  { %v1871_v40 = vpop.f32.mrb[52].mxu1 }
0x13fb   :  { %v1878_v52 = vadd.f32 %v1871_v40, %v4237_v23  ;;  %v1873_v54 = vpop.f32.mrb[53].mxu1 }
0x13fc   :  { %v1879_v9 = vadd.f32 %v1873_v54, %v4239_v8  ;;  %v1875_v56 = vpop.f32.mrb[54].mxu1 }
0x13fd   :  { %v3112_v57 = vmul.f32 -1.442695, %v1878_v52  ;;  %v1876_v58 = vpop.f32.mrb[55].mxu1 }
0x13fe   :  { %v3113_v13 = vmul.f32 -1.442695, %v1879_v9 }
0x13ff   :  { %3525 = vpow2.f32 %v3112_v57 }
0x1400   :  { %3527 = vpow2.f32 %v3113_v13 }
0x1409   :  { %v3526_v16 = vpop.eup %3525 }
0x140a   :  { %v3528_v15 = vpop.eup %3527  ;;  %v1886_v59 = vadd.f32 1.0, %v3526_v16 }
0x140b   :  { %v1887_v18 = vadd.f32 1.0, %v3528_v15 }
0x140c   :  { %3529 = vrcp.f32 %v1886_v59 }
0x140d   :  { %3531 = vrcp.f32 %v1887_v18 }
0x1416   :  { %v3530_v19 = vpop.eup %3529 }
0x1417   :  { %v3532_v46 = vpop.eup %3531  ;;  %1902 = vrot.lane.b32.xlu0 %v3530_v19, %s3611_s19 }
0x1418   :  { %1905 = vrot.lane.b32.xlu1 %v3532_v46, %s3613_s21 }
0x141b   :  { %1893 = vrot.lane.b32.xlu0 %v3532_v46, %s3612_s20 }
0x141c   :  { %1898 = vrot.lane.b32.xlu1 %v3530_v19, %s3613_s21 }
0x141f   :  { %1911 = vrot.lane.b32.xlu0 %v3530_v19, %s3612_s20 }
0x1420   :  { %1914 = vrot.lane.b32.xlu1 %v3532_v46, %s3611_s19 }
0x1489   :  { %v1903_v23 = vpop.permute.xlu0 %1902 }
0x148a   :  { %v1906_v8 = vpop.permute.xlu1 %1905 }
0x148b   :  { %v1908_v60 = vsel %vm430_vm2, %v1903_v23, %v1906_v8 }
0x148c   :  { %v1909_v61 = vmul.f32 2.0, %v1908_v60 }
0x148d   :  { %v1894_v43 = vpop.permute.xlu0 %1893 }
0x148e   :  { %v3114_v50 = vadd.f32 -1.0, %v1909_v61  ;;  %v1896_v62 = vsel %vm430_vm2, %v3530_v19, %v1894_v43  ;;  %v1899_v63 = vpop.permute.xlu1 %1898 }
0x148f   :  { %v1901_v32 = vsel %vm430_vm2, %v1899_v63, %v3532_v46  ;;  %v3354_v63 = vld [vmem:[%s4613_s2 + $0x180] ss:$8 sps:$4 sm:$0xff]  }
0x1490   :  { %v1919_v2 = vmul.f32 %v3114_v50, %v1896_v62  ;;  %v1918_v10 = vmul.f32 %v1901_v32, %v1828_v37  ;;  %v3360_v32 = vld [vmem:[%s4613_s2 + $0x194] ss:$8 sps:$4 sm:$0xff]  }
0x1491   :  { %v1912_v41 = vpop.permute.xlu0 %1911 }
0x1492   :  { %v1920_v36 = vadd.f32 %v1919_v2, %v1918_v10  ;;  %v1915_v4 = vpop.permute.xlu1 %1914  ;;  %v3357_v2 = vld [vmem:[%s4615_s4 + $0x8] sm:$0xff]   ;;  %v3358_v10 = vld [vmem:[%s4613_s2 + $0x190] ss:$8 sps:$4 sm:$0xff]  }
0x1493   :  { %v1917_v38 = vsel %vm430_vm2, %v1912_v41, %v1915_v4  ;;  %v3362_v41 = vld [vmem:[%s4613_s2 + $0x1a0] ss:$8 sps:$4 sm:$0xff]   ;;  %v3364_v4 = vld [vmem:[%s4613_s2 + $0x1a4] ss:$8 sps:$4 sm:$0xff]  }
0x1494   :  { %3533 = vtanh.f32 %v1920_v36 }
0x149e   :  { %v3534_v45 = vpop.eup %3533 }
0x149f   :  { %v1922_v55 = vmul.f32 %v3534_v45, %v1917_v38  ;;  %v3368_v45 = vld [vmem:[%s4613_s2 + $0x1b4] ss:$8 sps:$4 sm:$0xff]  }
0x14a0   :  { %v3365_v38 = vld [vmem:[%s4615_s4 + $0x18] sm:$0xff]  }
0x14a1   :  { %v1923_v6 = vpack.c.bf16 %v1922_v55, %v1922_v55  ;;  %1924 = vst.msk [vmem:[#allocation3 + $0x10] sm:$0xff] %vm430_vm2, %v1922_v55 }
0x14a2   :  { %1925 = vst.msk [vmem:[#allocation3 + $0x10] sm:$0xff] %vm460_vm3, %v1922_v55  ;;  %v3366_v55 = vld [vmem:[%s4613_s2 + $0x1b0] ss:$8 sps:$4 sm:$0xff]  }
0x14a3   :  { %3115 = vmatmul.mubr.msk.bf16.vlgmr.msra.gmra.mrb[44].mxu0 %vm79_vm1, %v1923_v6  ;;  %v4375_v6 = vld [vmem:[%s4613_s2 + $0x1c4] ss:$8 sps:$4 sm:$0xff]  }
0x14a4   :  { %3244 = vmatprep.mubr.msk.bf16.mxu0 %vm3609_vm0, %v3608_v0 }
0x1576   :  { %v1963_v7 = vpop.f32.mrb[44].mxu0 }
0x1577   :  { %v1970_v44 = vadd.f32 %v1963_v7, %v4241_v11  ;;  %v1965_v12 = vpop.f32.mrb[45].mxu0 }
0x1578   :  { %v1971_v17 = vadd.f32 %v1965_v12, %v4235_v5  ;;  %v1967_v20 = vpop.f32.mrb[46].mxu0 }
0x1579   :  { %v3116_v49 = vmul.f32 -1.442695, %v1970_v44  ;;  %v1968_v14 = vpop.f32.mrb[47].mxu0 }
0x157a   :  { %v3117_v22 = vmul.f32 -1.442695, %v1971_v17 }
0x157b   :  { %3535 = vpow2.f32 %v3116_v49 }
0x157c   :  { %3537 = vpow2.f32 %v3117_v22 }
0x1585   :  { %v3536_v25 = vpop.eup %3535 }
0x1586   :  { %v3538_v29 = vpop.eup %3537  ;;  %v1978_v30 = vadd.f32 1.0, %v3536_v25 }
0x1587   :  { %v1979_v28 = vadd.f32 1.0, %v3538_v29 }
0x1588   :  { %3539 = vrcp.f32 %v1978_v30 }
0x1589   :  { %3541 = vrcp.f32 %v1979_v28 }
0x1592   :  { %v3540_v33 = vpop.eup %3539 }
0x1593   :  { %v3542_v48 = vpop.eup %3541  ;;  %1994 = vrot.lane.b32.xlu0 %v3540_v33, %s3611_s19 }
0x1594   :  { %1997 = vrot.lane.b32.xlu1 %v3542_v48, %s3613_s21 }
0x1597   :  { %1985 = vrot.lane.b32.xlu0 %v3542_v48, %s3612_s20 }
0x1598   :  { %1990 = vrot.lane.b32.xlu1 %v3540_v33, %s3613_s21 }
0x159b   :  { %2003 = vrot.lane.b32.xlu0 %v3540_v33, %s3612_s20 }
0x159c   :  { %2006 = vrot.lane.b32.xlu1 %v3542_v48, %s3611_s19 }
0x1605   :  { %v1995_v5 = vpop.permute.xlu0 %1994 }
0x1606   :  { %v1998_v11 = vpop.permute.xlu1 %1997 }
0x1607   :  { %v2000_v34 = vsel %vm430_vm2, %v1995_v5, %v1998_v11 }
0x1608   :  { %v2001_v35 = vmul.f32 2.0, %v2000_v34 }
0x1609   :  { %v1986_v37 = vpop.permute.xlu0 %1985 }
0x160a   :  { %v3118_v39 = vadd.f32 -1.0, %v2001_v35  ;;  %v1988_v47 = vsel %vm430_vm2, %v3540_v33, %v1986_v37  ;;  %v1991_v51 = vpop.permute.xlu1 %1990 }
0x160b   :  { %v1993_v27 = vsel %vm430_vm2, %v1991_v51, %v3542_v48  ;;  %v4394_v51 = vld [vmem:[%s4613_s2 + $0x1d4] ss:$8 sps:$4 sm:$0xff]  }
0x160c   :  { %v2011_v31 = vmul.f32 %v3118_v39, %v1988_v47  ;;  %v2010_v53 = vmul.f32 %v1993_v27, %v1920_v36  ;;  %v3361_v36 = vld [vmem:[%s4615_s4 + $0x10] sm:$0xff]   ;;  %v4389_v39 = vld [vmem:[%s4613_s2 + $0x1c0] ss:$8 sps:$4 sm:$0xff]  }
0x160d   :  { %v2004_v52 = vpop.permute.xlu0 %2003  ;;  %v4402_v27 = vld [vmem:[%s4613_s2 + $0x1d0] ss:$8 sps:$4 sm:$0xff]  }
0x160e   :  { %v4317_v40 = vadd.f32 %v2011_v31, %v2010_v53  ;;  %v2007_v54 = vpop.permute.xlu1 %2006  ;;  %v4411_v31 = vld [vmem:[%s4613_s2 + $0x1e4] ss:$8 sps:$4 sm:$0xff]  }
0x160f   :  { %v2009_v56 = vsel %vm430_vm2, %v2004_v52, %v2007_v54  ;;  %v4419_v52 = vld [vmem:[%s4613_s2 + $0x1e0] ss:$8 sps:$4 sm:$0xff]  }
0x1610   :  { %3543 = vtanh.f32 %v4317_v40 }
0x161a   :  { %v3544_v9 = vpop.eup %3543 }
0x161b   :  { %v2014_v57 = vmul.f32 %v3544_v9, %v2009_v56  ;;  %v4425_v9 = vld [vmem:[%s4613_s2 + $0x1f4] ss:$8 sps:$4 sm:$0xff]   ;;  %v4436_v56 = vld [vmem:[%s4613_s2 + $0x1f0] ss:$8 sps:$4 sm:$0xff]  }
0x161d   :  { %v2015_v58 = vpack.c.bf16 %v2014_v57, %v2014_v57  ;;  %2016 = vst.msk [vmem:[#allocation3 + $0x18] sm:$0xff] %vm430_vm2, %v2014_v57 }
0x161e   :  { %2017 = vst.msk [vmem:[#allocation3 + $0x8] sm:$0xff] %vm460_vm3, %v2014_v57 }
0x161f   :  { %3119 = vmatmul.mubr.msk.bf16.vlgmr.msra.gmra.mrb[56].mxu1 %vm79_vm1, %v2015_v58 }
0x1620   :  { %2338 = vmatprep.mubr.bf16.mxu1 %v3610_v24 }
0x1624   :  { %v2112_v53 = vld [vmem:[#allocation3 + $0x18] sm:$0xff] }
0x1625   :  { %v2110_v37 = vld [vmem:[#allocation3 + $0x8] sm:$0xff] }
0x16f2   :  { %v2055_v13 = vpop.f32.mrb[56].mxu1 }
0x16f3   :  { %v2062_v16 = vadd.f32 %v2055_v13, %v4243_v21  ;;  %v2057_v15 = vpop.f32.mrb[57].mxu1  ;;  %v3353_v21 = vld [vmem:[%s4615_s4] sm:$0xff]   ;;  %v2127_v13 = vsub.s32 5, %v3769_v26 }
0x16f4   :  { %v2063_v59 = vadd.f32 %v2057_v15, %v4231_v42  ;;  %v2059_v18 = vpop.f32.mrb[58].mxu1  ;;  %v3356_v42 = vld [vmem:[%s4613_s2 + $0x184] ss:$8 sps:$4 sm:$0xff]   ;;  %3237 = vmatpush3.bf16.msra.mxu0 %v3353_v21 }
0x16f5   :  { %v3120_v19 = vmul.f32 -1.442695, %v2062_v16  ;;  %v2060_v46 = vpop.f32.mrb[59].mxu1  ;;  %2306 = vmatprep.subr.bf16.mxu1 %v3356_v42  ;;  %3238 = vmatprep.subr.bf16.mxu0 %v3608_v0  ;;  %v2251_v16 = vsub.s32 4, %v3769_v26  ;;  %v2128_v15 = vrot.slane %v4222_v1, %v2127_v13 }
0x16f6   :  { %v3121_v23 = vmul.f32 -1.442695, %v2063_v59  ;;  %2307 = vmatpush1.bf16.msra.mxu1 %v3354_v63 }
0x16f7   :  { %3545 = vpow2.f32 %v3120_v19  ;;  %2308 = vmatprep.subr.bf16.mxu1 %v3360_v32  ;;  %v2256_v59 = vrot.slane %v4228_v3, %v2251_v16 }
0x16f8   :  { %3547 = vpow2.f32 %v3121_v23  ;;  %3239 = vmatpush3.bf16.msra.mxu0 %v3357_v2  ;;  %v2252_v23 = vrot.slane %v4222_v1, %v2251_v16 }
0x16f9   :  { %3240 = vmatprep.subr.bf16.mxu0 %v3608_v0 }
0x16fa   :  { %2309 = vmatpush1.bf16.msra.mxu1 %v3358_v10 }
0x16fb   :  { %2310 = vmatprep.subr.bf16.mxu1 %v3364_v4 }
0x16fc   :  { %3241 = vmatpush3.bf16.msra.mxu0 %v3361_v36 }
0x16fd   :  { %3242 = vmatprep.subr.bf16.mxu0 %v3608_v0 }
0x16fe   :  { %2311 = vmatpush1.bf16.msra.mxu1 %v3362_v41 }
0x16ff   :  { %2312 = vmatprep.subr.bf16.mxu1 %v3368_v45 }
0x1700   :  { %3243 = vmatpush3.bf16.msra.mxu0 %v3365_v38 }
0x1701   :  { %v3546_v8 = vpop.eup %3545  ;;  %2407 = vmatprep.subr.bf16.mxu0 %v4375_v6 }
0x1702   :  { %v3548_v60 = vpop.eup %3547  ;;  %v2070_v61 = vadd.f32 1.0, %v3546_v8  ;;  %2313 = vmatpush1.bf16.msra.mxu1 %v3366_v55 }
0x1703   :  { %v2071_v43 = vadd.f32 1.0, %v3548_v60  ;;  %2499 = vmatprep.subr.bf16.mxu1 %v4375_v6 }
0x1704   :  { %3549 = vrcp.f32 %v2070_v61 }
0x1705   :  { %3551 = vrcp.f32 %v2071_v43 }
0x170e   :  { %v3550_v50 = vpop.eup %3549 }
0x170f   :  { %v3552_v62 = vpop.eup %3551  ;;  %2086 = vrot.lane.b32.xlu0 %v3550_v50, %s3611_s19 }
0x1710   :  { %2089 = vrot.lane.b32.xlu1 %v3552_v62, %s3613_s21 }
0x1713   :  { %2077 = vrot.lane.b32.xlu0 %v3552_v62, %s3612_s20 }
0x1714   :  { %2082 = vrot.lane.b32.xlu1 %v3550_v50, %s3613_s21 }
0x1717   :  { %2095 = vrot.lane.b32.xlu0 %v3550_v50, %s3612_s20 }
0x1718   :  { %2098 = vrot.lane.b32.xlu1 %v3552_v62, %s3611_s19 }
0x1781   :  { %v2087_v7 = vpop.permute.xlu0 %2086 }
0x1782   :  { %v2090_v44 = vpop.permute.xlu1 %2089 }
0x1783   :  { %v2092_v12 = vsel %vm430_vm2, %v2087_v7, %v2090_v44 }
0x1784   :  { %v2093_v17 = vmul.f32 2.0, %v2092_v12 }
0x1785   :  { %v2078_v20 = vpop.permute.xlu0 %2077 }
0x1786   :  { %v3122_v49 = vadd.f32 -1.0, %v2093_v17  ;;  %v2080_v14 = vsel %vm430_vm2, %v3550_v50, %v2078_v20  ;;  %v2083_v22 = vpop.permute.xlu1 %2082 }
0x1787   :  { %v2085_v25 = vsel %vm430_vm2, %v2083_v22, %v3552_v62 }
0x1788   :  { %v2103_v29 = vmul.f32 %v3122_v49, %v2080_v14  ;;  %v2102_v30 = vmul.f32 %v2085_v25, %v4317_v40  ;;  %v2111_v40 = vld [vmem:[#allocation3 + $0x10] sm:$0xff] }
0x1789   :  { %v2096_v33 = vpop.permute.xlu0 %2095  ;;  %v2115_v54 = vpack.c.bf16 %v2112_v53, %v2111_v40 }
0x178a   :  { %v2104_v28 = vadd.f32 %v2103_v29, %v2102_v30  ;;  %v2099_v48 = vpop.permute.xlu1 %2098 }
0x178b   :  { %v2101_v11 = vsel %vm430_vm2, %v2096_v33, %v2099_v48 }
0x178c   :  { %3553 = vtanh.f32 %v2104_v28 }
0x1796   :  { %v3554_v5 = vpop.eup %3553 }
0x1797   :  { %v2106_v34 = vmul.f32 %v3554_v5, %v2101_v11 }
0x1799   :  { %2107 = vst.msk [vmem:[#allocation3 + $0x20] sm:$0xff] %vm430_vm2, %v2106_v34 }
0x179a   :  { %2108 = vst.msk [vmem:[#allocation3] sm:$0xff] %vm460_vm3, %v2106_v34 }
0x17a0   :  { %v2113_v57 = vld [vmem:[#allocation3 + $0x20] sm:$0xff] }
0x17a1   :  { %v2109_v35 = vld [vmem:[#allocation3] sm:$0xff]  ;;  %v2116_v58 = vpack.c.bf16 %v2113_v57, %v2113_v57 }
0x17a2   :  { %v2114_v47 = vpack.c.bf16 %v2110_v37, %v2109_v35 }
0x17a4   :  { %3245 = vmatmul.mubr.msk.bf16.vlgmr.msra.gmra.mrb[48].mxu0 %vm79_vm1, %v2114_v47  ;;  %3154 = vmatmul.mubr.msk.bf16.vlgmr.msra.gmra.mrb[60].mxu1 %vm79_vm1, %v2114_v47 }
0x17a5   :  { %2408 = vmatpush1.bf16.msra.mxu0 %v4389_v39  ;;  %3248 = vmatprep.mubr.msk.bf16.mxu0 %vm3609_vm0, %v3608_v0 }
0x17a6   :  { %2409 = vmatprep.subr.bf16.mxu0 %v4394_v51  ;;  %2348 = vmatprep.mubr.bf16.mxu1 %v3610_v24 }
0x17a7   :  { %2500 = vmatpush1.bf16.msra.mxu1 %v4389_v39 }
0x17a8   :  { %2501 = vmatprep.subr.bf16.mxu1 %v4394_v51 }
0x17a9   :  { %2410 = vmatpush1.bf16.msra.mxu0 %v4402_v27 }
0x17aa   :  { %2411 = vmatprep.subr.bf16.mxu0 %v4411_v31 }
0x17ab   :  { %2502 = vmatpush1.bf16.msra.mxu1 %v4402_v27 }
0x17ac   :  { %3249 = vmatmul.mubr.msk.bf16.gmra.mrb[52].mxu0 %vm79_vm1, %v2115_v54  ;;  %3155 = vmatmul.mubr.msk.bf16.gmra.mrb[64].mxu1 %vm79_vm1, %v2115_v54 }
0x17ad   :  { %2412 = vmatpush1.bf16.msra.mxu0 %v4419_v52  ;;  %3252 = vmatprep.mubr.msk.bf16.mxu0 %vm3609_vm0, %v3608_v0 }
0x17ae   :  { %2358 = vmatprep.mubr.bf16.mxu1 %v3610_v24  ;;  %2413 = vmatprep.subr.bf16.mxu0 %v4425_v9 }
0x17af   :  { %2503 = vmatprep.subr.bf16.mxu1 %v4411_v31 }
0x17b0   :  { %2504 = vmatpush1.bf16.msra.mxu1 %v4419_v52 }
0x17b1   :  { %2414 = vmatpush1.bf16.msra.mxu0 %v4436_v56  ;;  %2505 = vmatprep.subr.bf16.mxu1 %v4425_v9 }
0x17b2   :  { %2591 = vmatprep.subr.bf16.mxu0 %v4375_v6 }
0x17b4   :  { %3253 = vmatmul.mubr.msk.bf16.gmra.mrb[56].mxu0 %vm79_vm1, %v2116_v58  ;;  %3156 = vmatmul.mubr.msk.bf16.gmra.mrb[68].mxu1 %vm79_vm1, %v2116_v58 }
0x17b5   :  { %2439 = vmatprep.mubr.bf16.mxu0 %v3610_v24  ;;  %2506 = vmatpush1.bf16.msra.mxu1 %v4436_v56 }
0x17b6   :  { %2531 = vmatprep.mubr.bf16.mxu1 %v3610_v24  ;;  %2683 = vmatprep.subr.bf16.mxu1 %v4375_v6 }
0x17bc   :  { %2440 = vmatmul.mubr.bf16.vlgmr.msra.gmra.mrb[60].mxu0 %v3610_v24 }
0x17bd   :  { %2592 = vmatpush1.bf16.msra.mxu0 %v4389_v39  ;;  %2623 = vmatprep.mubr.bf16.mxu0 %v3610_v24 }
0x17be   :  { %2593 = vmatprep.subr.bf16.mxu0 %v4394_v51 }
0x17c1   :  { %2594 = vmatpush1.bf16.msra.mxu0 %v4402_v27 }
0x17c2   :  { %2595 = vmatprep.subr.bf16.mxu0 %v4411_v31 }
0x17c5   :  { %2596 = vmatpush1.bf16.msra.mxu0 %v4419_v52 }
0x17c6   :  { %2597 = vmatprep.subr.bf16.mxu0 %v4425_v9 }
0x17c9   :  { %2598 = vmatpush1.bf16.msra.mxu0 %v4436_v56 }
0x17ca   :  { %2775 = vmatprep.subr.bf16.mxu0 %v4375_v6 }
0x1877   :  { %v2196_v18 = vpop.f32.mrb[48].mxu0  ;;  %v2340_v19 = vpop.f32.mrb[60].mxu1 }
0x1878   :  { %v2197_v46 = vadd.f32 %v2196_v18, %v2128_v15  ;;  %v3246_v8 = vpop.f32.mrb[49].mxu0  ;;  %v2342_v60 = vpop.f32.mrb[61].mxu1  ;;  %v2341_v48 = vadd.f32 %v2340_v19, %v2252_v23 }
0x1879   :  { %v4466_v61 = vadd.f32 %v2342_v60, %v2256_v59  ;;  %v2199_v43 = vpop.f32.mrb[50].mxu0  ;;  %v2344_v50 = vpop.f32.mrb[62].mxu1 }
0x187a   :  { %2218 = vst [vmem:[%s4616_s5] sm:$0xff] %v2197_v46  ;;  %v2200_v62 = vadd.f32 %v2199_v43, %v2128_v15  ;;  %v4471_v42 = vadd.f32 %v2344_v50, %v2252_v23  ;;  %v3247_v21 = vpop.f32.mrb[51].mxu0  ;;  %v2346_v3 = vpop.f32.mrb[63].mxu1 }
0x187b   :  { %v4473_v63 = vadd.f32 %v2346_v3, %v2256_v59 }
0x187c   :  { %2219 = vst [vmem:[%s4616_s5 + $0x8] sm:$0xff] %v2200_v62 }
0x187f   :  { %v2204_v1 = vpop.f32.mrb[52].mxu0  ;;  %v2350_v32 = vpop.f32.mrb[64].mxu1 }
0x1880   :  { %v2205_v2 = vadd.f32 %v2204_v1, %v2128_v15  ;;  %v4478_v10 = vadd.f32 %v2350_v32, %v2252_v23  ;;  %v3250_v36 = vpop.f32.mrb[53].mxu0  ;;  %v2352_v41 = vpop.f32.mrb[65].mxu1 }
0x1881   :  { %v4480_v4 = vadd.f32 %v2352_v41, %v2256_v59  ;;  %v2207_v45 = vpop.f32.mrb[54].mxu0  ;;  %v2354_v38 = vpop.f32.mrb[66].mxu1 }
0x1882   :  { %2220 = vst [vmem:[%s4616_s5 + $0x10] sm:$0xff] %v2205_v2  ;;  %v2208_v55 = vadd.f32 %v2207_v45, %v2128_v15  ;;  %v4485_v6 = vadd.f32 %v2354_v38, %v2252_v23  ;;  %v3251_v7 = vpop.f32.mrb[55].mxu0  ;;  %v2356_v44 = vpop.f32.mrb[67].mxu1 }
0x1883   :  { %v4487_v12 = vadd.f32 %v2356_v44, %v2256_v59 }
0x1884   :  { %2221 = vst [vmem:[%s4616_s5 + $0x18] sm:$0xff] %v2208_v55 }
0x1887   :  { %v2212_v17 = vpop.f32.mrb[56].mxu0  ;;  %v2360_v20 = vpop.f32.mrb[68].mxu1 }
0x1888   :  { %v2213_v49 = vadd.f32 %v2212_v17, %v2128_v15  ;;  %v4492_v14 = vadd.f32 %v2360_v20, %v2252_v23  ;;  %v3254_v22 = vpop.f32.mrb[57].mxu0  ;;  %v2362_v25 = vpop.f32.mrb[69].mxu1 }
0x1889   :  { %v2215_v29 = vpop.f32.mrb[58].mxu0  ;;  %v2364_v30 = vpop.f32.mrb[70].mxu1  ;;  %v2363_v5 = vadd.f32 %v2362_v25, %v2256_v59 }
0x188a   :  { %2222 = vst [vmem:[%s4616_s5 + $0x20] sm:$0xff] %v2213_v49  ;;  %v3255_v28 = vpop.f32.mrb[59].mxu0  ;;  %v2365_v33 = vpop.f32.mrb[71].mxu1 }
0x188f   :  { %v2441_v11 = vpop.f32.mrb[60].mxu0 }
0x1890   :  { %v2448_v34 = vadd.f32 %v2441_v11, %v2341_v48  ;;  %v2443_v35 = vpop.f32.mrb[61].mxu0 }
0x1891   :  { %v2449_v37 = vadd.f32 %v2443_v35, %v2363_v5  ;;  %v2445_v47 = vpop.f32.mrb[62].mxu0 }
0x1892   :  { %v3165_v53 = vmul.f32 -1.442695, %v2448_v34  ;;  %v2446_v40 = vpop.f32.mrb[63].mxu0 }
0x1893   :  { %v3166_v54 = vmul.f32 -1.442695, %v2449_v37 }
0x1894   :  { %3555 = vpow2.f32 %v3165_v53 }
0x1895   :  { %3557 = vpow2.f32 %v3166_v54 }
0x189e   :  { %v3556_v57 = vpop.eup %3555 }
0x189f   :  { %v3558_v58 = vpop.eup %3557  ;;  %v2456_v13 = vadd.f32 1.0, %v3556_v57 }
0x18a0   :  { %v2457_v16 = vadd.f32 1.0, %v3558_v58 }
0x18a1   :  { %3559 = vrcp.f32 %v2456_v13 }
0x18a2   :  { %3561 = vrcp.f32 %v2457_v16 }
0x18ab   :  { %v3560_v15 = vpop.eup %3559 }
0x18ac   :  { %v3562_v18 = vpop.eup %3561  ;;  %2472 = vrot.lane.b32.xlu0 %v3560_v15, %s3611_s19 }
0x18ad   :  { %2475 = vrot.lane.b32.xlu1 %v3562_v18, %s3613_s21 }
0x18b0   :  { %2463 = vrot.lane.b32.xlu0 %v3562_v18, %s3612_s20 }
0x18b1   :  { %2468 = vrot.lane.b32.xlu1 %v3560_v15, %s3613_s21 }
0x18b4   :  { %2481 = vrot.lane.b32.xlu0 %v3560_v15, %s3612_s20 }
0x18b5   :  { %2484 = vrot.lane.b32.xlu1 %v3562_v18, %s3611_s19 }
0x191e   :  { %v2473_v59 = vpop.permute.xlu0 %2472 }
0x191f   :  { %v2476_v19 = vpop.permute.xlu1 %2475 }
0x1920   :  { %v2478_v46 = vsel %vm430_vm2, %v2473_v59, %v2476_v19 }
0x1921   :  { %v2479_v23 = vmul.f32 2.0, %v2478_v46 }
0x1922   :  { %v2464_v8 = vpop.permute.xlu0 %2463 }
0x1923   :  { %v3167_v60 = vadd.f32 -1.0, %v2479_v23  ;;  %v2466_v43 = vsel %vm430_vm2, %v3560_v15, %v2464_v8  ;;  %v2469_v50 = vpop.permute.xlu1 %2468 }
0x1924   :  { %v2471_v62 = vsel %vm430_vm2, %v2469_v50, %v3562_v18 }
0x1925   :  { %v2489_v21 = vmul.f32 %v3167_v60, %v2466_v43  ;;  %v2488_v3 = vmul.f32 0.0, %v2471_v62 }
0x1926   :  { %v2482_v32 = vpop.permute.xlu0 %2481 }
0x1927   :  { %v2490_v1 = vadd.f32 %v2489_v21, %v2488_v3  ;;  %v2485_v2 = vpop.permute.xlu1 %2484 }
0x1928   :  { %v2487_v41 = vsel %vm430_vm2, %v2482_v32, %v2485_v2 }
0x1929   :  { %3563 = vtanh.f32 %v2490_v1 }
0x1933   :  { %v3564_v36 = vpop.eup %3563 }
0x1934   :  { %v2492_v45 = vmul.f32 %v3564_v36, %v2487_v41 }
0x1936   :  { %v2493_v38 = vpack.c.bf16 %v2492_v45, %v2492_v45  ;;  %2494 = vst.msk [vmem:[#allocation2] sm:$0xff] %vm430_vm2, %v2492_v45 }
0x1937   :  { %2495 = vst.msk [vmem:[#allocation2 + $0x20] sm:$0xff] %vm460_vm3, %v2492_v45 }
0x1938   :  { %3168 = vmatmul.mubr.msk.bf16.vlgmr.msra.gmra.mrb[72].mxu1 %vm79_vm1, %v2493_v38 }
0x1939   :  { %2684 = vmatpush1.bf16.msra.mxu1 %v4389_v39  ;;  %2715 = vmatprep.mubr.bf16.mxu1 %v3610_v24 }
0x193a   :  { %2685 = vmatprep.subr.bf16.mxu1 %v4394_v51 }
0x193d   :  { %2686 = vmatpush1.bf16.msra.mxu1 %v4402_v27 }
0x193e   :  { %2687 = vmatprep.subr.bf16.mxu1 %v4411_v31 }
0x1941   :  { %2688 = vmatpush1.bf16.msra.mxu1 %v4419_v52 }
0x1942   :  { %2689 = vmatprep.subr.bf16.mxu1 %v4425_v9 }
0x1945   :  { %2690 = vmatpush1.bf16.msra.mxu1 %v4436_v56 }
0x1946   :  { %3256 = vmatprep.subr.bf16.mxu1 %v3608_v0 }
0x1a0b   :  { %v2533_v55 = vpop.f32.mrb[72].mxu1 }
0x1a0c   :  { %v2540_v7 = vadd.f32 %v2533_v55, %v4471_v42  ;;  %v2535_v44 = vpop.f32.mrb[73].mxu1 }
0x1a0d   :  { %v2541_v17 = vadd.f32 %v2535_v44, %v4487_v12  ;;  %v2537_v20 = vpop.f32.mrb[74].mxu1 }
0x1a0e   :  { %v3169_v49 = vmul.f32 -1.442695, %v2540_v7  ;;  %v2538_v22 = vpop.f32.mrb[75].mxu1 }
0x1a0f   :  { %v3170_v25 = vmul.f32 -1.442695, %v2541_v17 }
0x1a10   :  { %3565 = vpow2.f32 %v3169_v49 }
0x1a11   :  { %3567 = vpow2.f32 %v3170_v25 }
0x1a1a   :  { %v3566_v29 = vpop.eup %3565 }
0x1a1b   :  { %v3568_v30 = vpop.eup %3567  ;;  %v2548_v28 = vadd.f32 1.0, %v3566_v29 }
0x1a1c   :  { %v2549_v33 = vadd.f32 1.0, %v3568_v30 }
0x1a1d   :  { %3569 = vrcp.f32 %v2548_v28 }
0x1a1e   :  { %3571 = vrcp.f32 %v2549_v33 }
0x1a27   :  { %v3570_v48 = vpop.eup %3569 }
0x1a28   :  { %v3572_v5 = vpop.eup %3571  ;;  %2564 = vrot.lane.b32.xlu0 %v3570_v48, %s3611_s19 }
0x1a29   :  { %2567 = vrot.lane.b32.xlu1 %v3572_v5, %s3613_s21 }
0x1a2c   :  { %2555 = vrot.lane.b32.xlu0 %v3572_v5, %s3612_s20 }
0x1a2d   :  { %2560 = vrot.lane.b32.xlu1 %v3570_v48, %s3613_s21 }
0x1a30   :  { %2573 = vrot.lane.b32.xlu0 %v3570_v48, %s3612_s20 }
0x1a31   :  { %2576 = vrot.lane.b32.xlu1 %v3572_v5, %s3611_s19 }
0x1a9a   :  { %v2565_v42 = vpop.permute.xlu0 %2564 }
0x1a9b   :  { %v2568_v12 = vpop.permute.xlu1 %2567 }
0x1a9c   :  { %v2570_v11 = vsel %vm430_vm2, %v2565_v42, %v2568_v12 }
0x1a9d   :  { %v2571_v34 = vmul.f32 2.0, %v2570_v11 }
0x1a9e   :  { %v2556_v35 = vpop.permute.xlu0 %2555 }
0x1a9f   :  { %v3171_v37 = vadd.f32 -1.0, %v2571_v34  ;;  %v2558_v47 = vsel %vm430_vm2, %v3570_v48, %v2556_v35  ;;  %v2561_v53 = vpop.permute.xlu1 %2560 }
0x1aa0   :  { %v2563_v40 = vsel %vm430_vm2, %v2561_v53, %v3572_v5 }
0x1aa1   :  { %v2581_v54 = vmul.f32 %v3171_v37, %v2558_v47  ;;  %v2580_v57 = vmul.f32 %v2563_v40, %v2490_v1 }
0x1aa2   :  { %v2574_v13 = vpop.permute.xlu0 %2573 }
0x1aa3   :  { %v2582_v58 = vadd.f32 %v2581_v54, %v2580_v57  ;;  %v2577_v16 = vpop.permute.xlu1 %2576 }
0x1aa4   :  { %v2579_v18 = vsel %vm430_vm2, %v2574_v13, %v2577_v16 }
0x1aa5   :  { %3573 = vtanh.f32 %v2582_v58 }
0x1aaf   :  { %v3574_v15 = vpop.eup %3573 }
0x1ab0   :  { %v2584_v59 = vmul.f32 %v3574_v15, %v2579_v18 }
0x1ab2   :  { %v2585_v19 = vpack.c.bf16 %v2584_v59, %v2584_v59  ;;  %2586 = vst.msk [vmem:[#allocation2 + $0x8] sm:$0xff] %vm430_vm2, %v2584_v59 }
0x1ab3   :  { %2587 = vst.msk [vmem:[#allocation2 + $0x18] sm:$0xff] %vm460_vm3, %v2584_v59 }
0x1ab4   :  { %3172 = vmatmul.mubr.msk.bf16.vlgmr.msra.gmra.mrb[64].mxu0 %vm79_vm1, %v2585_v19 }
0x1ab5   :  { %2776 = vmatpush1.bf16.msra.mxu0 %v4389_v39  ;;  %2807 = vmatprep.mubr.bf16.mxu0 %v3610_v24 }
0x1ab6   :  { %2777 = vmatprep.subr.bf16.mxu0 %v4394_v51 }
0x1ab9   :  { %2778 = vmatpush1.bf16.msra.mxu0 %v4402_v27 }
0x1aba   :  { %2779 = vmatprep.subr.bf16.mxu0 %v4411_v31 }
0x1abd   :  { %2780 = vmatpush1.bf16.msra.mxu0 %v4419_v52 }
0x1abe   :  { %2781 = vmatprep.subr.bf16.mxu0 %v4425_v9 }
0x1ac1   :  { %2782 = vmatpush1.bf16.msra.mxu0 %v4436_v56 }
0x1b87   :  { %v2625_v46 = vpop.f32.mrb[64].mxu0 }
0x1b88   :  { %v2632_v23 = vadd.f32 %v2625_v46, %v4478_v10  ;;  %v2627_v8 = vpop.f32.mrb[65].mxu0 }
0x1b89   :  { %v2633_v39 = vadd.f32 %v2627_v8, %v4480_v4  ;;  %v2629_v60 = vpop.f32.mrb[66].mxu0 }
0x1b8a   :  { %v3173_v24 = vmul.f32 -1.442695, %v2632_v23  ;;  %v2630_v43 = vpop.f32.mrb[67].mxu0 }
0x1b8b   :  { %v3174_v51 = vmul.f32 -1.442695, %v2633_v39 }
0x1b8c   :  { %3575 = vpow2.f32 %v3173_v24 }
0x1b8d   :  { %3577 = vpow2.f32 %v3174_v51 }
0x1b96   :  { %v3576_v27 = vpop.eup %3575 }
0x1b97   :  { %v3578_v31 = vpop.eup %3577  ;;  %v2640_v50 = vadd.f32 1.0, %v3576_v27 }
0x1b98   :  { %v2641_v52 = vadd.f32 1.0, %v3578_v31 }
0x1b99   :  { %3579 = vrcp.f32 %v2640_v50 }
0x1b9a   :  { %3581 = vrcp.f32 %v2641_v52 }
0x1ba3   :  { %v3580_v9 = vpop.eup %3579 }
0x1ba4   :  { %v3582_v56 = vpop.eup %3581  ;;  %2656 = vrot.lane.b32.xlu0 %v3580_v9, %s3611_s19 }
0x1ba5   :  { %2659 = vrot.lane.b32.xlu1 %v3582_v56, %s3613_s21 }
0x1ba8   :  { %2647 = vrot.lane.b32.xlu0 %v3582_v56, %s3612_s20 }
0x1ba9   :  { %2652 = vrot.lane.b32.xlu1 %v3580_v9, %s3613_s21 }
0x1bac   :  { %2665 = vrot.lane.b32.xlu0 %v3580_v9, %s3612_s20 }
0x1bad   :  { %2668 = vrot.lane.b32.xlu1 %v3582_v56, %s3611_s19 }
0x1c16   :  { %v2657_v10 = vpop.permute.xlu0 %2656 }
0x1c17   :  { %v2660_v4 = vpop.permute.xlu1 %2659 }
0x1c18   :  { %v2662_v62 = vsel %vm430_vm2, %v2657_v10, %v2660_v4 }
0x1c19   :  { %v2663_v21 = vmul.f32 2.0, %v2662_v62 }
0x1c1a   :  { %v2648_v3 = vpop.permute.xlu0 %2647 }
0x1c1b   :  { %v3175_v1 = vadd.f32 -1.0, %v2663_v21  ;;  %v2650_v32 = vsel %vm430_vm2, %v3580_v9, %v2648_v3  ;;  %v2653_v2 = vpop.permute.xlu1 %2652  ;;  %v3383_v3 = vld [vmem:[%s4615_s4 + $0x30] sm:$0xff]  }
0x1c1c   :  { %v2655_v36 = vsel %vm430_vm2, %v2653_v2, %v3582_v56 }
0x1c1d   :  { %v2673_v41 = vmul.f32 %v3175_v1, %v2650_v32  ;;  %v2672_v45 = vmul.f32 %v2655_v36, %v2582_v58  ;;  %v3384_v1 = vld [vmem:[%s4615_s4 + $0x38] sm:$0xff]  }
0x1c1e   :  { %v2666_v55 = vpop.permute.xlu0 %2665 }
0x1c1f   :  { %v2674_v38 = vadd.f32 %v2673_v41, %v2672_v45  ;;  %v2669_v7 = vpop.permute.xlu1 %2668 }
0x1c20   :  { %v2671_v17 = vsel %vm430_vm2, %v2666_v55, %v2669_v7 }
0x1c21   :  { %3583 = vtanh.f32 %v2674_v38 }
0x1c2b   :  { %v3584_v44 = vpop.eup %3583 }
0x1c2c   :  { %v2676_v20 = vmul.f32 %v3584_v44, %v2671_v17 }
0x1c2e   :  { %v2677_v49 = vpack.c.bf16 %v2676_v20, %v2676_v20  ;;  %2678 = vst.msk [vmem:[#allocation2 + $0x10] sm:$0xff] %vm430_vm2, %v2676_v20 }
0x1c2f   :  { %2679 = vst.msk [vmem:[#allocation2 + $0x10] sm:$0xff] %vm460_vm3, %v2676_v20 }
0x1c30   :  { %3176 = vmatmul.mubr.msk.bf16.vlgmr.msra.gmra.mrb[76].mxu1 %vm79_vm1, %v2677_v49 }
0x1c31   :  { %3264 = vmatprep.mubr.msk.bf16.mxu1 %vm3609_vm0, %v3608_v0 }
0x1d03   :  { %v2717_v22 = vpop.f32.mrb[76].mxu1 }
0x1d04   :  { %v2724_v25 = vadd.f32 %v2717_v22, %v4485_v6  ;;  %v2719_v29 = vpop.f32.mrb[77].mxu1 }
0x1d05   :  { %v2725_v30 = vadd.f32 %v2719_v29, %v4473_v63  ;;  %v2721_v28 = vpop.f32.mrb[78].mxu1 }
0x1d06   :  { %v3177_v33 = vmul.f32 -1.442695, %v2724_v25  ;;  %v2722_v48 = vpop.f32.mrb[79].mxu1 }
0x1d07   :  { %v3178_v5 = vmul.f32 -1.442695, %v2725_v30  ;;  %v2876_v48 = vsub.s32 6, %v3769_v26 }
0x1d08   :  { %3585 = vpow2.f32 %v3177_v33 }
0x1d09   :  { %3587 = vpow2.f32 %v3178_v5  ;;  %v3607_v5 = vld [vmem:[%s4614_s3] sm:$0xff] }
0x1d12   :  { %v3586_v42 = vpop.eup %3585 }
0x1d13   :  { %v3588_v12 = vpop.eup %3587  ;;  %v2732_v11 = vadd.f32 1.0, %v3586_v42  ;;  %v2877_v42 = vrot.slane %v3607_v5, %v2876_v48 }
0x1d14   :  { %v2733_v34 = vadd.f32 1.0, %v3588_v12 }
0x1d15   :  { %3589 = vrcp.f32 %v2732_v11 }
0x1d16   :  { %3591 = vrcp.f32 %v2733_v34 }
0x1d1f   :  { %v3590_v35 = vpop.eup %3589 }
0x1d20   :  { %v3592_v37 = vpop.eup %3591  ;;  %2748 = vrot.lane.b32.xlu0 %v3590_v35, %s3611_s19 }
0x1d21   :  { %2751 = vrot.lane.b32.xlu1 %v3592_v37, %s3613_s21 }
0x1d24   :  { %2739 = vrot.lane.b32.xlu0 %v3592_v37, %s3612_s20 }
0x1d25   :  { %2744 = vrot.lane.b32.xlu1 %v3590_v35, %s3613_s21 }
0x1d28   :  { %2757 = vrot.lane.b32.xlu0 %v3590_v35, %s3612_s20 }
0x1d29   :  { %2760 = vrot.lane.b32.xlu1 %v3592_v37, %s3611_s19 }
0x1d92   :  { %v2749_v63 = vpop.permute.xlu0 %2748 }
0x1d93   :  { %v2752_v6 = vpop.permute.xlu1 %2751 }
0x1d94   :  { %v2754_v47 = vsel %vm430_vm2, %v2749_v63, %v2752_v6 }
0x1d95   :  { %v2755_v53 = vmul.f32 2.0, %v2754_v47 }
0x1d96   :  { %v2740_v40 = vpop.permute.xlu0 %2739 }
0x1d97   :  { %v3179_v54 = vadd.f32 -1.0, %v2755_v53  ;;  %v2742_v57 = vsel %vm430_vm2, %v3590_v35, %v2740_v40  ;;  %v2745_v58 = vpop.permute.xlu1 %2744 }
0x1d98   :  { %v2747_v13 = vsel %vm430_vm2, %v2745_v58, %v3592_v37 }
0x1d99   :  { %v2765_v16 = vmul.f32 %v3179_v54, %v2742_v57  ;;  %v2764_v15 = vmul.f32 %v2747_v13, %v2674_v38 }
0x1d9a   :  { %v2758_v59 = vpop.permute.xlu0 %2757 }
0x1d9b   :  { %v2766_v18 = vadd.f32 %v2765_v16, %v2764_v15  ;;  %v2761_v19 = vpop.permute.xlu1 %2760 }
0x1d9c   :  { %v2763_v23 = vsel %vm430_vm2, %v2758_v59, %v2761_v19 }
0x1d9d   :  { %3593 = vtanh.f32 %v2766_v18 }
0x1da7   :  { %v3594_v46 = vpop.eup %3593 }
0x1da8   :  { %v2768_v8 = vmul.f32 %v3594_v46, %v2763_v23 }
0x1daa   :  { %v2769_v39 = vpack.c.bf16 %v2768_v8, %v2768_v8  ;;  %2770 = vst.msk [vmem:[#allocation2 + $0x18] sm:$0xff] %vm430_vm2, %v2768_v8 }
0x1dab   :  { %2771 = vst.msk [vmem:[#allocation2 + $0x8] sm:$0xff] %vm460_vm3, %v2768_v8 }
0x1dac   :  { %3180 = vmatmul.mubr.msk.bf16.vlgmr.msra.gmra.mrb[68].mxu0 %vm79_vm1, %v2769_v39 }
0x1e7f   :  { %v2809_v60 = vpop.f32.mrb[68].mxu0 }
0x1e80   :  { %v2816_v24 = vadd.f32 %v2809_v60, %v4492_v14  ;;  %v2811_v43 = vpop.f32.mrb[69].mxu0  ;;  %v3382_v14 = vld [vmem:[%s4615_s4 + $0x28] sm:$0xff]  }
0x1e81   :  { %v2817_v51 = vadd.f32 %v2811_v43, %v4466_v61  ;;  %v2813_v27 = vpop.f32.mrb[70].mxu0  ;;  %v3381_v61 = vld [vmem:[%s4615_s4 + $0x20] sm:$0xff]  }
0x1e82   :  { %v3181_v31 = vmul.f32 -1.442695, %v2816_v24  ;;  %v2814_v50 = vpop.f32.mrb[71].mxu0  ;;  %3257 = vmatpush3.bf16.msra.mxu1 %v3381_v61 }
0x1e83   :  { %v3182_v52 = vmul.f32 -1.442695, %v2817_v51  ;;  %3258 = vmatprep.subr.bf16.mxu1 %v3608_v0 }
0x1e84   :  { %3595 = vpow2.f32 %v3181_v31 }
0x1e85   :  { %3597 = vpow2.f32 %v3182_v52 }
0x1e86   :  { %3259 = vmatpush3.bf16.msra.mxu1 %v3382_v14 }
0x1e87   :  { %3260 = vmatprep.subr.bf16.mxu1 %v3608_v0 }
0x1e8a   :  { %3261 = vmatpush3.bf16.msra.mxu1 %v3383_v3 }
0x1e8b   :  { %3262 = vmatprep.subr.bf16.mxu1 %v3608_v0 }
0x1e8e   :  { %v3596_v9 = vpop.eup %3595  ;;  %3263 = vmatpush3.bf16.msra.mxu1 %v3384_v1 }
0x1e8f   :  { %v3598_v56 = vpop.eup %3597  ;;  %v2824_v10 = vadd.f32 1.0, %v3596_v9 }
0x1e90   :  { %v2825_v4 = vadd.f32 1.0, %v3598_v56 }
0x1e91   :  { %3599 = vrcp.f32 %v2824_v10 }
0x1e92   :  { %3601 = vrcp.f32 %v2825_v4 }
0x1e9b   :  { %v3600_v62 = vpop.eup %3599 }
0x1e9c   :  { %v3602_v21 = vpop.eup %3601  ;;  %2840 = vrot.lane.b32.xlu0 %v3600_v62, %s3611_s19 }
0x1e9d   :  { %2843 = vrot.lane.b32.xlu1 %v3602_v21, %s3613_s21 }
0x1ea0   :  { %2831 = vrot.lane.b32.xlu0 %v3602_v21, %s3612_s20 }
0x1ea1   :  { %2836 = vrot.lane.b32.xlu1 %v3600_v62, %s3613_s21 }
0x1ea4   :  { %2849 = vrot.lane.b32.xlu0 %v3600_v62, %s3612_s20 }
0x1ea5   :  { %2852 = vrot.lane.b32.xlu1 %v3602_v21, %s3611_s19 }
0x1f0e   :  { %v2841_v32 = vpop.permute.xlu0 %2840 }
0x1f0f   :  { %v2844_v2 = vpop.permute.xlu1 %2843 }
0x1f10   :  { %v2846_v36 = vsel %vm430_vm2, %v2841_v32, %v2844_v2 }
0x1f11   :  { %v2847_v41 = vmul.f32 2.0, %v2846_v36 }
0x1f12   :  { %v2832_v45 = vpop.permute.xlu0 %2831 }
0x1f13   :  { %v3183_v38 = vadd.f32 -1.0, %v2847_v41  ;;  %v2834_v55 = vsel %vm430_vm2, %v3600_v62, %v2832_v45  ;;  %v2837_v7 = vpop.permute.xlu1 %2836 }
0x1f14   :  { %v2839_v44 = vsel %vm430_vm2, %v2837_v7, %v3602_v21 }
0x1f15   :  { %v2857_v17 = vmul.f32 %v3183_v38, %v2834_v55  ;;  %v2856_v20 = vmul.f32 %v2839_v44, %v2766_v18 }
0x1f16   :  { %v2850_v22 = vpop.permute.xlu0 %2849 }
0x1f17   :  { %v2858_v49 = vadd.f32 %v2857_v17, %v2856_v20  ;;  %v2853_v25 = vpop.permute.xlu1 %2852 }
0x1f18   :  { %v2855_v29 = vsel %vm430_vm2, %v2850_v22, %v2853_v25 }
0x1f19   :  { %3603 = vtanh.f32 %v2858_v49 }
0x1f23   :  { %v3604_v0 = vpop.eup %3603 }
0x1f24   :  { %v2860_v30 = vmul.f32 %v3604_v0, %v2855_v29 }
0x1f26   :  { %2861 = vst.msk [vmem:[#allocation2 + $0x20] sm:$0xff] %vm430_vm2, %v2860_v30 }
0x1f27   :  { %2862 = vst.msk [vmem:[#allocation2] sm:$0xff] %vm460_vm3, %v2860_v30 }
0x1f2d   :  { %v2863_v28 = vld [vmem:[#allocation2 + $0x20] sm:$0xff] }
0x1f2e   :  { %v2864_v33 = vpack.c.bf16 %v2863_v28, %v2863_v28 }
0x1f30   :  { %3265 = vmatmul.mubr.msk.bf16.vlgmr.msra.gmra.mrb[80].mxu1 %vm79_vm1, %v2864_v33 }
0x2003   :  { %v2939_v12 = vpop.f32.mrb[80].mxu1 }
0x2004   :  { %v2940_v11 = vadd.f32 %v2939_v12, %v2877_v42  ;;  %v3266_v34 = vpop.f32.mrb[81].mxu1 }
0x2005   :  { %v2942_v35 = vpop.f32.mrb[82].mxu1 }
0x2006   :  { %2945 = vst [vmem:[%s4617_s6] sm:$0xff] %v2940_v11  ;;  %v3267_v37 = vpop.f32.mrb[83].mxu1 }

</bundles_post_ra>
